<compile_context>
chip_gen: v7x
topology: tpu7x:2x2x1
jax: 0.10.0
libtpu: 0.0.40
codegen_flags: <defaults>
</compile_context>

<pallas_src>
import numpy as np
import jax
import jax.numpy as jnp
from jax.experimental import pallas as pl
from jax.experimental.pallas import tpu as pltpu

# Shapes dictated by the nn.Module (fc1 = Linear(16*4*4, 128) => 3x28x28 input)
TB = 32                      # images per grid step
H_IN, W_IN, C_IN = 28, 28, 3
C1, C2 = 6, 16               # conv1 / conv2 output channels
K = 5                        # conv kernel size
H1, W1 = 24, 24              # conv1 output spatial
HP1, WP1 = 12, 12            # pool1 output spatial
H2, W2 = 8, 8                # conv2 output spatial
HP2, WP2 = 4, 4              # pool2 output spatial
NF1, NF2, NF3 = 128, 64, 10
LANE = 128                   # padded lane width for conv2/fc inputs & outputs


# ----------------------------------------------------------------------------
# Fused Pallas kernel: whole forward pass for one batch tile of TB images
# ----------------------------------------------------------------------------
def _row_pool_into(h, hp, out_ref):
    """2x max-pool over h.  Rows of `h` are ordered (h, b); rows for h=2i and
    h=2i+1 are adjacent TB-row blocks, so this is a plain VPU max of two
    static slices (no MXU, no selection matrices)."""
    for i in range(hp):
        blk = jnp.maximum(h[(2 * i) * TB:(2 * i + 1) * TB, :],
                          h[(2 * i + 1) * TB:(2 * i + 2) * TB, :])
        out_ref[i * TB:(i + 1) * TB, :] = blk.astype(out_ref.dtype)


def _fused_classifier_kernel(x_ref, c1m_ref, c1b_ref, p1w_ref,
                             c2m_ref, c2b_ref, p2w_ref,
                             f1w_ref, f1b_ref, f2w_ref, f2b_ref,
                             f3w_ref, f3b_ref, o_ref, rp1_ref, rp2_ref):
    f32, bf16 = jnp.float32, jnp.bfloat16
    x = x_ref[...]                                           # [28*TB, 84] bf16

    # ---- conv1 (5x5 VALID) as 5 banded bf16 matmuls, f32 acc, bias + ReLU
    acc = jnp.dot(x[0:H1 * TB, :], c1m_ref[0], preferred_element_type=f32)
    for di in range(1, K):
        acc = acc + jnp.dot(x[di * TB:(di + H1) * TB, :], c1m_ref[di],
                            preferred_element_type=f32)
    h1 = jnp.maximum(acc + c1b_ref[...], 0.0)                # [24*TB, 144] f32

    # ---- pool1: rows via VPU max, cols via one even|odd selector matmul
    _row_pool_into(h1, HP1, rp1_ref)
    rp1 = rp1_ref[...]                                       # [12*TB, 144] bf16
    cp1 = jnp.dot(rp1, p1w_ref[...], preferred_element_type=f32)   # [., 256]
    p1 = jnp.maximum(cp1[:, :LANE], cp1[:, LANE:]).astype(bf16)    # [12*TB,128]

    # ---- conv2 + ReLU (input lanes zero-padded past 72; zero band rows)
    acc2 = jnp.dot(p1[0:H2 * TB, :], c2m_ref[0], preferred_element_type=f32)
    for di in range(1, K):
        acc2 = acc2 + jnp.dot(p1[di * TB:(di + H2) * TB, :], c2m_ref[di],
                              preferred_element_type=f32)
    h2 = jnp.maximum(acc2 + c2b_ref[...], 0.0)               # [8*TB, 128] f32

    # ---- pool2
    _row_pool_into(h2, HP2, rp2_ref)
    rp2 = rp2_ref[...]                                       # [4*TB, 128] bf16
    cp2 = jnp.dot(rp2, p2w_ref[...], preferred_element_type=f32)   # [., 256]
    p2 = jnp.maximum(cp2[:, :LANE], cp2[:, LANE:]).astype(bf16)    # [4*TB, 128]

    # ---- fc1 + ReLU: contract the 4 pooled spatial-row blocks
    z = jnp.dot(p2[0:TB, :], f1w_ref[0], preferred_element_type=f32)
    for h in range(1, HP2):
        z = z + jnp.dot(p2[h * TB:(h + 1) * TB, :], f1w_ref[h],
                        preferred_element_type=f32)
    z = jnp.maximum(z + f1b_ref[...], 0.0).astype(bf16)      # [TB, 128]

    # ---- fc2 + ReLU (output zero-padded to 128 lanes)
    z = jnp.maximum(jnp.dot(z, f2w_ref[...], preferred_element_type=f32)
                    + f2b_ref[...], 0.0).astype(bf16)        # [TB, 128]

    # ---- fc3 (padded to 128 lanes -> single lane-dense HBM store)
    out = jnp.dot(z, f3w_ref[...], preferred_element_type=f32) + f3b_ref[...]
    o_ref[...] = out.astype(o_ref.dtype)                     # [TB, 128]


# ----------------------------------------------------------------------------
# One-time host-side repacking of the PyTorch-layout parameters
# ----------------------------------------------------------------------------
def _conv1_bands(w):
    """conv1 [6,3,5,5] -> [K, C_IN*W_IN, W1*C1].  Input lanes are (c, w)
    ordered (lane = c*W_IN + w); output lanes (w_out, f)."""
    F, C, KH, KW = w.shape
    m = np.zeros((KH, C * W_IN, W1 * F), np.float32)
    for di in range(KH):
        for dj in range(KW):
            for c in range(C):
                blk = w[:, c, di, dj]                        # [F]
                for x0 in range(W1):
                    m[di, c * W_IN + x0 + dj, x0 * F:(x0 + 1) * F] = blk
    return m


def _conv2_bands(w):
    """conv2 [16,6,5,5] -> [K, 128, W2*C2].  Input lanes are (w, c) ordered
    with c-stride C1=6; rows >= WP1*C1 stay zero (padded input lanes)."""
    F, C, KH, KW = w.shape
    m = np.zeros((KH, LANE, W2 * F), np.float32)
    for di in range(KH):
        for dj in range(KW):
            for c in range(C):
                blk = w[:, c, di, dj]
                for x0 in range(W2):
                    m[di, (x0 + dj) * C + c, x0 * F:(x0 + 1) * F] = blk
    return m


def _pool_col_cat(w_in, c):
    """Even|odd 2x-pool lane selectors concatenated into one [w_in*c, 256]
    matrix: even picks land in lanes [0, (w_in//2)*c), odd in [128, 128+...)."""
    wp = w_in // 2
    s = np.zeros((w_in * c, 2 * LANE), np.float32)
    for j in range(wp):
        for f in range(c):
            s[(2 * j) * c + f, j * c + f] = 1.0
            s[(2 * j + 1) * c + f, LANE + j * c + f] = 1.0
    return s


def prepare_kernel_params(params):
    """Repack parameters into MXU-friendly bf16 operands (biases stay f32).
    NOTE: fc*_w are expected [in, out]; a real torch state_dict stores
    nn.Linear weights as [out, in] and must be transposed before this call."""
    f32 = np.float32
    c1m = _conv1_bands(np.asarray(params["conv1_w"], f32))          # [5, 84,144]
    c2m = _conv2_bands(np.asarray(params["conv2_w"], f32))          # [5,128,128]
    c1b = np.tile(np.asarray(params["conv1_b"], f32), W1).reshape(1, W1 * C1)
    c2b = np.tile(np.asarray(params["conv2_b"], f32), W2).reshape(1, W2 * C2)
    p1w = _pool_col_cat(W1, C1)                                      # [144, 256]
    p2w = _pool_col_cat(W2, C2)                                      # [128, 256]

    # fc1 rows reordered from torch flatten order (c, h, w) to kernel (h, w, c),
    # then zero-padded to 128 input lanes.
    f1 = (np.asarray(params["fc1_w"], f32)
          .reshape(C2, HP2, WP2, NF1).transpose(1, 2, 0, 3)
          .reshape(HP2, WP2 * C2, NF1))
    f1w = np.zeros((HP2, LANE, NF1), f32)
    f1w[:, :WP2 * C2, :] = f1                                        # [4,128,128]
    f1b = np.asarray(params["fc1_b"], f32).reshape(1, NF1)

    f2w = np.zeros((NF1, LANE), f32)
    f2w[:, :NF2] = np.asarray(params["fc2_w"], f32)                  # [128, 128]
    f2b = np.zeros((1, LANE), f32)
    f2b[0, :NF2] = np.asarray(params["fc2_b"], f32)

    f3w = np.zeros((LANE, LANE), f32)
    f3w[:NF2, :NF3] = np.asarray(params["fc3_w"], f32)               # [128, 128]
    f3b = np.zeros((1, LANE), f32)
    f3b[0, :NF3] = np.asarray(params["fc3_b"], f32)

    bf = lambda a: jnp.asarray(a, jnp.bfloat16)
    fl = lambda a: jnp.asarray(a, jnp.float32)
    return (bf(c1m), fl(c1b), bf(p1w), bf(c2m), fl(c2b), bf(p2w),
            bf(f1w), fl(f1b), bf(f2w), fl(f2b), bf(f3w), fl(f3b))


# ----------------------------------------------------------------------------
# Forward pass (mirrors Classifier.forward)
# ----------------------------------------------------------------------------
def _const_map(nd):
    return lambda g: (0,) * nd


@jax.jit
def classifier_forward(kparams, x):
    """x: [B, 3, 28, 28] float32 (NCHW) -> logits [B, 10]."""
    B = x.shape[0]
    G = pl.cdiv(B, TB)
    Bp = G * TB
    xp = jnp.pad(x, ((0, Bp - B), (0, 0), (0, 0), (0, 0)))
    # rows = (tile, h, b_in_tile), lanes = (c, w).  W stays minormost, so the
    # host-side relayout is only a major-dim transpose (and may be fused into
    # the kernel's input DMA via allow_input_fusion below).
    x2d = (xp.reshape(G, TB, C_IN, H_IN, W_IN)
             .transpose(0, 3, 1, 2, 4)
             .reshape(G * H_IN * TB, C_IN * W_IN)
             .astype(jnp.bfloat16))

    in_specs = [pl.BlockSpec((H_IN * TB, C_IN * W_IN), lambda g: (g, 0))]
    in_specs += [pl.BlockSpec(p.shape, _const_map(p.ndim)) for p in kparams]

    out = pl.pallas_call(
        _fused_classifier_kernel,
        out_shape=jax.ShapeDtypeStruct((Bp, LANE), jnp.float32),
        grid=(G,),
        in_specs=in_specs,
        out_specs=pl.BlockSpec((TB, LANE), lambda g: (g, 0)),
        scratch_shapes=[pltpu.VMEM((HP1 * TB, W1 * C1), jnp.bfloat16),
                        pltpu.VMEM((HP2 * TB, W2 * C2), jnp.bfloat16)],
        compiler_params=pltpu.CompilerParams(
            dimension_semantics=("parallel",),
            allow_input_fusion=[True] + [False] * len(kparams)),
    )(x2d, *kparams)
    return out[:B, :NF3]


# ----------------------------------------------------------------------------
# Parameters (deterministic synthetic init, same shapes as the nn.Module)
# ----------------------------------------------------------------------------
def init_params(key):
    ks = jax.random.split(key, 10)

    def w(k, shape, fan_in):
        return jax.random.normal(k, shape, jnp.float32) / jnp.sqrt(float(fan_in))

    return {
        "conv1_w": w(ks[0], (6, 3, 5, 5), 3 * 25),
        "conv1_b": 0.01 * jax.random.normal(ks[1], (6,), jnp.float32),
        "conv2_w": w(ks[2], (16, 6, 5, 5), 6 * 25),
        "conv2_b": 0.01 * jax.random.normal(ks[3], (16,), jnp.float32),
        "fc1_w":   w(ks[4], (16 * 4 * 4, 128), 16 * 4 * 4),   # stored [in, out]
        "fc1_b":   0.01 * jax.random.normal(ks[5], (128,), jnp.float32),
        "fc2_w":   w(ks[6], (128, 64), 128),
        "fc2_b":   0.01 * jax.random.normal(ks[7], (64,), jnp.float32),
        "fc3_w":   w(ks[8], (64, 10), 64),
        "fc3_b":   0.01 * jax.random.normal(ks[9], (10,), jnp.float32),
    }


# ----------------------------------------------------------------------------
# Pure-JAX reference (exact f32) for correctness check
# ----------------------------------------------------------------------------
def reference_forward(params, x):
    hp = jax.lax.Precision.HIGHEST

    def conv(x, w, b):
        y = jax.lax.conv_general_dilated(
            x, w, (1, 1), "VALID",
            dimension_numbers=("NCHW", "OIHW", "NCHW"), precision=hp)
        return jnp.maximum(y + b[None, :, None, None], 0.0)

    def pool(x):
        return jnp.maximum(
            jnp.maximum(x[:, :, 0::2, 0::2], x[:, :, 0::2, 1::2]),
            jnp.maximum(x[:, :, 1::2, 0::2], x[:, :, 1::2, 1::2]))

    x = pool(conv(x, params["conv1_w"], params["conv1_b"]))
    x = pool(conv(x, params["conv2_w"], params["conv2_b"]))
    x = x.reshape(x.shape[0], -1)
    x = jnp.maximum(jnp.dot(x, params["fc1_w"], precision=hp) + params["fc1_b"], 0.0)
    x = jnp.maximum(jnp.dot(x, params["fc2_w"], precision=hp) + params["fc2_b"], 0.0)
    return jnp.dot(x, params["fc3_w"], precision=hp) + params["fc3_b"]


if __name__ == "__main__":
    key = jax.random.PRNGKey(0)
    pkey, xkey = jax.random.split(key)
    params = init_params(pkey)
    kparams = prepare_kernel_params(params)

    # Shapes dictated by the module (fc1 = 16*4*4 => 3x28x28 input), batch=2.
    x = jax.random.normal(xkey, (2, 3, 28, 28), dtype=jnp.float32)

    out = jax.block_until_ready(classifier_forward(kparams, x))
    assert out.shape == (2, 10), out.shape

    ref = jax.block_until_ready(reference_forward(params, x))
    err = float(jnp.max(jnp.abs(out - ref)))
    scale = float(jnp.max(jnp.abs(ref)))
    # bf16 MXU operands (f32 accumulation): tolerance covers bf16 rounding of
    # inputs + weights through 6 layers (typical observed ~1e-2 absolute);
    # any layout/permutation bug would produce errors O(|ref|) and still fail.
    assert err < 4e-2 * (1.0 + scale), (err, scale)

    print("KERNEL_OK")
</pallas_src>

<mosaic_0001>
module attributes {stable_mosaic.version = 11 : i64} {
  func.func @_fused_classifier_kernel(%arg0: i32, %arg1: memref<896x84xbf16, #tpu.memory_space<vmem>>, %arg2: memref<5x84x144xbf16, #tpu.memory_space<vmem>>, %arg3: memref<1x144xf32, #tpu.memory_space<vmem>>, %arg4: memref<144x256xbf16, #tpu.memory_space<vmem>>, %arg5: memref<5x128x128xbf16, #tpu.memory_space<vmem>>, %arg6: memref<1x128xf32, #tpu.memory_space<vmem>>, %arg7: memref<128x256xbf16, #tpu.memory_space<vmem>>, %arg8: memref<4x128x128xbf16, #tpu.memory_space<vmem>>, %arg9: memref<1x128xf32, #tpu.memory_space<vmem>>, %arg10: memref<128x128xbf16, #tpu.memory_space<vmem>>, %arg11: memref<1x128xf32, #tpu.memory_space<vmem>>, %arg12: memref<128x128xbf16, #tpu.memory_space<vmem>>, %arg13: memref<1x128xf32, #tpu.memory_space<vmem>>, %arg14: memref<32x128xf32, #tpu.memory_space<vmem>>, %arg15: memref<384x144xbf16, #tpu.memory_space<vmem>>, %arg16: memref<128x128xbf16, #tpu.memory_space<vmem>>) attributes {dimension_semantics = [#tpu.dimension_semantics<parallel>], iteration_bounds = array<i64: 1>, scalar_prefetch = 0 : i64, scratch_operands = 2 : i64, tpu.core_type = #tpu.core_type<tc>, window_params = [{transform_indices = @transform_0, window_bounds = array<i64: 896, 84>}, {pipeline_mode = #tpu.pipeline_mode<synchronous>, transform_indices = @transform_1, window_bounds = array<i64: 5, 84, 144>}, {pipeline_mode = #tpu.pipeline_mode<synchronous>, transform_indices = @transform_2, window_bounds = array<i64: 1, 144>}, {pipeline_mode = #tpu.pipeline_mode<synchronous>, transform_indices = @transform_3, window_bounds = array<i64: 144, 256>}, {pipeline_mode = #tpu.pipeline_mode<synchronous>, transform_indices = @transform_4, window_bounds = array<i64: 5, 128, 128>}, {pipeline_mode = #tpu.pipeline_mode<synchronous>, transform_indices = @transform_5, window_bounds = array<i64: 1, 128>}, {pipeline_mode = #tpu.pipeline_mode<synchronous>, transform_indices = @transform_6, window_bounds = array<i64: 128, 256>}, {pipeline_mode = #tpu.pipeline_mode<synchronous>, transform_indices = @transform_7, window_bounds = array<i64: 4, 128, 128>}, {pipeline_mode = #tpu.pipeline_mode<synchronous>, transform_indices = @transform_8, window_bounds = array<i64: 1, 128>}, {pipeline_mode = #tpu.pipeline_mode<synchronous>, transform_indices = @transform_9, window_bounds = array<i64: 128, 128>}, {pipeline_mode = #tpu.pipeline_mode<synchronous>, transform_indices = @transform_10, window_bounds = array<i64: 1, 128>}, {pipeline_mode = #tpu.pipeline_mode<synchronous>, transform_indices = @transform_11, window_bounds = array<i64: 128, 128>}, {pipeline_mode = #tpu.pipeline_mode<synchronous>, transform_indices = @transform_12, window_bounds = array<i64: 1, 128>}, {transform_indices = @transform_13, window_bounds = array<i64: 32, 128>}]} {
    %c0 = arith.constant 0 : index
    %c0_0 = arith.constant 0 : index
    %0 = vector.load %arg1[%c0, %c0_0] : memref<896x84xbf16, #tpu.memory_space<vmem>>, vector<896x84xbf16>
    %1 = vector.extract_strided_slice %0 {offsets = [0, 0], sizes = [768, 84], strides = [1, 1]} : vector<896x84xbf16> to vector<768x84xbf16>
    %c0_1 = arith.constant 0 : index
    %c0_2 = arith.constant 0 : index
    %c0_3 = arith.constant 0 : index
    %2 = vector.load %arg2[%c0_1, %c0_2, %c0_3] : memref<5x84x144xbf16, #tpu.memory_space<vmem>>, vector<1x84x144xbf16>
    %3 = vector.shape_cast %2 : vector<1x84x144xbf16> to vector<84x144xbf16>
    %cst = arith.constant dense<0.000000e+00> : vector<768x144xf32>
    %4 = tpu.matmul %1, %3, %cst {dimension_numbers = #tpu.dot_dimension_numbers<[1], [0], [0], [1], [0, 0, 1, 1], [], []>} : vector<768x84xbf16>, vector<84x144xbf16>, vector<768x144xf32> -> vector<768x144xf32>
    %5 = vector.extract_strided_slice %0 {offsets = [32, 0], sizes = [768, 84], strides = [1, 1]} : vector<896x84xbf16> to vector<768x84xbf16>
    %c1 = arith.constant 1 : index
    %c0_4 = arith.constant 0 : index
    %c0_5 = arith.constant 0 : index
    %6 = vector.load %arg2[%c1, %c0_4, %c0_5] : memref<5x84x144xbf16, #tpu.memory_space<vmem>>, vector<1x84x144xbf16>
    %7 = vector.shape_cast %6 : vector<1x84x144xbf16> to vector<84x144xbf16>
    %cst_6 = arith.constant dense<0.000000e+00> : vector<768x144xf32>
    %8 = tpu.matmul %5, %7, %cst_6 {dimension_numbers = #tpu.dot_dimension_numbers<[1], [0], [0], [1], [0, 0, 1, 1], [], []>} : vector<768x84xbf16>, vector<84x144xbf16>, vector<768x144xf32> -> vector<768x144xf32>
    %9 = arith.addf %4, %8 : vector<768x144xf32>
    %10 = vector.extract_strided_slice %0 {offsets = [64, 0], sizes = [768, 84], strides = [1, 1]} : vector<896x84xbf16> to vector<768x84xbf16>
    %c2 = arith.constant 2 : index
    %c0_7 = arith.constant 0 : index
    %c0_8 = arith.constant 0 : index
    %11 = vector.load %arg2[%c2, %c0_7, %c0_8] : memref<5x84x144xbf16, #tpu.memory_space<vmem>>, vector<1x84x144xbf16>
    %12 = vector.shape_cast %11 : vector<1x84x144xbf16> to vector<84x144xbf16>
    %cst_9 = arith.constant dense<0.000000e+00> : vector<768x144xf32>
    %13 = tpu.matmul %10, %12, %cst_9 {dimension_numbers = #tpu.dot_dimension_numbers<[1], [0], [0], [1], [0, 0, 1, 1], [], []>} : vector<768x84xbf16>, vector<84x144xbf16>, vector<768x144xf32> -> vector<768x144xf32>
    %14 = arith.addf %9, %13 : vector<768x144xf32>
    %15 = vector.extract_strided_slice %0 {offsets = [96, 0], sizes = [768, 84], strides = [1, 1]} : vector<896x84xbf16> to vector<768x84xbf16>
    %c3 = arith.constant 3 : index
    %c0_10 = arith.constant 0 : index
    %c0_11 = arith.constant 0 : index
    %16 = vector.load %arg2[%c3, %c0_10, %c0_11] : memref<5x84x144xbf16, #tpu.memory_space<vmem>>, vector<1x84x144xbf16>
    %17 = vector.shape_cast %16 : vector<1x84x144xbf16> to vector<84x144xbf16>
    %cst_12 = arith.constant dense<0.000000e+00> : vector<768x144xf32>
    %18 = tpu.matmul %15, %17, %cst_12 {dimension_numbers = #tpu.dot_dimension_numbers<[1], [0], [0], [1], [0, 0, 1, 1], [], []>} : vector<768x84xbf16>, vector<84x144xbf16>, vector<768x144xf32> -> vector<768x144xf32>
    %19 = arith.addf %14, %18 : vector<768x144xf32>
    %20 = vector.extract_strided_slice %0 {offsets = [128, 0], sizes = [768, 84], strides = [1, 1]} : vector<896x84xbf16> to vector<768x84xbf16>
    %c4 = arith.constant 4 : index
    %c0_13 = arith.constant 0 : index
    %c0_14 = arith.constant 0 : index
    %21 = vector.load %arg2[%c4, %c0_13, %c0_14] : memref<5x84x144xbf16, #tpu.memory_space<vmem>>, vector<1x84x144xbf16>
    %22 = vector.shape_cast %21 : vector<1x84x144xbf16> to vector<84x144xbf16>
    %cst_15 = arith.constant dense<0.000000e+00> : vector<768x144xf32>
    %23 = tpu.matmul %20, %22, %cst_15 {dimension_numbers = #tpu.dot_dimension_numbers<[1], [0], [0], [1], [0, 0, 1, 1], [], []>} : vector<768x84xbf16>, vector<84x144xbf16>, vector<768x144xf32> -> vector<768x144xf32>
    %24 = arith.addf %19, %23 : vector<768x144xf32>
    %c0_16 = arith.constant 0 : index
    %c0_17 = arith.constant 0 : index
    %25 = vector.load %arg3[%c0_16, %c0_17] : memref<1x144xf32, #tpu.memory_space<vmem>>, vector<1x144xf32>
    %26 = vector.broadcast %25 : vector<1x144xf32> to vector<768x144xf32>
    %27 = arith.addf %24, %26 : vector<768x144xf32>
    %cst_18 = arith.constant 0.000000e+00 : f32
    %28 = vector.broadcast %cst_18 : f32 to vector<768x144xf32>
    %29 = arith.maximumf %27, %28 : vector<768x144xf32>
    %30 = vector.extract_strided_slice %29 {offsets = [0, 0], sizes = [32, 144], strides = [1, 1]} : vector<768x144xf32> to vector<32x144xf32>
    %31 = vector.extract_strided_slice %29 {offsets = [32, 0], sizes = [32, 144], strides = [1, 1]} : vector<768x144xf32> to vector<32x144xf32>
    %32 = arith.maximumf %30, %31 : vector<32x144xf32>
    %33 = arith.truncf %32 : vector<32x144xf32> to vector<32x144xbf16>
    %c0_19 = arith.constant 0 : index
    %c0_20 = arith.constant 0 : index
    %34 = vector.load %arg15[%c0_19, %c0_20] : memref<384x144xbf16, #tpu.memory_space<vmem>>, vector<32x144xbf16>
    tpu.vector_store %arg15[%c0_19, %c0_20], %33 {strides = array<i32>} : memref<384x144xbf16, #tpu.memory_space<vmem>>, vector<32x144xbf16>,
    %35 = vector.extract_strided_slice %29 {offsets = [64, 0], sizes = [32, 144], strides = [1, 1]} : vector<768x144xf32> to vector<32x144xf32>
    %36 = vector.extract_strided_slice %29 {offsets = [96, 0], sizes = [32, 144], strides = [1, 1]} : vector<768x144xf32> to vector<32x144xf32>
    %37 = arith.maximumf %35, %36 : vector<32x144xf32>
    %38 = arith.truncf %37 : vector<32x144xf32> to vector<32x144xbf16>
    %c32 = arith.constant 32 : index
    %c0_21 = arith.constant 0 : index
    %39 = vector.load %arg15[%c32, %c0_21] : memref<384x144xbf16, #tpu.memory_space<vmem>>, vector<32x144xbf16>
    tpu.vector_store %arg15[%c32, %c0_21], %38 {strides = array<i32>} : memref<384x144xbf16, #tpu.memory_space<vmem>>, vector<32x144xbf16>,
    %40 = vector.extract_strided_slice %29 {offsets = [128, 0], sizes = [32, 144], strides = [1, 1]} : vector<768x144xf32> to vector<32x144xf32>
    %41 = vector.extract_strided_slice %29 {offsets = [160, 0], sizes = [32, 144], strides = [1, 1]} : vector<768x144xf32> to vector<32x144xf32>
    %42 = arith.maximumf %40, %41 : vector<32x144xf32>
    %43 = arith.truncf %42 : vector<32x144xf32> to vector<32x144xbf16>
    %c64 = arith.constant 64 : index
    %c0_22 = arith.constant 0 : index
    %44 = vector.load %arg15[%c64, %c0_22] : memref<384x144xbf16, #tpu.memory_space<vmem>>, vector<32x144xbf16>
    tpu.vector_store %arg15[%c64, %c0_22], %43 {strides = array<i32>} : memref<384x144xbf16, #tpu.memory_space<vmem>>, vector<32x144xbf16>,
    %45 = vector.extract_strided_slice %29 {offsets = [192, 0], sizes = [32, 144], strides = [1, 1]} : vector<768x144xf32> to vector<32x144xf32>
    %46 = vector.extract_strided_slice %29 {offsets = [224, 0], sizes = [32, 144], strides = [1, 1]} : vector<768x144xf32> to vector<32x144xf32>
    %47 = arith.maximumf %45, %46 : vector<32x144xf32>
    %48 = arith.truncf %47 : vector<32x144xf32> to vector<32x144xbf16>
    %c96 = arith.constant 96 : index
    %c0_23 = arith.constant 0 : index
    %49 = vector.load %arg15[%c96, %c0_23] : memref<384x144xbf16, #tpu.memory_space<vmem>>, vector<32x144xbf16>
    tpu.vector_store %arg15[%c96, %c0_23], %48 {strides = array<i32>} : memref<384x144xbf16, #tpu.memory_space<vmem>>, vector<32x144xbf16>,
    %50 = vector.extract_strided_slice %29 {offsets = [256, 0], sizes = [32, 144], strides = [1, 1]} : vector<768x144xf32> to vector<32x144xf32>
    %51 = vector.extract_strided_slice %29 {offsets = [288, 0], sizes = [32, 144], strides = [1, 1]} : vector<768x144xf32> to vector<32x144xf32>
    %52 = arith.maximumf %50, %51 : vector<32x144xf32>
    %53 = arith.truncf %52 : vector<32x144xf32> to vector<32x144xbf16>
    %c128 = arith.constant 128 : index
    %c0_24 = arith.constant 0 : index
    %54 = vector.load %arg15[%c128, %c0_24] : memref<384x144xbf16, #tpu.memory_space<vmem>>, vector<32x144xbf16>
    tpu.vector_store %arg15[%c128, %c0_24], %53 {strides = array<i32>} : memref<384x144xbf16, #tpu.memory_space<vmem>>, vector<32x144xbf16>,
    %55 = vector.extract_strided_slice %29 {offsets = [320, 0], sizes = [32, 144], strides = [1, 1]} : vector<768x144xf32> to vector<32x144xf32>
    %56 = vector.extract_strided_slice %29 {offsets = [352, 0], sizes = [32, 144], strides = [1, 1]} : vector<768x144xf32> to vector<32x144xf32>
    %57 = arith.maximumf %55, %56 : vector<32x144xf32>
    %58 = arith.truncf %57 : vector<32x144xf32> to vector<32x144xbf16>
    %c160 = arith.constant 160 : index
    %c0_25 = arith.constant 0 : index
    %59 = vector.load %arg15[%c160, %c0_25] : memref<384x144xbf16, #tpu.memory_space<vmem>>, vector<32x144xbf16>
    tpu.vector_store %arg15[%c160, %c0_25], %58 {strides = array<i32>} : memref<384x144xbf16, #tpu.memory_space<vmem>>, vector<32x144xbf16>,
    %60 = vector.extract_strided_slice %29 {offsets = [384, 0], sizes = [32, 144], strides = [1, 1]} : vector<768x144xf32> to vector<32x144xf32>
    %61 = vector.extract_strided_slice %29 {offsets = [416, 0], sizes = [32, 144], strides = [1, 1]} : vector<768x144xf32> to vector<32x144xf32>
    %62 = arith.maximumf %60, %61 : vector<32x144xf32>
    %63 = arith.truncf %62 : vector<32x144xf32> to vector<32x144xbf16>
    %c192 = arith.constant 192 : index
    %c0_26 = arith.constant 0 : index
    %64 = vector.load %arg15[%c192, %c0_26] : memref<384x144xbf16, #tpu.memory_space<vmem>>, vector<32x144xbf16>
    tpu.vector_store %arg15[%c192, %c0_26], %63 {strides = array<i32>} : memref<384x144xbf16, #tpu.memory_space<vmem>>, vector<32x144xbf16>,
    %65 = vector.extract_strided_slice %29 {offsets = [448, 0], sizes = [32, 144], strides = [1, 1]} : vector<768x144xf32> to vector<32x144xf32>
    %66 = vector.extract_strided_slice %29 {offsets = [480, 0], sizes = [32, 144], strides = [1, 1]} : vector<768x144xf32> to vector<32x144xf32>
    %67 = arith.maximumf %65, %66 : vector<32x144xf32>
    %68 = arith.truncf %67 : vector<32x144xf32> to vector<32x144xbf16>
    %c224 = arith.constant 224 : index
    %c0_27 = arith.constant 0 : index
    %69 = vector.load %arg15[%c224, %c0_27] : memref<384x144xbf16, #tpu.memory_space<vmem>>, vector<32x144xbf16>
    tpu.vector_store %arg15[%c224, %c0_27], %68 {strides = array<i32>} : memref<384x144xbf16, #tpu.memory_space<vmem>>, vector<32x144xbf16>,
    %70 = vector.extract_strided_slice %29 {offsets = [512, 0], sizes = [32, 144], strides = [1, 1]} : vector<768x144xf32> to vector<32x144xf32>
    %71 = vector.extract_strided_slice %29 {offsets = [544, 0], sizes = [32, 144], strides = [1, 1]} : vector<768x144xf32> to vector<32x144xf32>
    %72 = arith.maximumf %70, %71 : vector<32x144xf32>
    %73 = arith.truncf %72 : vector<32x144xf32> to vector<32x144xbf16>
    %c256 = arith.constant 256 : index
    %c0_28 = arith.constant 0 : index
    %74 = vector.load %arg15[%c256, %c0_28] : memref<384x144xbf16, #tpu.memory_space<vmem>>, vector<32x144xbf16>
    tpu.vector_store %arg15[%c256, %c0_28], %73 {strides = array<i32>} : memref<384x144xbf16, #tpu.memory_space<vmem>>, vector<32x144xbf16>,
    %75 = vector.extract_strided_slice %29 {offsets = [576, 0], sizes = [32, 144], strides = [1, 1]} : vector<768x144xf32> to vector<32x144xf32>
    %76 = vector.extract_strided_slice %29 {offsets = [608, 0], sizes = [32, 144], strides = [1, 1]} : vector<768x144xf32> to vector<32x144xf32>
    %77 = arith.maximumf %75, %76 : vector<32x144xf32>
    %78 = arith.truncf %77 : vector<32x144xf32> to vector<32x144xbf16>
    %c288 = arith.constant 288 : index
    %c0_29 = arith.constant 0 : index
    %79 = vector.load %arg15[%c288, %c0_29] : memref<384x144xbf16, #tpu.memory_space<vmem>>, vector<32x144xbf16>
    tpu.vector_store %arg15[%c288, %c0_29], %78 {strides = array<i32>} : memref<384x144xbf16, #tpu.memory_space<vmem>>, vector<32x144xbf16>,
    %80 = vector.extract_strided_slice %29 {offsets = [640, 0], sizes = [32, 144], strides = [1, 1]} : vector<768x144xf32> to vector<32x144xf32>
    %81 = vector.extract_strided_slice %29 {offsets = [672, 0], sizes = [32, 144], strides = [1, 1]} : vector<768x144xf32> to vector<32x144xf32>
    %82 = arith.maximumf %80, %81 : vector<32x144xf32>
    %83 = arith.truncf %82 : vector<32x144xf32> to vector<32x144xbf16>
    %c320 = arith.constant 320 : index
    %c0_30 = arith.constant 0 : index
    %84 = vector.load %arg15[%c320, %c0_30] : memref<384x144xbf16, #tpu.memory_space<vmem>>, vector<32x144xbf16>
    tpu.vector_store %arg15[%c320, %c0_30], %83 {strides = array<i32>} : memref<384x144xbf16, #tpu.memory_space<vmem>>, vector<32x144xbf16>,
    %85 = vector.extract_strided_slice %29 {offsets = [704, 0], sizes = [32, 144], strides = [1, 1]} : vector<768x144xf32> to vector<32x144xf32>
    %86 = vector.extract_strided_slice %29 {offsets = [736, 0], sizes = [32, 144], strides = [1, 1]} : vector<768x144xf32> to vector<32x144xf32>
    %87 = arith.maximumf %85, %86 : vector<32x144xf32>
    %88 = arith.truncf %87 : vector<32x144xf32> to vector<32x144xbf16>
    %c352 = arith.constant 352 : index
    %c0_31 = arith.constant 0 : index
    %89 = vector.load %arg15[%c352, %c0_31] : memref<384x144xbf16, #tpu.memory_space<vmem>>, vector<32x144xbf16>
    tpu.vector_store %arg15[%c352, %c0_31], %88 {strides = array<i32>} : memref<384x144xbf16, #tpu.memory_space<vmem>>, vector<32x144xbf16>,
    %c0_32 = arith.constant 0 : index
    %c0_33 = arith.constant 0 : index
    %90 = vector.load %arg15[%c0_32, %c0_33] : memref<384x144xbf16, #tpu.memory_space<vmem>>, vector<384x144xbf16>
    %c0_34 = arith.constant 0 : index
    %c0_35 = arith.constant 0 : index
    %91 = vector.load %arg4[%c0_34, %c0_35] : memref<144x256xbf16, #tpu.memory_space<vmem>>, vector<144x256xbf16>
    %cst_36 = arith.constant dense<0.000000e+00> : vector<384x256xf32>
    %92 = tpu.matmul %90, %91, %cst_36 {dimension_numbers = #tpu.dot_dimension_numbers<[1], [0], [0], [1], [0, 0, 1, 1], [], []>} : vector<384x144xbf16>, vector<144x256xbf16>, vector<384x256xf32> -> vector<384x256xf32>
    %93 = vector.extract_strided_slice %92 {offsets = [0, 0], sizes = [384, 128], strides = [1, 1]} : vector<384x256xf32> to vector<384x128xf32>
    %94 = vector.extract_strided_slice %92 {offsets = [0, 128], sizes = [384, 128], strides = [1, 1]} : vector<384x256xf32> to vector<384x128xf32>
    %95 = arith.maximumf %93, %94 : vector<384x128xf32>
    %96 = arith.truncf %95 : vector<384x128xf32> to vector<384x128xbf16>
    %97 = vector.extract_strided_slice %96 {offsets = [0, 0], sizes = [256, 128], strides = [1, 1]} : vector<384x128xbf16> to vector<256x128xbf16>
    %c0_37 = arith.constant 0 : index
    %c0_38 = arith.constant 0 : index
    %c0_39 = arith.constant 0 : index
    %98 = vector.load %arg5[%c0_37, %c0_38, %c0_39] : memref<5x128x128xbf16, #tpu.memory_space<vmem>>, vector<1x128x128xbf16>
    %99 = vector.shape_cast %98 : vector<1x128x128xbf16> to vector<128x128xbf16>
    %cst_40 = arith.constant dense<0.000000e+00> : vector<256x128xf32>
    %100 = tpu.matmul %97, %99, %cst_40 {dimension_numbers = #tpu.dot_dimension_numbers<[1], [0], [0], [1], [0, 0, 1, 1], [], []>} : vector<256x128xbf16>, vector<128x128xbf16>, vector<256x128xf32> -> vector<256x128xf32>
    %101 = vector.extract_strided_slice %96 {offsets = [32, 0], sizes = [256, 128], strides = [1, 1]} : vector<384x128xbf16> to vector<256x128xbf16>
    %c1_41 = arith.constant 1 : index
    %c0_42 = arith.constant 0 : index
    %c0_43 = arith.constant 0 : index
    %102 = vector.load %arg5[%c1_41, %c0_42, %c0_43] : memref<5x128x128xbf16, #tpu.memory_space<vmem>>, vector<1x128x128xbf16>
    %103 = vector.shape_cast %102 : vector<1x128x128xbf16> to vector<128x128xbf16>
    %cst_44 = arith.constant dense<0.000000e+00> : vector<256x128xf32>
    %104 = tpu.matmul %101, %103, %cst_44 {dimension_numbers = #tpu.dot_dimension_numbers<[1], [0], [0], [1], [0, 0, 1, 1], [], []>} : vector<256x128xbf16>, vector<128x128xbf16>, vector<256x128xf32> -> vector<256x128xf32>
    %105 = arith.addf %100, %104 : vector<256x128xf32>
    %106 = vector.extract_strided_slice %96 {offsets = [64, 0], sizes = [256, 128], strides = [1, 1]} : vector<384x128xbf16> to vector<256x128xbf16>
    %c2_45 = arith.constant 2 : index
    %c0_46 = arith.constant 0 : index
    %c0_47 = arith.constant 0 : index
    %107 = vector.load %arg5[%c2_45, %c0_46, %c0_47] : memref<5x128x128xbf16, #tpu.memory_space<vmem>>, vector<1x128x128xbf16>
    %108 = vector.shape_cast %107 : vector<1x128x128xbf16> to vector<128x128xbf16>
    %cst_48 = arith.constant dense<0.000000e+00> : vector<256x128xf32>
    %109 = tpu.matmul %106, %108, %cst_48 {dimension_numbers = #tpu.dot_dimension_numbers<[1], [0], [0], [1], [0, 0, 1, 1], [], []>} : vector<256x128xbf16>, vector<128x128xbf16>, vector<256x128xf32> -> vector<256x128xf32>
    %110 = arith.addf %105, %109 : vector<256x128xf32>
    %111 = vector.extract_strided_slice %96 {offsets = [96, 0], sizes = [256, 128], strides = [1, 1]} : vector<384x128xbf16> to vector<256x128xbf16>
    %c3_49 = arith.constant 3 : index
    %c0_50 = arith.constant 0 : index
    %c0_51 = arith.constant 0 : index
    %112 = vector.load %arg5[%c3_49, %c0_50, %c0_51] : memref<5x128x128xbf16, #tpu.memory_space<vmem>>, vector<1x128x128xbf16>
    %113 = vector.shape_cast %112 : vector<1x128x128xbf16> to vector<128x128xbf16>
    %cst_52 = arith.constant dense<0.000000e+00> : vector<256x128xf32>
    %114 = tpu.matmul %111, %113, %cst_52 {dimension_numbers = #tpu.dot_dimension_numbers<[1], [0], [0], [1], [0, 0, 1, 1], [], []>} : vector<256x128xbf16>, vector<128x128xbf16>, vector<256x128xf32> -> vector<256x128xf32>
    %115 = arith.addf %110, %114 : vector<256x128xf32>
    %116 = vector.extract_strided_slice %96 {offsets = [128, 0], sizes = [256, 128], strides = [1, 1]} : vector<384x128xbf16> to vector<256x128xbf16>
    %c4_53 = arith.constant 4 : index
    %c0_54 = arith.constant 0 : index
    %c0_55 = arith.constant 0 : index
    %117 = vector.load %arg5[%c4_53, %c0_54, %c0_55] : memref<5x128x128xbf16, #tpu.memory_space<vmem>>, vector<1x128x128xbf16>
    %118 = vector.shape_cast %117 : vector<1x128x128xbf16> to vector<128x128xbf16>
    %cst_56 = arith.constant dense<0.000000e+00> : vector<256x128xf32>
    %119 = tpu.matmul %116, %118, %cst_56 {dimension_numbers = #tpu.dot_dimension_numbers<[1], [0], [0], [1], [0, 0, 1, 1], [], []>} : vector<256x128xbf16>, vector<128x128xbf16>, vector<256x128xf32> -> vector<256x128xf32>
    %120 = arith.addf %115, %119 : vector<256x128xf32>
    %c0_57 = arith.constant 0 : index
    %c0_58 = arith.constant 0 : index
    %121 = vector.load %arg6[%c0_57, %c0_58] : memref<1x128xf32, #tpu.memory_space<vmem>>, vector<1x128xf32>
    %122 = vector.broadcast %121 : vector<1x128xf32> to vector<256x128xf32>
    %123 = arith.addf %120, %122 : vector<256x128xf32>
    %cst_59 = arith.constant 0.000000e+00 : f32
    %124 = vector.broadcast %cst_59 : f32 to vector<256x128xf32>
    %125 = arith.maximumf %123, %124 : vector<256x128xf32>
    %126 = vector.extract_strided_slice %125 {offsets = [0, 0], sizes = [32, 128], strides = [1, 1]} : vector<256x128xf32> to vector<32x128xf32>
    %127 = vector.extract_strided_slice %125 {offsets = [32, 0], sizes = [32, 128], strides = [1, 1]} : vector<256x128xf32> to vector<32x128xf32>
    %128 = arith.maximumf %126, %127 : vector<32x128xf32>
    %129 = arith.truncf %128 : vector<32x128xf32> to vector<32x128xbf16>
    %c0_60 = arith.constant 0 : index
    %c0_61 = arith.constant 0 : index
    %130 = vector.load %arg16[%c0_60, %c0_61] : memref<128x128xbf16, #tpu.memory_space<vmem>>, vector<32x128xbf16>
    tpu.vector_store %arg16[%c0_60, %c0_61], %129 {strides = array<i32>} : memref<128x128xbf16, #tpu.memory_space<vmem>>, vector<32x128xbf16>,
    %131 = vector.extract_strided_slice %125 {offsets = [64, 0], sizes = [32, 128], strides = [1, 1]} : vector<256x128xf32> to vector<32x128xf32>
    %132 = vector.extract_strided_slice %125 {offsets = [96, 0], sizes = [32, 128], strides = [1, 1]} : vector<256x128xf32> to vector<32x128xf32>
    %133 = arith.maximumf %131, %132 : vector<32x128xf32>
    %134 = arith.truncf %133 : vector<32x128xf32> to vector<32x128xbf16>
    %c32_62 = arith.constant 32 : index
    %c0_63 = arith.constant 0 : index
    %135 = vector.load %arg16[%c32_62, %c0_63] : memref<128x128xbf16, #tpu.memory_space<vmem>>, vector<32x128xbf16>
    tpu.vector_store %arg16[%c32_62, %c0_63], %134 {strides = array<i32>} : memref<128x128xbf16, #tpu.memory_space<vmem>>, vector<32x128xbf16>,
    %136 = vector.extract_strided_slice %125 {offsets = [128, 0], sizes = [32, 128], strides = [1, 1]} : vector<256x128xf32> to vector<32x128xf32>
    %137 = vector.extract_strided_slice %125 {offsets = [160, 0], sizes = [32, 128], strides = [1, 1]} : vector<256x128xf32> to vector<32x128xf32>
    %138 = arith.maximumf %136, %137 : vector<32x128xf32>
    %139 = arith.truncf %138 : vector<32x128xf32> to vector<32x128xbf16>
    %c64_64 = arith.constant 64 : index
    %c0_65 = arith.constant 0 : index
    %140 = vector.load %arg16[%c64_64, %c0_65] : memref<128x128xbf16, #tpu.memory_space<vmem>>, vector<32x128xbf16>
    tpu.vector_store %arg16[%c64_64, %c0_65], %139 {strides = array<i32>} : memref<128x128xbf16, #tpu.memory_space<vmem>>, vector<32x128xbf16>,
    %141 = vector.extract_strided_slice %125 {offsets = [192, 0], sizes = [32, 128], strides = [1, 1]} : vector<256x128xf32> to vector<32x128xf32>
    %142 = vector.extract_strided_slice %125 {offsets = [224, 0], sizes = [32, 128], strides = [1, 1]} : vector<256x128xf32> to vector<32x128xf32>
    %143 = arith.maximumf %141, %142 : vector<32x128xf32>
    %144 = arith.truncf %143 : vector<32x128xf32> to vector<32x128xbf16>
    %c96_66 = arith.constant 96 : index
    %c0_67 = arith.constant 0 : index
    %145 = vector.load %arg16[%c96_66, %c0_67] : memref<128x128xbf16, #tpu.memory_space<vmem>>, vector<32x128xbf16>
    tpu.vector_store %arg16[%c96_66, %c0_67], %144 {strides = array<i32>} : memref<128x128xbf16, #tpu.memory_space<vmem>>, vector<32x128xbf16>,
    %c0_68 = arith.constant 0 : index
    %c0_69 = arith.constant 0 : index
    %146 = vector.load %arg16[%c0_68, %c0_69] : memref<128x128xbf16, #tpu.memory_space<vmem>>, vector<128x128xbf16>
    %c0_70 = arith.constant 0 : index
    %c0_71 = arith.constant 0 : index
    %147 = vector.load %arg7[%c0_70, %c0_71] : memref<128x256xbf16, #tpu.memory_space<vmem>>, vector<128x256xbf16>
    %cst_72 = arith.constant dense<0.000000e+00> : vector<128x256xf32>
    %148 = tpu.matmul %146, %147, %cst_72 {dimension_numbers = #tpu.dot_dimension_numbers<[1], [0], [0], [1], [0, 0, 1, 1], [], []>} : vector<128x128xbf16>, vector<128x256xbf16>, vector<128x256xf32> -> vector<128x256xf32>
    %149 = vector.extract_strided_slice %148 {offsets = [0, 0], sizes = [128, 128], strides = [1, 1]} : vector<128x256xf32> to vector<128x128xf32>
    %150 = vector.extract_strided_slice %148 {offsets = [0, 128], sizes = [128, 128], strides = [1, 1]} : vector<128x256xf32> to vector<128x128xf32>
    %151 = arith.maximumf %149, %150 : vector<128x128xf32>
    %152 = arith.truncf %151 : vector<128x128xf32> to vector<128x128xbf16>
    %153 = vector.extract_strided_slice %152 {offsets = [0, 0], sizes = [32, 128], strides = [1, 1]} : vector<128x128xbf16> to vector<32x128xbf16>
    %c0_73 = arith.constant 0 : index
    %c0_74 = arith.constant 0 : index
    %c0_75 = arith.constant 0 : index
    %154 = vector.load %arg8[%c0_73, %c0_74, %c0_75] : memref<4x128x128xbf16, #tpu.memory_space<vmem>>, vector<1x128x128xbf16>
    %155 = vector.shape_cast %154 : vector<1x128x128xbf16> to vector<128x128xbf16>
    %cst_76 = arith.constant dense<0.000000e+00> : vector<32x128xf32>
    %156 = tpu.matmul %153, %155, %cst_76 {dimension_numbers = #tpu.dot_dimension_numbers<[1], [0], [0], [1], [0, 0, 1, 1], [], []>} : vector<32x128xbf16>, vector<128x128xbf16>, vector<32x128xf32> -> vector<32x128xf32>
    %157 = vector.extract_strided_slice %152 {offsets = [32, 0], sizes = [32, 128], strides = [1, 1]} : vector<128x128xbf16> to vector<32x128xbf16>
    %c1_77 = arith.constant 1 : index
    %c0_78 = arith.constant 0 : index
    %c0_79 = arith.constant 0 : index
    %158 = vector.load %arg8[%c1_77, %c0_78, %c0_79] : memref<4x128x128xbf16, #tpu.memory_space<vmem>>, vector<1x128x128xbf16>
    %159 = vector.shape_cast %158 : vector<1x128x128xbf16> to vector<128x128xbf16>
    %cst_80 = arith.constant dense<0.000000e+00> : vector<32x128xf32>
    %160 = tpu.matmul %157, %159, %cst_80 {dimension_numbers = #tpu.dot_dimension_numbers<[1], [0], [0], [1], [0, 0, 1, 1], [], []>} : vector<32x128xbf16>, vector<128x128xbf16>, vector<32x128xf32> -> vector<32x128xf32>
    %161 = arith.addf %156, %160 : vector<32x128xf32>
    %162 = vector.extract_strided_slice %152 {offsets = [64, 0], sizes = [32, 128], strides = [1, 1]} : vector<128x128xbf16> to vector<32x128xbf16>
    %c2_81 = arith.constant 2 : index
    %c0_82 = arith.constant 0 : index
    %c0_83 = arith.constant 0 : index
    %163 = vector.load %arg8[%c2_81, %c0_82, %c0_83] : memref<4x128x128xbf16, #tpu.memory_space<vmem>>, vector<1x128x128xbf16>
    %164 = vector.shape_cast %163 : vector<1x128x128xbf16> to vector<128x128xbf16>
    %cst_84 = arith.constant dense<0.000000e+00> : vector<32x128xf32>
    %165 = tpu.matmul %162, %164, %cst_84 {dimension_numbers = #tpu.dot_dimension_numbers<[1], [0], [0], [1], [0, 0, 1, 1], [], []>} : vector<32x128xbf16>, vector<128x128xbf16>, vector<32x128xf32> -> vector<32x128xf32>
    %166 = arith.addf %161, %165 : vector<32x128xf32>
    %167 = vector.extract_strided_slice %152 {offsets = [96, 0], sizes = [32, 128], strides = [1, 1]} : vector<128x128xbf16> to vector<32x128xbf16>
    %c3_85 = arith.constant 3 : index
    %c0_86 = arith.constant 0 : index
    %c0_87 = arith.constant 0 : index
    %168 = vector.load %arg8[%c3_85, %c0_86, %c0_87] : memref<4x128x128xbf16, #tpu.memory_space<vmem>>, vector<1x128x128xbf16>
    %169 = vector.shape_cast %168 : vector<1x128x128xbf16> to vector<128x128xbf16>
    %cst_88 = arith.constant dense<0.000000e+00> : vector<32x128xf32>
    %170 = tpu.matmul %167, %169, %cst_88 {dimension_numbers = #tpu.dot_dimension_numbers<[1], [0], [0], [1], [0, 0, 1, 1], [], []>} : vector<32x128xbf16>, vector<128x128xbf16>, vector<32x128xf32> -> vector<32x128xf32>
    %171 = arith.addf %166, %170 : vector<32x128xf32>
    %c0_89 = arith.constant 0 : index
    %c0_90 = arith.constant 0 : index
    %172 = vector.load %arg9[%c0_89, %c0_90] : memref<1x128xf32, #tpu.memory_space<vmem>>, vector<1x128xf32>
    %173 = vector.broadcast %172 : vector<1x128xf32> to vector<32x128xf32>
    %174 = arith.addf %171, %173 : vector<32x128xf32>
    %cst_91 = arith.constant 0.000000e+00 : f32
    %175 = vector.broadcast %cst_91 : f32 to vector<32x128xf32>
    %176 = arith.maximumf %174, %175 : vector<32x128xf32>
    %177 = arith.truncf %176 : vector<32x128xf32> to vector<32x128xbf16>
    %c0_92 = arith.constant 0 : index
    %c0_93 = arith.constant 0 : index
    %178 = vector.load %arg10[%c0_92, %c0_93] : memref<128x128xbf16, #tpu.memory_space<vmem>>, vector<128x128xbf16>
    %cst_94 = arith.constant dense<0.000000e+00> : vector<32x128xf32>
    %179 = tpu.matmul %177, %178, %cst_94 {dimension_numbers = #tpu.dot_dimension_numbers<[1], [0], [0], [1], [0, 0, 1, 1], [], []>} : vector<32x128xbf16>, vector<128x128xbf16>, vector<32x128xf32> -> vector<32x128xf32>
    %c0_95 = arith.constant 0 : index
    %c0_96 = arith.constant 0 : index
    %180 = vector.load %arg11[%c0_95, %c0_96] : memref<1x128xf32, #tpu.memory_space<vmem>>, vector<1x128xf32>
    %181 = vector.broadcast %180 : vector<1x128xf32> to vector<32x128xf32>
    %182 = arith.addf %179, %181 : vector<32x128xf32>
    %cst_97 = arith.constant 0.000000e+00 : f32
    %183 = vector.broadcast %cst_97 : f32 to vector<32x128xf32>
    %184 = arith.maximumf %182, %183 : vector<32x128xf32>
    %185 = arith.truncf %184 : vector<32x128xf32> to vector<32x128xbf16>
    %c0_98 = arith.constant 0 : index
    %c0_99 = arith.constant 0 : index
    %186 = vector.load %arg12[%c0_98, %c0_99] : memref<128x128xbf16, #tpu.memory_space<vmem>>, vector<128x128xbf16>
    %cst_100 = arith.constant dense<0.000000e+00> : vector<32x128xf32>
    %187 = tpu.matmul %185, %186, %cst_100 {dimension_numbers = #tpu.dot_dimension_numbers<[1], [0], [0], [1], [0, 0, 1, 1], [], []>} : vector<32x128xbf16>, vector<128x128xbf16>, vector<32x128xf32> -> vector<32x128xf32>
    %c0_101 = arith.constant 0 : index
    %c0_102 = arith.constant 0 : index
    %188 = vector.load %arg13[%c0_101, %c0_102] : memref<1x128xf32, #tpu.memory_space<vmem>>, vector<1x128xf32>
    %189 = vector.broadcast %188 : vector<1x128xf32> to vector<32x128xf32>
    %190 = arith.addf %187, %189 : vector<32x128xf32>
    %c0_103 = arith.constant 0 : index
    %c0_104 = arith.constant 0 : index
    %191 = vector.load %arg14[%c0_103, %c0_104] : memref<32x128xf32, #tpu.memory_space<vmem>>, vector<32x128xf32>
    tpu.vector_store %arg14[%c0_103, %c0_104], %190 {strides = array<i32>} : memref<32x128xf32, #tpu.memory_space<vmem>>, vector<32x128xf32>,
    return
  }
  func.func @transform_0(%arg0: i32) -> (i32, i32) {
    %c0_i32 = arith.constant 0 : i32
    %c0_i32_0 = arith.constant 0 : i32
    return %arg0, %c0_i32 : i32, i32
  }
  func.func @transform_1(%arg0: i32) -> (i32, i32, i32) {
    %c0_i32 = arith.constant 0 : i32
    %c0_i32_0 = arith.constant 0 : i32
    %c0_i32_1 = arith.constant 0 : i32
    %c0_i32_2 = arith.constant 0 : i32
    return %c0_i32, %c0_i32_0, %c0_i32_1 : i32, i32, i32
  }
  func.func @transform_2(%arg0: i32) -> (i32, i32) {
    %c0_i32 = arith.constant 0 : i32
    %c0_i32_0 = arith.constant 0 : i32
    %c0_i32_1 = arith.constant 0 : i32
    return %c0_i32, %c0_i32_0 : i32, i32
  }
  func.func @transform_3(%arg0: i32) -> (i32, i32) {
    %c0_i32 = arith.constant 0 : i32
    %c0_i32_0 = arith.constant 0 : i32
    %c0_i32_1 = arith.constant 0 : i32
    return %c0_i32, %c0_i32_0 : i32, i32
  }
  func.func @transform_4(%arg0: i32) -> (i32, i32, i32) {
    %c0_i32 = arith.constant 0 : i32
    %c0_i32_0 = arith.constant 0 : i32
    %c0_i32_1 = arith.constant 0 : i32
    %c0_i32_2 = arith.constant 0 : i32
    return %c0_i32, %c0_i32_0, %c0_i32_1 : i32, i32, i32
  }
  func.func @transform_5(%arg0: i32) -> (i32, i32) {
    %c0_i32 = arith.constant 0 : i32
    %c0_i32_0 = arith.constant 0 : i32
    %c0_i32_1 = arith.constant 0 : i32
    return %c0_i32, %c0_i32_0 : i32, i32
  }
  func.func @transform_6(%arg0: i32) -> (i32, i32) {
    %c0_i32 = arith.constant 0 : i32
    %c0_i32_0 = arith.constant 0 : i32
    %c0_i32_1 = arith.constant 0 : i32
    return %c0_i32, %c0_i32_0 : i32, i32
  }
  func.func @transform_7(%arg0: i32) -> (i32, i32, i32) {
    %c0_i32 = arith.constant 0 : i32
    %c0_i32_0 = arith.constant 0 : i32
    %c0_i32_1 = arith.constant 0 : i32
    %c0_i32_2 = arith.constant 0 : i32
    return %c0_i32, %c0_i32_0, %c0_i32_1 : i32, i32, i32
  }
  func.func @transform_8(%arg0: i32) -> (i32, i32) {
    %c0_i32 = arith.constant 0 : i32
    %c0_i32_0 = arith.constant 0 : i32
    %c0_i32_1 = arith.constant 0 : i32
    return %c0_i32, %c0_i32_0 : i32, i32
  }
  func.func @transform_9(%arg0: i32) -> (i32, i32) {
    %c0_i32 = arith.constant 0 : i32
    %c0_i32_0 = arith.constant 0 : i32
    %c0_i32_1 = arith.constant 0 : i32
    return %c0_i32, %c0_i32_0 : i32, i32
  }
  func.func @transform_10(%arg0: i32) -> (i32, i32) {
    %c0_i32 = arith.constant 0 : i32
    %c0_i32_0 = arith.constant 0 : i32
    %c0_i32_1 = arith.constant 0 : i32
    return %c0_i32, %c0_i32_0 : i32, i32
  }
  func.func @transform_11(%arg0: i32) -> (i32, i32) {
    %c0_i32 = arith.constant 0 : i32
    %c0_i32_0 = arith.constant 0 : i32
    %c0_i32_1 = arith.constant 0 : i32
    return %c0_i32, %c0_i32_0 : i32, i32
  }
  func.func @transform_12(%arg0: i32) -> (i32, i32) {
    %c0_i32 = arith.constant 0 : i32
    %c0_i32_0 = arith.constant 0 : i32
    %c0_i32_1 = arith.constant 0 : i32
    return %c0_i32, %c0_i32_0 : i32, i32
  }
  func.func @transform_13(%arg0: i32) -> (i32, i32) {
    %c0_i32 = arith.constant 0 : i32
    %c0_i32_0 = arith.constant 0 : i32
    return %arg0, %c0_i32 : i32, i32
  }
}

</mosaic_0001>

<bundles_post_ra>
// kernel: classifier_forward.1
= control target key start
LH: loop header
LB: loop body
LE: loop exit
PB: predicated region body
PF: predicated region fallthrough
CT: control target
= control target key end

     0   :  { %v12819_v1 = vmov 0   ;;  %vm620_vm0 = vcmask 1041408   ;;  %vm475_vm1 = vcmask 687104   ;;  %vm4521_vm2 = vcmask 130048   ;;  %s12805_s1 = inlined_call_operand.vmem [shape: bf16[5,84,144], index: 1, kind: input, shape index: {}]   ;;  %s12806_s0 = inlined_call_operand.vmem [shape: bf16[896,84], index: 0, kind: input, shape index: {}]   ;;  %s12807_s3 = inlined_call_operand.vmem [shape: bf16[144,256], index: 3, kind: input, shape index: {}]   ;;  %s12808_s2 = inlined_call_operand.vmem [shape: f32[1,144], index: 2, kind: input, shape index: {}]   ;;  %s12809_s4 = inlined_call_operand.vmem [shape: bf16[5,128,128], index: 4, kind: input, shape index: {}]   ;;  %s12810_s6 = inlined_call_operand.vmem [shape: bf16[128,256], index: 6, kind: input, shape index: {}]   ;;  %s12811_s7 = inlined_call_operand.vmem [shape: bf16[4,128,128], index: 7, kind: input, shape index: {}]   ;;  %s12812_s5 = inlined_call_operand.vmem [shape: f32[1,128], index: 5, kind: input, shape index: {}]   ;;  %s12813_s9 = inlined_call_operand.vmem [shape: bf16[128,128], index: 9, kind: input, shape index: {}]   ;;  %s12814_s11 = inlined_call_operand.vmem [shape: bf16[128,128], index: 11, kind: input, shape index: {}]   ;;  %s12815_s8 = inlined_call_operand.vmem [shape: f32[1,128], index: 8, kind: input, shape index: {}]   ;;  %s12816_s10 = inlined_call_operand.vmem [shape: f32[1,128], index: 10, kind: input, shape index: {}]   ;;  %s12817_s12 = inlined_call_operand.vmem [shape: f32[1,128], index: 12, kind: input, shape index: {}]   ;;  %s12818_s13 = inlined_call_operand.vmem [shape: f32[32,128], index: 13, kind: output, shape index: {}]  }
   0x1   :  { %v10105_v0 = vld [vmem:[%s12805_s1 + $0x4] ss:$8 sps:$4 sm:$0xff]   ;;  %1249 = vmatprep.mubr.bf16.mxu0 %v12819_v1  ;;  %659 = vmatprep.mubr.bf16.mxu1 %v12819_v1  ;;  %v10112_v2 = vld [vmem:[%s12805_s1] ss:$8 sps:$4 sm:$0xff]   ;;  %v10118_v3 = vld [vmem:[%s12805_s1 + $0x14] ss:$8 sps:$4 sm:$0xff]  }
   0x2   :  { %1217 = vmatprep.subr.bf16.mxu0 %v10105_v0  ;;  %v10124_v4 = vld [vmem:[%s12805_s1 + $0x10] ss:$8 sps:$4 sm:$0xff]   ;;  %v10130_v5 = vld [vmem:[%s12805_s1 + $0x24] ss:$8 sps:$4 sm:$0xff]   ;;  %v10136_v6 = vld [vmem:[%s12805_s1 + $0x20] ss:$8 sps:$4 sm:$0xff]  }
   0x3   :  { %1218 = vmatpush1.bf16.msra.mxu0 %v10112_v2  ;;  %v10142_v7 = vld [vmem:[%s12805_s1 + $0x34] ss:$8 sps:$4 sm:$0xff]   ;;  %v10147_v8 = vld [vmem:[%s12805_s1 + $0x30] ss:$8 sps:$4 sm:$0xff]   ;;  %v10153_v9 = vld [vmem:[%s12805_s1 + $0x44] ss:$8 sps:$4 sm:$0xff]  }
   0x4   :  { %1219 = vmatprep.subr.bf16.mxu0 %v10118_v3  ;;  %v167_v10 = vld [vmem:[%s12805_s1 + $0x50] sm:$0x33]  ;;  %v10163_v11 = vld [vmem:[%s12805_s1 + $0x40] ss:$8 sps:$4 sm:$0xff]   ;;  %v9731_v18 = vld [vmem:[%s12805_s1 + $0xc4] ss:$8 sps:$4 sm:$0xff]  }
   0x5   :  { %v7709_v12 = vcombine.low %v167_v10, %v167_v10  ;;  %v10166_v13 = vcombine.high %v167_v10, %v167_v10  ;;  %v9725_v15 = vld [vmem:[%s12805_s1 + $0xb4] ss:$8 sps:$4 sm:$0xff]   ;;  %v9722_v16 = vld [vmem:[%s12806_s0] sm:$0xff]   ;;  %v9723_v17 = vld [vmem:[%s12805_s1 + $0xb0] ss:$8 sps:$4 sm:$0xff]  }
   0x6   :  { %v9729_v19 = vld [vmem:[%s12805_s1 + $0xc0] ss:$8 sps:$4 sm:$0xff]   ;;  %v9738_v20 = vld [vmem:[%s12805_s1 + $0xd4] ss:$8 sps:$4 sm:$0xff]   ;;  %v9736_v22 = vld [vmem:[%s12805_s1 + $0xd0] ss:$8 sps:$4 sm:$0xff]  }
   0x7   :  { %1220 = vmatpush1.bf16.msra.mxu0 %v10124_v4  ;;  %v10170_v14 = vsel %vm620_vm0, %v7709_v12, 0  ;;  %v9726_v21 = vld [vmem:[%s12806_s0 + $0x8] sm:$0xff]   ;;  %v9752_v25 = vld [vmem:[%s12805_s1 + $0xf4] ss:$8 sps:$4 sm:$0xff]   ;;  %v9750_v27 = vld [vmem:[%s12805_s1 + $0xf0] ss:$8 sps:$4 sm:$0xff]  }
   0x8   :  { %1221 = vmatprep.subr.bf16.mxu0 %v10130_v5  ;;  %v9745_v23 = vld [vmem:[%s12805_s1 + $0xe4] ss:$8 sps:$4 sm:$0xff]   ;;  %v9743_v24 = vld [vmem:[%s12805_s1 + $0xe0] ss:$8 sps:$4 sm:$0xff]   ;;  %v10215_v26 = vld [vmem:[%s12806_s0 + $0x10] sm:$0xff]  }
   0x9   :  { %v10226_v28 = vld [vmem:[%s12806_s0 + $0x18] sm:$0xff]   ;;  %v7770_v29 = vld [vmem:[%s12805_s1 + $0x100] sm:$0x33]  ;;  %v10247_v34 = vld [vmem:[%s12806_s0 + $0x28] sm:$0xff]  }
   0xa   :  { %v7784_v30 = vcombine.high %v7770_v29, %v7770_v29  ;;  %v7783_v31 = vcombine.low %v7770_v29, %v7770_v29  ;;  %v10237_v32 = vld [vmem:[%s12806_s0 + $0x20] sm:$0xff]   ;;  %v10255_v35 = vld [vmem:[%s12806_s0 + $0x30] sm:$0xff]   ;;  %v10263_v36 = vld [vmem:[%s12806_s0 + $0x38] sm:$0xff]  }
   0xb   :  { %1222 = vmatpush1.bf16.msra.mxu0 %v10136_v6  ;;  %v9764_v37 = vld [vmem:[%s12805_s1 + $0x10c] ss:$8 sps:$4 sm:$0xff]   ;;  %v10274_v38 = vld [vmem:[%s12806_s0 + $0x40] sm:$0xff]   ;;  %v10298_v41 = vld [vmem:[%s12806_s0 + $0x58] sm:$0xff]  }
   0xc   :  { %1223 = vmatprep.subr.bf16.mxu0 %v10142_v7  ;;  %v1814_v33 = vsel %vm620_vm0, %v7783_v31, 0  ;;  %v10282_v39 = vld [vmem:[%s12806_s0 + $0x48] sm:$0xff]   ;;  %v10290_v40 = vld [vmem:[%s12806_s0 + $0x50] sm:$0xff]   ;;  %v10306_v42 = vld [vmem:[%s12806_s0 + $0x60] sm:$0xff]  }
   0xd   :  { %v10314_v43 = vld [vmem:[%s12806_s0 + $0x68] sm:$0xff]   ;;  %v10322_v44 = vld [vmem:[%s12806_s0 + $0x70] sm:$0xff]   ;;  %v10330_v45 = vld [vmem:[%s12806_s0 + $0x78] sm:$0xff]  }
   0xe   :  { %v10338_v46 = vld [vmem:[%s12806_s0 + $0x80] sm:$0xff]   ;;  %v10346_v47 = vld [vmem:[%s12806_s0 + $0x88] sm:$0xff]   ;;  %v10354_v48 = vld [vmem:[%s12806_s0 + $0x90] sm:$0xff]  }
   0xf   :  { %1224 = vmatpush1.bf16.msra.mxu0 %v10147_v8  ;;  %v10362_v49 = vld [vmem:[%s12806_s0 + $0x98] sm:$0xff]   ;;  %v10370_v50 = vld [vmem:[%s12806_s0 + $0xa0] sm:$0xff]   ;;  %v10378_v51 = vld [vmem:[%s12806_s0 + $0xa8] sm:$0xff]  }
  0x10   :  { %1225 = vmatprep.subr.bf16.mxu0 %v10153_v9  ;;  %v10386_v52 = vld [vmem:[%s12806_s0 + $0xb0] sm:$0xff]   ;;  %v9767_v54 = vld [vmem:[%s12805_s1 + $0x11c] ss:$8 sps:$4 sm:$0xff]   ;;  %v9765_v55 = vld [vmem:[%s12805_s1 + $0x118] ss:$8 sps:$4 sm:$0xff]  }
  0x11   :  { %v9762_v53 = vld [vmem:[%s12805_s1 + $0x108] ss:$8 sps:$4 sm:$0xff]   ;;  %v9770_v56 = vld [vmem:[%s12805_s1 + $0x12c] ss:$8 sps:$4 sm:$0xff]   ;;  %v9777_v58 = vld [vmem:[%s12805_s1 + $0x138] ss:$8 sps:$4 sm:$0xff]  }
  0x12   :  { %v9768_v57 = vld [vmem:[%s12805_s1 + $0x128] ss:$8 sps:$4 sm:$0xff]   ;;  %v9779_v59 = vld [vmem:[%s12805_s1 + $0x13c] ss:$8 sps:$4 sm:$0xff]   ;;  %v9790_v61 = vld [vmem:[%s12805_s1 + $0x14c] ss:$8 sps:$4 sm:$0xff]  }
  0x13   :  { %1226 = vmatpush1.bf16.msra.mxu0 %v10163_v11  ;;  %v9788_v60 = vld [vmem:[%s12805_s1 + $0x148] ss:$8 sps:$4 sm:$0xff]   ;;  %v10478_v62 = vld [vmem:[%s12806_s0 + $0xb8] sm:$0xff]   ;;  %v10486_v63 = vld [vmem:[%s12806_s0 + $0xc0] sm:$0xff]  }
  0x14   :  { %7711 = vmatprep.subr.msk.bf16.mxu0 %vm620_vm0, %v10166_v13  ;;  %v10494_v10 = vld [vmem:[%s12806_s0 + $0xc8] sm:$0xff]   ;;  %v10502_v12 = vld [vmem:[%s12806_s0 + $0xd0] sm:$0xff]   ;;  %v9809_v29 = vld [vmem:[%s12805_s1 + $0x7c] ss:$8 sps:$4 sm:$0xff]  }
  0x15   :  { %v9812_v31 = vld [vmem:[%s12805_s1 + $0x78] ss:$8 sps:$4 sm:$0xff]  }
  0x17   :  { %1228 = vmatpush1.bf16.msra.mxu0 %v10170_v14 }
  0x18   :  { %1819 = vmatprep.subr.bf16.mxu0 %v9725_v15  ;;  %v10510_v15 = vld [vmem:[%s12806_s0 + $0xd8] sm:$0xff]  }
  0x1a   :  { %7712 = vmatmul.mubr.msk.bf16.vlgmr.msra.gmra.mrb[0].mxu0 %vm475_vm1, %v9722_v16  ;;  %v10518_v16 = vld [vmem:[%s12806_s0 + $0xe0] sm:$0xff]  }
  0x1b   :  { %1820 = vmatpush1.bf16.msra.mxu0 %v9723_v17  ;;  %1259 = vmatprep.mubr.bf16.mxu0 %v12819_v1  ;;  %v7844_v17 = vld [vmem:[%s12805_s1 + $0x158] sm:$0x33] }
  0x1c   :  { %1821 = vmatprep.subr.bf16.mxu0 %v9731_v18  ;;  %v7858_v18 = vcombine.high %v7844_v17, %v7844_v17 }
  0x1f   :  { %1822 = vmatpush1.bf16.msra.mxu0 %v9729_v19  ;;  %v7857_v19 = vcombine.low %v7844_v17, %v7844_v17  ;;  %v10801_v17 = vld [vmem:[%s12806_s0 + $0x190] sm:$0xff]  }
  0x20   :  { %1823 = vmatprep.subr.bf16.mxu0 %v9738_v20 }
  0x21   :  { %v2608_v20 = vsel %vm620_vm0, %v7857_v19, 0  ;;  %v9825_v19 = vld [vmem:[%s12805_s1 + $0x160] ss:$8 sps:$4 sm:$0xff]  }
  0x22   :  { %7713 = vmatmul.mubr.msk.bf16.gmra.mrb[4].mxu0 %vm475_vm1, %v9726_v21  ;;  %v10531_v21 = vld [vmem:[%s12806_s0 + $0xe8] sm:$0xff]  }
  0x23   :  { %1269 = vmatprep.mubr.bf16.mxu0 %v12819_v1  ;;  %1824 = vmatpush1.bf16.msra.mxu0 %v9736_v22  ;;  %v9802_v22 = vld [vmem:[%s12805_s1 + $0x5c] ss:$8 sps:$4 sm:$0xff]  }
  0x24   :  { %1825 = vmatprep.subr.bf16.mxu0 %v9745_v23  ;;  %627 = vmatprep.subr.bf16.mxu1 %v9802_v22  ;;  %v10542_v23 = vld [vmem:[%s12806_s0 + $0xf0] sm:$0xff]  }
  0x25   :  { %v9828_v22 = vld [vmem:[%s12805_s1 + $0x170] ss:$8 sps:$4 sm:$0xff]  }
  0x27   :  { %1826 = vmatpush1.bf16.msra.mxu0 %v9743_v24  ;;  %v9805_v24 = vld [vmem:[%s12805_s1 + $0x58] ss:$8 sps:$4 sm:$0xff]  }
  0x28   :  { %1827 = vmatprep.subr.bf16.mxu0 %v9752_v25  ;;  %628 = vmatpush1.bf16.msra.mxu1 %v9805_v24  ;;  %v9806_v25 = vld [vmem:[%s12805_s1 + $0x6c] ss:$8 sps:$4 sm:$0xff]  }
  0x29   :  { %629 = vmatprep.subr.bf16.mxu1 %v9806_v25  ;;  %v9833_v24 = vld [vmem:[%s12805_s1 + $0x184] ss:$8 sps:$4 sm:$0xff]   ;;  %v9831_v25 = vld [vmem:[%s12805_s1 + $0x180] ss:$8 sps:$4 sm:$0xff]  }
  0x2a   :  { %7714 = vmatmul.mubr.msk.bf16.gmra.mrb[8].mxu0 %vm475_vm1, %v10215_v26 }
  0x2b   :  { %1279 = vmatprep.mubr.bf16.mxu0 %v12819_v1  ;;  %1828 = vmatpush1.bf16.msra.mxu0 %v9750_v27  ;;  %v9808_v27 = vld [vmem:[%s12805_s1 + $0x68] ss:$8 sps:$4 sm:$0xff]  }
  0x2c   :  { %7785 = vmatprep.subr.msk.bf16.mxu0 %vm620_vm0, %v7784_v30  ;;  %v10562_v30 = vld [vmem:[%s12806_s0 + $0xf8] sm:$0xff]   ;;  %630 = vmatpush1.bf16.msra.mxu1 %v9808_v27 }
  0x2d   :  { %631 = vmatprep.subr.bf16.mxu1 %v9809_v29 }
  0x2f   :  { %1830 = vmatpush1.bf16.msra.mxu0 %v1814_v33  ;;  %v9813_v33 = vld [vmem:[%s12805_s1 + $0x8c] ss:$8 sps:$4 sm:$0xff]  }
  0x30   :  { %2613 = vmatprep.subr.bf16.mxu0 %v9764_v37  ;;  %632 = vmatpush1.bf16.msra.mxu1 %v9812_v31  ;;  %v9815_v37 = vld [vmem:[%s12805_s1 + $0x88] ss:$8 sps:$4 sm:$0xff]  }
  0x31   :  { %633 = vmatprep.subr.bf16.mxu1 %v9813_v33 }
  0x32   :  { %7715 = vmatmul.mubr.msk.bf16.gmra.mrb[12].mxu0 %vm475_vm1, %v10226_v28 }
  0x33   :  { %1289 = vmatprep.mubr.bf16.mxu0 %v12819_v1 }
  0x34   :  { %634 = vmatpush1.bf16.msra.mxu1 %v9815_v37 }
  0x3a   :  { %7716 = vmatmul.mubr.msk.bf16.gmra.mrb[16].mxu0 %vm475_vm1, %v10237_v32 }
  0x3b   :  { %1299 = vmatprep.mubr.bf16.mxu0 %v12819_v1 }
  0x42   :  { %7717 = vmatmul.mubr.msk.bf16.gmra.mrb[20].mxu0 %vm475_vm1, %v10247_v34 }
  0x43   :  { %1309 = vmatprep.mubr.bf16.mxu0 %v12819_v1 }
  0x4a   :  { %7718 = vmatmul.mubr.msk.bf16.gmra.mrb[24].mxu0 %vm475_vm1, %v10255_v35 }
  0x4b   :  { %1319 = vmatprep.mubr.bf16.mxu0 %v12819_v1 }
  0x52   :  { %7719 = vmatmul.mubr.msk.bf16.gmra.mrb[28].mxu0 %vm475_vm1, %v10263_v36 }
  0x53   :  { %1329 = vmatprep.mubr.bf16.mxu0 %v12819_v1 }
  0x5a   :  { %7720 = vmatmul.mubr.msk.bf16.gmra.mrb[32].mxu0 %vm475_vm1, %v10274_v38 }
  0x5b   :  { %1339 = vmatprep.mubr.bf16.mxu0 %v12819_v1 }
  0x62   :  { %7721 = vmatmul.mubr.msk.bf16.gmra.mrb[36].mxu0 %vm475_vm1, %v10282_v39 }
  0x63   :  { %1349 = vmatprep.mubr.bf16.mxu0 %v12819_v1 }
  0x6a   :  { %7722 = vmatmul.mubr.msk.bf16.gmra.mrb[40].mxu0 %vm475_vm1, %v10290_v40 }
  0x6b   :  { %1359 = vmatprep.mubr.bf16.mxu0 %v12819_v1 }
  0x72   :  { %7723 = vmatmul.mubr.msk.bf16.gmra.mrb[44].mxu0 %vm475_vm1, %v10298_v41 }
  0x73   :  { %1369 = vmatprep.mubr.bf16.mxu0 %v12819_v1 }
  0x7a   :  { %7724 = vmatmul.mubr.msk.bf16.gmra.mrb[48].mxu0 %vm475_vm1, %v10306_v42 }
  0x7b   :  { %1379 = vmatprep.mubr.bf16.mxu0 %v12819_v1 }
  0x82   :  { %7725 = vmatmul.mubr.msk.bf16.gmra.mrb[52].mxu0 %vm475_vm1, %v10314_v43 }
  0x83   :  { %1389 = vmatprep.mubr.bf16.mxu0 %v12819_v1 }
  0x8a   :  { %7726 = vmatmul.mubr.msk.bf16.gmra.mrb[56].mxu0 %vm475_vm1, %v10322_v44 }
  0x8b   :  { %1399 = vmatprep.mubr.bf16.mxu0 %v12819_v1 }
  0x92   :  { %7727 = vmatmul.mubr.msk.bf16.gmra.mrb[60].mxu0 %vm475_vm1, %v10330_v45 }
  0x93   :  { %1409 = vmatprep.mubr.bf16.mxu0 %v12819_v1 }
  0x9a   :  { %7728 = vmatmul.mubr.msk.bf16.gmra.mrb[64].mxu0 %vm475_vm1, %v10338_v46 }
  0x9b   :  { %1419 = vmatprep.mubr.bf16.mxu0 %v12819_v1 }
  0xa2   :  { %7729 = vmatmul.mubr.msk.bf16.gmra.mrb[68].mxu0 %vm475_vm1, %v10346_v47 }
  0xa3   :  { %1429 = vmatprep.mubr.bf16.mxu0 %v12819_v1 }
  0xaa   :  { %7730 = vmatmul.mubr.msk.bf16.gmra.mrb[72].mxu0 %vm475_vm1, %v10354_v48 }
  0xab   :  { %1439 = vmatprep.mubr.bf16.mxu0 %v12819_v1 }
  0xb2   :  { %7731 = vmatmul.mubr.msk.bf16.gmra.mrb[76].mxu0 %vm475_vm1, %v10362_v49 }
  0xb3   :  { %1449 = vmatprep.mubr.bf16.mxu0 %v12819_v1 }
  0xba   :  { %7732 = vmatmul.mubr.msk.bf16.gmra.mrb[80].mxu0 %vm475_vm1, %v10370_v50 }
  0xbb   :  { %1459 = vmatprep.mubr.bf16.mxu0 %v12819_v1 }
  0xc2   :  { %7733 = vmatmul.mubr.msk.bf16.gmra.mrb[84].mxu0 %vm475_vm1, %v10378_v51 }
  0xc3   :  { %1469 = vmatprep.mubr.bf16.mxu0 %v12819_v1 }
  0xca   :  { %7734 = vmatmul.mubr.msk.bf16.gmra.mrb[88].mxu0 %vm475_vm1, %v10386_v52 }
  0xcb   :  { %1851 = vmatprep.mubr.bf16.mxu0 %v12819_v1 }
  0xd2   :  { %7786 = vmatmul.mubr.msk.bf16.vlgmr.msra.gmra.mrb[0].mxu0 %vm475_vm1, %v10237_v32 }
  0xd3   :  { %2614 = vmatpush1.bf16.msra.mxu0 %v9762_v53  ;;  %1861 = vmatprep.mubr.bf16.mxu0 %v12819_v1  ;;  %v9816_v53 = vld [vmem:[%s12805_s1 + $0x9c] ss:$8 sps:$4 sm:$0xff]  }
  0xd4   :  { %2615 = vmatprep.subr.bf16.mxu0 %v9767_v54  ;;  %v10582_v54 = vld [vmem:[%s12806_s0 + $0x100] sm:$0xff]   ;;  %635 = vmatprep.subr.bf16.mxu1 %v9816_v53 }
  0xd7   :  { %2616 = vmatpush1.bf16.msra.mxu0 %v9765_v55  ;;  %v9819_v55 = vld [vmem:[%s12805_s1 + $0x98] ss:$8 sps:$4 sm:$0xff]  }
  0xd8   :  { %2617 = vmatprep.subr.bf16.mxu0 %v9770_v56  ;;  %636 = vmatpush1.bf16.msra.mxu1 %v9819_v55  ;;  %v7587_v56 = vld [vmem:[%s12805_s1 + $0xa8] sm:$0x33] }
  0xda   :  { %7787 = vmatmul.mubr.msk.bf16.gmra.mrb[4].mxu0 %vm475_vm1, %v10247_v34 }
  0xdb   :  { %1871 = vmatprep.mubr.bf16.mxu0 %v12819_v1  ;;  %2618 = vmatpush1.bf16.msra.mxu0 %v9768_v57  ;;  %v7647_v57 = vcombine.high %v7587_v56, %v7587_v56 }
  0xdc   :  { %2619 = vmatprep.subr.bf16.mxu0 %v9779_v59 }
  0xdd   :  { %7648 = vmatprep.subr.msk.bf16.mxu1 %vm620_vm0, %v7647_v57 }
  0xdf   :  { %2620 = vmatpush1.bf16.msra.mxu0 %v9777_v58  ;;  %v7646_v58 = vcombine.low %v7587_v56, %v7587_v56 }
  0xe0   :  { %2621 = vmatprep.subr.bf16.mxu0 %v9790_v61  ;;  %v10612_v61 = vld [vmem:[%s12806_s0 + $0x110] sm:$0xff]  }
  0xe1   :  { %v622_v59 = vsel %vm620_vm0, %v7646_v58, 0 }
  0xe2   :  { %7788 = vmatmul.mubr.msk.bf16.gmra.mrb[8].mxu0 %vm475_vm1, %v10255_v35  ;;  %638 = vmatpush1.bf16.msra.mxu1 %v622_v59 }
  0xe3   :  { %1881 = vmatprep.mubr.bf16.mxu0 %v12819_v1  ;;  %2622 = vmatpush1.bf16.msra.mxu0 %v9788_v60  ;;  %v10598_v60 = vld [vmem:[%s12806_s0 + $0x108] sm:$0xff]  }
  0xe4   :  { %7859 = vmatprep.subr.msk.bf16.mxu0 %vm620_vm0, %v7858_v18  ;;  %8784 = vmatprep.subr.bf16.mxu1 %v10105_v0  ;;  %v10627_v0 = vld [vmem:[%s12806_s0 + $0x118] sm:$0xff]  }
  0xe5   :  { %7649 = vmatmul.mubr.msk.bf16.vlgmr.msra.gmra.mrb[0].mxu1 %vm475_vm1, %v10215_v26  ;;  %v10757_v26 = vld [vmem:[%s12806_s0 + $0x170] sm:$0xff]   ;;  %v10812_v18 = vld [vmem:[%s12806_s0 + $0x198] sm:$0xff]  }
  0xe6   :  { %669 = vmatprep.mubr.bf16.mxu1 %v12819_v1  ;;  %8790 = vmatpush1.bf16.msra.mxu1 %v10112_v2  ;;  %v10643_v2 = vld [vmem:[%s12806_s0 + $0x120] sm:$0xff]  }
  0xe7   :  { %2624 = vmatpush1.bf16.msra.mxu0 %v2608_v20  ;;  %8785 = vmatprep.subr.bf16.mxu1 %v10118_v3  ;;  %v9827_v3 = vld [vmem:[%s12805_s1 + $0x164] ss:$8 sps:$4 sm:$0xff]   ;;  %v9830_v20 = vld [vmem:[%s12805_s1 + $0x174] ss:$8 sps:$4 sm:$0xff]  }
  0xe8   :  { %3407 = vmatprep.subr.bf16.mxu0 %v9827_v3 }
  0xea   :  { %7789 = vmatmul.mubr.msk.bf16.gmra.mrb[12].mxu0 %vm475_vm1, %v10263_v36  ;;  %8791 = vmatpush1.bf16.msra.mxu1 %v10124_v4  ;;  %v10658_v4 = vld [vmem:[%s12806_s0 + $0x128] sm:$0xff]  }
  0xeb   :  { %1891 = vmatprep.mubr.bf16.mxu0 %v12819_v1  ;;  %8786 = vmatprep.subr.bf16.mxu1 %v10130_v5  ;;  %v10669_v5 = vld [vmem:[%s12806_s0 + $0x130] sm:$0xff]  }
  0xed   :  { %7650 = vmatmul.mubr.msk.bf16.gmra.mrb[4].mxu1 %vm475_vm1, %v10226_v28  ;;  %v10768_v28 = vld [vmem:[%s12806_s0 + $0x178] sm:$0xff]  }
  0xee   :  { %679 = vmatprep.mubr.bf16.mxu1 %v12819_v1  ;;  %8792 = vmatpush1.bf16.msra.mxu1 %v10136_v6  ;;  %v10680_v6 = vld [vmem:[%s12806_s0 + $0x138] sm:$0xff]  }
  0xef   :  { %8787 = vmatprep.subr.bf16.mxu1 %v10142_v7  ;;  %v10691_v7 = vld [vmem:[%s12806_s0 + $0x140] sm:$0xff]  }
  0xf2   :  { %7790 = vmatmul.mubr.msk.bf16.gmra.mrb[16].mxu0 %vm475_vm1, %v10274_v38  ;;  %8793 = vmatpush1.bf16.msra.mxu1 %v10147_v8  ;;  %v10702_v8 = vld [vmem:[%s12806_s0 + $0x148] sm:$0xff]  }
  0xf3   :  { %1901 = vmatprep.mubr.bf16.mxu0 %v12819_v1  ;;  %8788 = vmatprep.subr.bf16.mxu1 %v10153_v9  ;;  %v10713_v9 = vld [vmem:[%s12806_s0 + $0x150] sm:$0xff]  }
  0xf5   :  { %7651 = vmatmul.mubr.msk.bf16.gmra.mrb[8].mxu1 %vm475_vm1, %v10237_v32  ;;  %v10779_v32 = vld [vmem:[%s12806_s0 + $0x180] sm:$0xff]  }
  0xf6   :  { %689 = vmatprep.mubr.bf16.mxu1 %v12819_v1  ;;  %8794 = vmatpush1.bf16.msra.mxu1 %v10163_v11  ;;  %v10724_v11 = vld [vmem:[%s12806_s0 + $0x158] sm:$0xff]  }
  0xf7   :  { %8789 = vmatprep.subr.msk.bf16.mxu1 %vm620_vm0, %v10166_v13  ;;  %v10735_v13 = vld [vmem:[%s12806_s0 + $0x160] sm:$0xff]  }
  0xfa   :  { %7791 = vmatmul.mubr.msk.bf16.gmra.mrb[20].mxu0 %vm475_vm1, %v10282_v39  ;;  %8795 = vmatpush1.bf16.msra.mxu1 %v10170_v14  ;;  %v10746_v14 = vld [vmem:[%s12806_s0 + $0x168] sm:$0xff]  }
  0xfb   :  { %1911 = vmatprep.mubr.bf16.mxu0 %v12819_v1 }
  0xfd   :  { %7652 = vmatmul.mubr.msk.bf16.gmra.mrb[12].mxu1 %vm475_vm1, %v10247_v34  ;;  %v10790_v34 = vld [vmem:[%s12806_s0 + $0x188] sm:$0xff]  }
  0xfe   :  { %699 = vmatprep.mubr.bf16.mxu1 %v12819_v1 }
 0x102   :  { %7792 = vmatmul.mubr.msk.bf16.gmra.mrb[24].mxu0 %vm475_vm1, %v10290_v40 }
 0x103   :  { %1921 = vmatprep.mubr.bf16.mxu0 %v12819_v1 }
 0x105   :  { %7653 = vmatmul.mubr.msk.bf16.gmra.mrb[16].mxu1 %vm475_vm1, %v10255_v35 }
 0x106   :  { %709 = vmatprep.mubr.bf16.mxu1 %v12819_v1 }
 0x10a   :  { %7793 = vmatmul.mubr.msk.bf16.gmra.mrb[28].mxu0 %vm475_vm1, %v10298_v41 }
 0x10b   :  { %1931 = vmatprep.mubr.bf16.mxu0 %v12819_v1 }
 0x10d   :  { %7654 = vmatmul.mubr.msk.bf16.gmra.mrb[20].mxu1 %vm475_vm1, %v10263_v36 }
 0x10e   :  { %719 = vmatprep.mubr.bf16.mxu1 %v12819_v1 }
 0x112   :  { %7794 = vmatmul.mubr.msk.bf16.gmra.mrb[32].mxu0 %vm475_vm1, %v10306_v42 }
 0x113   :  { %1941 = vmatprep.mubr.bf16.mxu0 %v12819_v1 }
 0x115   :  { %7655 = vmatmul.mubr.msk.bf16.gmra.mrb[24].mxu1 %vm475_vm1, %v10274_v38 }
 0x116   :  { %729 = vmatprep.mubr.bf16.mxu1 %v12819_v1 }
 0x11a   :  { %7795 = vmatmul.mubr.msk.bf16.gmra.mrb[36].mxu0 %vm475_vm1, %v10314_v43 }
 0x11b   :  { %1951 = vmatprep.mubr.bf16.mxu0 %v12819_v1 }
 0x11d   :  { %7656 = vmatmul.mubr.msk.bf16.gmra.mrb[28].mxu1 %vm475_vm1, %v10282_v39 }
 0x11e   :  { %739 = vmatprep.mubr.bf16.mxu1 %v12819_v1 }
 0x122   :  { %7796 = vmatmul.mubr.msk.bf16.gmra.mrb[40].mxu0 %vm475_vm1, %v10322_v44 }
 0x123   :  { %1961 = vmatprep.mubr.bf16.mxu0 %v12819_v1 }
 0x125   :  { %7657 = vmatmul.mubr.msk.bf16.gmra.mrb[32].mxu1 %vm475_vm1, %v10290_v40 }
 0x126   :  { %749 = vmatprep.mubr.bf16.mxu1 %v12819_v1 }
 0x12a   :  { %7797 = vmatmul.mubr.msk.bf16.gmra.mrb[44].mxu0 %vm475_vm1, %v10330_v45 }
 0x12b   :  { %1971 = vmatprep.mubr.bf16.mxu0 %v12819_v1 }
 0x12d   :  { %7658 = vmatmul.mubr.msk.bf16.gmra.mrb[36].mxu1 %vm475_vm1, %v10298_v41 }
 0x12e   :  { %759 = vmatprep.mubr.bf16.mxu1 %v12819_v1 }
 0x132   :  { %7798 = vmatmul.mubr.msk.bf16.gmra.mrb[48].mxu0 %vm475_vm1, %v10338_v46 }
 0x133   :  { %1981 = vmatprep.mubr.bf16.mxu0 %v12819_v1 }
 0x135   :  { %7659 = vmatmul.mubr.msk.bf16.gmra.mrb[40].mxu1 %vm475_vm1, %v10306_v42 }
 0x136   :  { %769 = vmatprep.mubr.bf16.mxu1 %v12819_v1 }
 0x13a   :  { %7799 = vmatmul.mubr.msk.bf16.gmra.mrb[52].mxu0 %vm475_vm1, %v10346_v47 }
 0x13b   :  { %1991 = vmatprep.mubr.bf16.mxu0 %v12819_v1 }
 0x13d   :  { %7660 = vmatmul.mubr.msk.bf16.gmra.mrb[44].mxu1 %vm475_vm1, %v10314_v43 }
 0x13e   :  { %779 = vmatprep.mubr.bf16.mxu1 %v12819_v1 }
 0x142   :  { %7800 = vmatmul.mubr.msk.bf16.gmra.mrb[56].mxu0 %vm475_vm1, %v10354_v48 }
 0x143   :  { %2001 = vmatprep.mubr.bf16.mxu0 %v12819_v1 }
 0x145   :  { %7661 = vmatmul.mubr.msk.bf16.gmra.mrb[48].mxu1 %vm475_vm1, %v10322_v44 }
 0x146   :  { %789 = vmatprep.mubr.bf16.mxu1 %v12819_v1 }
 0x14a   :  { %7801 = vmatmul.mubr.msk.bf16.gmra.mrb[60].mxu0 %vm475_vm1, %v10362_v49 }
 0x14b   :  { %2011 = vmatprep.mubr.bf16.mxu0 %v12819_v1 }
 0x14d   :  { %7662 = vmatmul.mubr.msk.bf16.gmra.mrb[52].mxu1 %vm475_vm1, %v10330_v45 }
 0x14e   :  { %799 = vmatprep.mubr.bf16.mxu1 %v12819_v1 }
 0x152   :  { %7802 = vmatmul.mubr.msk.bf16.gmra.mrb[64].mxu0 %vm475_vm1, %v10370_v50 }
 0x153   :  { %2021 = vmatprep.mubr.bf16.mxu0 %v12819_v1 }
 0x155   :  { %7663 = vmatmul.mubr.msk.bf16.gmra.mrb[56].mxu1 %vm475_vm1, %v10338_v46 }
 0x156   :  { %809 = vmatprep.mubr.bf16.mxu1 %v12819_v1 }
 0x15a   :  { %7803 = vmatmul.mubr.msk.bf16.gmra.mrb[68].mxu0 %vm475_vm1, %v10378_v51 }
 0x15b   :  { %2031 = vmatprep.mubr.bf16.mxu0 %v12819_v1 }
 0x15d   :  { %7664 = vmatmul.mubr.msk.bf16.gmra.mrb[60].mxu1 %vm475_vm1, %v10346_v47 }
 0x15e   :  { %819 = vmatprep.mubr.bf16.mxu1 %v12819_v1 }
 0x162   :  { %7804 = vmatmul.mubr.msk.bf16.gmra.mrb[72].mxu0 %vm475_vm1, %v10386_v52 }
 0x163   :  { %2041 = vmatprep.mubr.bf16.mxu0 %v12819_v1 }
 0x165   :  { %7665 = vmatmul.mubr.msk.bf16.gmra.mrb[64].mxu1 %vm475_vm1, %v10354_v48 }
 0x166   :  { %829 = vmatprep.mubr.bf16.mxu1 %v12819_v1 }
 0x16a   :  { %7805 = vmatmul.mubr.msk.bf16.gmra.mrb[76].mxu0 %vm475_vm1, %v10478_v62 }
 0x16b   :  { %2051 = vmatprep.mubr.bf16.mxu0 %v12819_v1 }
 0x16d   :  { %7666 = vmatmul.mubr.msk.bf16.gmra.mrb[68].mxu1 %vm475_vm1, %v10362_v49 }
 0x16e   :  { %839 = vmatprep.mubr.bf16.mxu1 %v12819_v1 }
 0x172   :  { %7806 = vmatmul.mubr.msk.bf16.gmra.mrb[80].mxu0 %vm475_vm1, %v10486_v63 }
 0x173   :  { %2061 = vmatprep.mubr.bf16.mxu0 %v12819_v1 }
 0x175   :  { %7667 = vmatmul.mubr.msk.bf16.gmra.mrb[72].mxu1 %vm475_vm1, %v10370_v50 }
 0x176   :  { %849 = vmatprep.mubr.bf16.mxu1 %v12819_v1 }
 0x17a   :  { %7807 = vmatmul.mubr.msk.bf16.gmra.mrb[84].mxu0 %vm475_vm1, %v10494_v10 }
 0x17b   :  { %2071 = vmatprep.mubr.bf16.mxu0 %v12819_v1 }
 0x17d   :  { %7668 = vmatmul.mubr.msk.bf16.gmra.mrb[76].mxu1 %vm475_vm1, %v10378_v51 }
 0x17e   :  { %859 = vmatprep.mubr.bf16.mxu1 %v12819_v1 }
 0x182   :  { %7808 = vmatmul.mubr.msk.bf16.gmra.mrb[88].mxu0 %vm475_vm1, %v10502_v12 }
 0x183   :  { %2081 = vmatprep.mubr.bf16.mxu0 %v12819_v1 }
 0x185   :  { %7669 = vmatmul.mubr.msk.bf16.gmra.mrb[80].mxu1 %vm475_vm1, %v10386_v52 }
 0x186   :  { %869 = vmatprep.mubr.bf16.mxu1 %v12819_v1 }
 0x18a   :  { %7809 = vmatmul.mubr.msk.bf16.gmra.mrb[92].mxu0 %vm475_vm1, %v10510_v15 }
 0x18b   :  { %2091 = vmatprep.mubr.bf16.mxu0 %v12819_v1 }
 0x18d   :  { %7670 = vmatmul.mubr.msk.bf16.gmra.mrb[84].mxu1 %vm475_vm1, %v10478_v62 }
 0x18e   :  { %879 = vmatprep.mubr.bf16.mxu1 %v12819_v1 }
 0x192   :  { %7810 = vmatmul.mubr.msk.bf16.gmra.mrb[96].mxu0 %vm475_vm1, %v10518_v16 }
 0x193   :  { %2101 = vmatprep.mubr.bf16.mxu0 %v12819_v1 }
 0x195   :  { %7671 = vmatmul.mubr.msk.bf16.gmra.mrb[88].mxu1 %vm475_vm1, %v10486_v63 }
 0x196   :  { %889 = vmatprep.mubr.bf16.mxu1 %v12819_v1 }
 0x19a   :  { %7811 = vmatmul.mubr.msk.bf16.gmra.mrb[100].mxu0 %vm475_vm1, %v10531_v21 }
 0x19b   :  { %2111 = vmatprep.mubr.bf16.mxu0 %v12819_v1 }
 0x19d   :  { %7672 = vmatmul.mubr.msk.bf16.gmra.mrb[92].mxu1 %vm475_vm1, %v10494_v10 }
 0x19e   :  { %899 = vmatprep.mubr.bf16.mxu1 %v12819_v1 }
 0x1a2   :  { %7812 = vmatmul.mubr.msk.bf16.gmra.mrb[104].mxu0 %vm475_vm1, %v10542_v23 }
 0x1a3   :  { %2121 = vmatprep.mubr.bf16.mxu0 %v12819_v1 }
 0x1a5   :  { %7673 = vmatmul.mubr.msk.bf16.gmra.mrb[96].mxu1 %vm475_vm1, %v10502_v12 }
 0x1a6   :  { %909 = vmatprep.mubr.bf16.mxu1 %v12819_v1 }
 0x1aa   :  { %7813 = vmatmul.mubr.msk.bf16.gmra.mrb[108].mxu0 %vm475_vm1, %v10562_v30 }
 0x1ab   :  { %2131 = vmatprep.mubr.bf16.mxu0 %v12819_v1 }
 0x1ad   :  { %7674 = vmatmul.mubr.msk.bf16.gmra.mrb[100].mxu1 %vm475_vm1, %v10510_v15 }
 0x1ae   :  { %919 = vmatprep.mubr.bf16.mxu1 %v12819_v1 }
 0x1b2   :  { %7814 = vmatmul.mubr.msk.bf16.gmra.mrb[112].mxu0 %vm475_vm1, %v10582_v54 }
 0x1b3   :  { %2141 = vmatprep.mubr.bf16.mxu0 %v12819_v1 }
 0x1b5   :  { %7675 = vmatmul.mubr.msk.bf16.gmra.mrb[104].mxu1 %vm475_vm1, %v10518_v16 }
 0x1b6   :  { %929 = vmatprep.mubr.bf16.mxu1 %v12819_v1 }
 0x1ba   :  { %7815 = vmatmul.mubr.msk.bf16.gmra.mrb[116].mxu0 %vm475_vm1, %v10598_v60 }
 0x1bb   :  { %2151 = vmatprep.mubr.bf16.mxu0 %v12819_v1 }
 0x1bd   :  { %7676 = vmatmul.mubr.msk.bf16.gmra.mrb[108].mxu1 %vm475_vm1, %v10531_v21 }
 0x1be   :  { %939 = vmatprep.mubr.bf16.mxu1 %v12819_v1 }
 0x1c2   :  { %7816 = vmatmul.mubr.msk.bf16.gmra.mrb[120].mxu0 %vm475_vm1, %v10612_v61 }
 0x1c3   :  { %2161 = vmatprep.mubr.bf16.mxu0 %v12819_v1 }
 0x1c5   :  { %7677 = vmatmul.mubr.msk.bf16.gmra.mrb[112].mxu1 %vm475_vm1, %v10542_v23 }
 0x1c6   :  { %949 = vmatprep.mubr.bf16.mxu1 %v12819_v1 }
 0x1ca   :  { %7817 = vmatmul.mubr.msk.bf16.gmra.mrb[124].mxu0 %vm475_vm1, %v10627_v0 }
 0x1cb   :  { %2171 = vmatprep.mubr.bf16.mxu0 %v12819_v1 }
 0x1cd   :  { %7678 = vmatmul.mubr.msk.bf16.gmra.mrb[116].mxu1 %vm475_vm1, %v10562_v30 }
 0x1ce   :  { %959 = vmatprep.mubr.bf16.mxu1 %v12819_v1 }
 0x1d2   :  { %7818 = vmatmul.mubr.msk.bf16.gmra.mrb[128].mxu0 %vm475_vm1, %v10643_v2 }
 0x1d3   :  { %2181 = vmatprep.mubr.bf16.mxu0 %v12819_v1 }
 0x1d5   :  { %7679 = vmatmul.mubr.msk.bf16.gmra.mrb[120].mxu1 %vm475_vm1, %v10582_v54 }
 0x1d6   :  { %969 = vmatprep.mubr.bf16.mxu1 %v12819_v1 }
 0x1da   :  { %7819 = vmatmul.mubr.msk.bf16.gmra.mrb[132].mxu0 %vm475_vm1, %v10658_v4 }
 0x1db   :  { %2191 = vmatprep.mubr.bf16.mxu0 %v12819_v1 }
 0x1dd   :  { %7680 = vmatmul.mubr.msk.bf16.gmra.mrb[124].mxu1 %vm475_vm1, %v10598_v60 }
 0x1de   :  { %979 = vmatprep.mubr.bf16.mxu1 %v12819_v1 }
 0x1e2   :  { %7820 = vmatmul.mubr.msk.bf16.gmra.mrb[136].mxu0 %vm475_vm1, %v10669_v5 }
 0x1e3   :  { %2201 = vmatprep.mubr.bf16.mxu0 %v12819_v1 }
 0x1e5   :  { %7681 = vmatmul.mubr.msk.bf16.gmra.mrb[128].mxu1 %vm475_vm1, %v10612_v61 }
 0x1e6   :  { %989 = vmatprep.mubr.bf16.mxu1 %v12819_v1 }
 0x1ea   :  { %7821 = vmatmul.mubr.msk.bf16.gmra.mrb[140].mxu0 %vm475_vm1, %v10680_v6 }
 0x1eb   :  { %2211 = vmatprep.mubr.bf16.mxu0 %v12819_v1 }
 0x1ed   :  { %7682 = vmatmul.mubr.msk.bf16.gmra.mrb[132].mxu1 %vm475_vm1, %v10627_v0 }
 0x1ee   :  { %999 = vmatprep.mubr.bf16.mxu1 %v12819_v1 }
 0x1f2   :  { %7822 = vmatmul.mubr.msk.bf16.gmra.mrb[144].mxu0 %vm475_vm1, %v10691_v7 }
 0x1f3   :  { %2221 = vmatprep.mubr.bf16.mxu0 %v12819_v1 }
 0x1f5   :  { %7683 = vmatmul.mubr.msk.bf16.gmra.mrb[136].mxu1 %vm475_vm1, %v10643_v2 }
 0x1f6   :  { %1009 = vmatprep.mubr.bf16.mxu1 %v12819_v1 }
 0x1fa   :  { %7823 = vmatmul.mubr.msk.bf16.gmra.mrb[148].mxu0 %vm475_vm1, %v10702_v8 }
 0x1fb   :  { %2231 = vmatprep.mubr.bf16.mxu0 %v12819_v1 }
 0x1fd   :  { %7684 = vmatmul.mubr.msk.bf16.gmra.mrb[140].mxu1 %vm475_vm1, %v10658_v4 }
 0x1fe   :  { %1019 = vmatprep.mubr.bf16.mxu1 %v12819_v1 }
 0x202   :  { %7824 = vmatmul.mubr.msk.bf16.gmra.mrb[152].mxu0 %vm475_vm1, %v10713_v9 }
 0x203   :  { %2241 = vmatprep.mubr.bf16.mxu0 %v12819_v1 }
 0x205   :  { %7685 = vmatmul.mubr.msk.bf16.gmra.mrb[144].mxu1 %vm475_vm1, %v10669_v5 }
 0x206   :  { %1029 = vmatprep.mubr.bf16.mxu1 %v12819_v1 }
 0x20a   :  { %7825 = vmatmul.mubr.msk.bf16.gmra.mrb[156].mxu0 %vm475_vm1, %v10724_v11 }
 0x20b   :  { %2251 = vmatprep.mubr.bf16.mxu0 %v12819_v1 }
 0x20d   :  { %7686 = vmatmul.mubr.msk.bf16.gmra.mrb[148].mxu1 %vm475_vm1, %v10680_v6 }
 0x20e   :  { %1039 = vmatprep.mubr.bf16.mxu1 %v12819_v1 }
 0x212   :  { %7826 = vmatmul.mubr.msk.bf16.gmra.mrb[160].mxu0 %vm475_vm1, %v10735_v13 }
 0x213   :  { %2261 = vmatprep.mubr.bf16.mxu0 %v12819_v1 }
 0x215   :  { %7687 = vmatmul.mubr.msk.bf16.gmra.mrb[152].mxu1 %vm475_vm1, %v10691_v7 }
 0x216   :  { %1049 = vmatprep.mubr.bf16.mxu1 %v12819_v1 }
 0x21a   :  { %7827 = vmatmul.mubr.msk.bf16.gmra.mrb[164].mxu0 %vm475_vm1, %v10746_v14 }
 0x21b   :  { %2271 = vmatprep.mubr.bf16.mxu0 %v12819_v1 }
 0x21d   :  { %7688 = vmatmul.mubr.msk.bf16.gmra.mrb[156].mxu1 %vm475_vm1, %v10702_v8 }
 0x21e   :  { %1059 = vmatprep.mubr.bf16.mxu1 %v12819_v1 }
 0x222   :  { %7828 = vmatmul.mubr.msk.bf16.gmra.mrb[168].mxu0 %vm475_vm1, %v10757_v26 }
 0x223   :  { %2281 = vmatprep.mubr.bf16.mxu0 %v12819_v1 }
 0x225   :  { %7689 = vmatmul.mubr.msk.bf16.gmra.mrb[160].mxu1 %vm475_vm1, %v10713_v9 }
 0x226   :  { %1069 = vmatprep.mubr.bf16.mxu1 %v12819_v1 }
 0x22a   :  { %7829 = vmatmul.mubr.msk.bf16.gmra.mrb[172].mxu0 %vm475_vm1, %v10768_v28 }
 0x22b   :  { %2291 = vmatprep.mubr.bf16.mxu0 %v12819_v1 }
 0x22d   :  { %7690 = vmatmul.mubr.msk.bf16.gmra.mrb[164].mxu1 %vm475_vm1, %v10724_v11 }
 0x22e   :  { %1079 = vmatprep.mubr.bf16.mxu1 %v12819_v1 }
 0x232   :  { %7830 = vmatmul.mubr.msk.bf16.gmra.mrb[176].mxu0 %vm475_vm1, %v10779_v32 }
 0x233   :  { %2301 = vmatprep.mubr.bf16.mxu0 %v12819_v1 }
 0x235   :  { %7691 = vmatmul.mubr.msk.bf16.gmra.mrb[168].mxu1 %vm475_vm1, %v10735_v13 }
 0x236   :  { %1089 = vmatprep.mubr.bf16.mxu1 %v12819_v1 }
 0x23a   :  { %7831 = vmatmul.mubr.msk.bf16.gmra.mrb[180].mxu0 %vm475_vm1, %v10790_v34 }
 0x23b   :  { %2311 = vmatprep.mubr.bf16.mxu0 %v12819_v1 }
 0x23d   :  { %7692 = vmatmul.mubr.msk.bf16.gmra.mrb[172].mxu1 %vm475_vm1, %v10746_v14 }
 0x23e   :  { %1099 = vmatprep.mubr.bf16.mxu1 %v12819_v1 }
 0x242   :  { %7832 = vmatmul.mubr.msk.bf16.gmra.mrb[184].mxu0 %vm475_vm1, %v10801_v17 }
 0x243   :  { %2321 = vmatprep.mubr.bf16.mxu0 %v12819_v1 }
 0x245   :  { %7693 = vmatmul.mubr.msk.bf16.gmra.mrb[176].mxu1 %vm475_vm1, %v10757_v26 }
 0x246   :  { %1109 = vmatprep.mubr.bf16.mxu1 %v12819_v1 }
 0x24a   :  { %7833 = vmatmul.mubr.msk.bf16.gmra.mrb[188].mxu0 %vm475_vm1, %v10812_v18 }
 0x24b   :  { %2645 = vmatprep.mubr.bf16.mxu0 %v12819_v1 }
 0x24d   :  { %7694 = vmatmul.mubr.msk.bf16.gmra.mrb[180].mxu1 %vm475_vm1, %v10768_v28 }
 0x24e   :  { %1119 = vmatprep.mubr.bf16.mxu1 %v12819_v1 }
 0x252   :  { %7860 = vmatmul.mubr.msk.bf16.vlgmr.msra.gmra.mrb[0].mxu0 %vm475_vm1, %v10255_v35  ;;  %v9834_v35 = vld [vmem:[%s12805_s1 + $0x190] ss:$8 sps:$4 sm:$0xff]  }
 0x253   :  { %3408 = vmatpush1.bf16.msra.mxu0 %v9825_v19  ;;  %2655 = vmatprep.mubr.bf16.mxu0 %v12819_v1 }
 0x254   :  { %3409 = vmatprep.subr.bf16.mxu0 %v9830_v20 }
 0x255   :  { %7695 = vmatmul.mubr.msk.bf16.gmra.mrb[184].mxu1 %vm475_vm1, %v10779_v32 }
 0x256   :  { %1129 = vmatprep.mubr.bf16.mxu1 %v12819_v1 }
 0x257   :  { %3410 = vmatpush1.bf16.msra.mxu0 %v9828_v22 }
 0x258   :  { %3411 = vmatprep.subr.bf16.mxu0 %v9833_v24 }
 0x25a   :  { %7861 = vmatmul.mubr.msk.bf16.gmra.mrb[4].mxu0 %vm475_vm1, %v10263_v36  ;;  %v9836_v36 = vld [vmem:[%s12805_s1 + $0x194] ss:$8 sps:$4 sm:$0xff]  }
 0x25b   :  { %2665 = vmatprep.mubr.bf16.mxu0 %v12819_v1  ;;  %3412 = vmatpush1.bf16.msra.mxu0 %v9831_v25 }
 0x25c   :  { %3413 = vmatprep.subr.bf16.mxu0 %v9836_v36 }
 0x25d   :  { %7696 = vmatmul.mubr.msk.bf16.gmra.mrb[188].mxu1 %vm475_vm1, %v10790_v34 }
 0x25e   :  { %1479 = vmatprep.mubr.bf16.mxu1 %v12819_v1 }
 0x25f   :  { %3414 = vmatpush1.bf16.msra.mxu0 %v9834_v35 }
 0x262   :  { %7862 = vmatmul.mubr.msk.bf16.gmra.mrb[8].mxu0 %vm475_vm1, %v10274_v38  ;;  %v9837_v38 = vld [vmem:[%s12805_s1 + $0x1a0] ss:$8 sps:$4 sm:$0xff]  }
 0x263   :  { %2675 = vmatprep.mubr.bf16.mxu0 %v12819_v1 }
 0x265   :  { %7735 = vmatmul.mubr.msk.bf16.vlgmr.msra.gmra.mrb[92].mxu1 %vm475_vm1, %v10478_v62 }
 0x266   :  { %1489 = vmatprep.mubr.bf16.mxu1 %v12819_v1 }
 0x26a   :  { %7863 = vmatmul.mubr.msk.bf16.gmra.mrb[12].mxu0 %vm475_vm1, %v10282_v39  ;;  %v9839_v39 = vld [vmem:[%s12805_s1 + $0x1a4] ss:$8 sps:$4 sm:$0xff]  }
 0x26b   :  { %2685 = vmatprep.mubr.bf16.mxu0 %v12819_v1  ;;  %3415 = vmatprep.subr.bf16.mxu0 %v9839_v39 }
 0x26c   :  { %3416 = vmatpush1.bf16.msra.mxu0 %v9837_v38 }
 0x26d   :  { %7736 = vmatmul.mubr.msk.bf16.gmra.mrb[96].mxu1 %vm475_vm1, %v10486_v63 }
 0x26e   :  { %1499 = vmatprep.mubr.bf16.mxu1 %v12819_v1 }
 0x272   :  { %7864 = vmatmul.mubr.msk.bf16.gmra.mrb[16].mxu0 %vm475_vm1, %v10290_v40  ;;  %v7918_v40 = vld [vmem:[%s12805_s1 + $0x1b0] sm:$0x33] }
 0x273   :  { %2695 = vmatprep.mubr.bf16.mxu0 %v12819_v1 }
 0x275   :  { %7737 = vmatmul.mubr.msk.bf16.gmra.mrb[100].mxu1 %vm475_vm1, %v10494_v10 }
 0x276   :  { %1509 = vmatprep.mubr.bf16.mxu1 %v12819_v1 }
 0x27a   :  { %7865 = vmatmul.mubr.msk.bf16.gmra.mrb[20].mxu0 %vm475_vm1, %v10298_v41  ;;  %v7932_v41 = vcombine.high %v7918_v40, %v7918_v40 }
 0x27b   :  { %2705 = vmatprep.mubr.bf16.mxu0 %v12819_v1 }
 0x27c   :  { %7933 = vmatprep.subr.msk.bf16.mxu0 %vm620_vm0, %v7932_v41 }
 0x27d   :  { %7738 = vmatmul.mubr.msk.bf16.gmra.mrb[104].mxu1 %vm475_vm1, %v10502_v12 }
 0x27e   :  { %1519 = vmatprep.mubr.bf16.mxu1 %v12819_v1 }
 0x282   :  { %7866 = vmatmul.mubr.msk.bf16.gmra.mrb[24].mxu0 %vm475_vm1, %v10306_v42  ;;  %v7931_v42 = vcombine.low %v7918_v40, %v7918_v40 }
 0x283   :  { %2715 = vmatprep.mubr.bf16.mxu0 %v12819_v1 }
 0x285   :  { %7739 = vmatmul.mubr.msk.bf16.gmra.mrb[108].mxu1 %vm475_vm1, %v10510_v15 }
 0x286   :  { %1529 = vmatprep.mubr.bf16.mxu1 %v12819_v1 }
 0x28a   :  { %7867 = vmatmul.mubr.msk.bf16.gmra.mrb[28].mxu0 %vm475_vm1, %v10314_v43  ;;  %v3402_v43 = vsel %vm620_vm0, %v7931_v42, 0 }
 0x28b   :  { %2725 = vmatprep.mubr.bf16.mxu0 %v12819_v1  ;;  %3418 = vmatpush1.bf16.msra.mxu0 %v3402_v43 }
 0x28d   :  { %7740 = vmatmul.mubr.msk.bf16.gmra.mrb[112].mxu1 %vm475_vm1, %v10518_v16 }
 0x28e   :  { %1539 = vmatprep.mubr.bf16.mxu1 %v12819_v1 }
 0x292   :  { %7868 = vmatmul.mubr.msk.bf16.gmra.mrb[32].mxu0 %vm475_vm1, %v10322_v44  ;;  %v11048_v44 = vpop.f32.mrb[0].mxu1 }
 0x293   :  { %2735 = vmatprep.mubr.bf16.mxu0 %v12819_v1 }
 0x295   :  { %7741 = vmatmul.mubr.msk.bf16.gmra.mrb[116].mxu1 %vm475_vm1, %v10531_v21 }
 0x296   :  { %1549 = vmatprep.mubr.bf16.mxu1 %v12819_v1 }
 0x29a   :  { %7869 = vmatmul.mubr.msk.bf16.gmra.mrb[36].mxu0 %vm475_vm1, %v10330_v45  ;;  %v11052_v45 = vpop.f32.mrb[1].mxu1 }
 0x29b   :  { %2745 = vmatprep.mubr.bf16.mxu0 %v12819_v1 }
 0x29d   :  { %7742 = vmatmul.mubr.msk.bf16.gmra.mrb[120].mxu1 %vm475_vm1, %v10542_v23 }
 0x29e   :  { %1559 = vmatprep.mubr.bf16.mxu1 %v12819_v1 }
 0x2a2   :  { %7870 = vmatmul.mubr.msk.bf16.gmra.mrb[40].mxu0 %vm475_vm1, %v10338_v46  ;;  %v11054_v46 = vpop.f32.mrb[2].mxu1 }
 0x2a3   :  { %2755 = vmatprep.mubr.bf16.mxu0 %v12819_v1 }
 0x2a5   :  { %7743 = vmatmul.mubr.msk.bf16.gmra.mrb[124].mxu1 %vm475_vm1, %v10562_v30 }
 0x2a6   :  { %1569 = vmatprep.mubr.bf16.mxu1 %v12819_v1 }
 0x2aa   :  { %7871 = vmatmul.mubr.msk.bf16.gmra.mrb[44].mxu0 %vm475_vm1, %v10346_v47  ;;  %v11056_v47 = vpop.f32.mrb[3].mxu1 }
 0x2ab   :  { %2765 = vmatprep.mubr.bf16.mxu0 %v12819_v1 }
 0x2ad   :  { %7744 = vmatmul.mubr.msk.bf16.gmra.mrb[128].mxu1 %vm475_vm1, %v10582_v54 }
 0x2ae   :  { %1579 = vmatprep.mubr.bf16.mxu1 %v12819_v1 }
 0x2b2   :  { %7872 = vmatmul.mubr.msk.bf16.gmra.mrb[48].mxu0 %vm475_vm1, %v10354_v48  ;;  %v11062_v48 = vpop.f32.mrb[4].mxu1 }
 0x2b3   :  { %2775 = vmatprep.mubr.bf16.mxu0 %v12819_v1 }
 0x2b5   :  { %7745 = vmatmul.mubr.msk.bf16.gmra.mrb[132].mxu1 %vm475_vm1, %v10598_v60 }
 0x2b6   :  { %1589 = vmatprep.mubr.bf16.mxu1 %v12819_v1 }
 0x2ba   :  { %7873 = vmatmul.mubr.msk.bf16.gmra.mrb[52].mxu0 %vm475_vm1, %v10362_v49  ;;  %v11066_v49 = vpop.f32.mrb[5].mxu1 }
 0x2bb   :  { %2785 = vmatprep.mubr.bf16.mxu0 %v12819_v1 }
 0x2bd   :  { %7746 = vmatmul.mubr.msk.bf16.gmra.mrb[136].mxu1 %vm475_vm1, %v10612_v61 }
 0x2be   :  { %1599 = vmatprep.mubr.bf16.mxu1 %v12819_v1 }
 0x2c2   :  { %7874 = vmatmul.mubr.msk.bf16.gmra.mrb[56].mxu0 %vm475_vm1, %v10370_v50  ;;  %v11068_v50 = vpop.f32.mrb[6].mxu1 }
 0x2c3   :  { %2795 = vmatprep.mubr.bf16.mxu0 %v12819_v1 }
 0x2c5   :  { %7747 = vmatmul.mubr.msk.bf16.gmra.mrb[140].mxu1 %vm475_vm1, %v10627_v0 }
 0x2c6   :  { %1609 = vmatprep.mubr.bf16.mxu1 %v12819_v1 }
 0x2ca   :  { %7875 = vmatmul.mubr.msk.bf16.gmra.mrb[60].mxu0 %vm475_vm1, %v10378_v51  ;;  %v11070_v51 = vpop.f32.mrb[7].mxu1 }
 0x2cb   :  { %2805 = vmatprep.mubr.bf16.mxu0 %v12819_v1 }
 0x2cd   :  { %7748 = vmatmul.mubr.msk.bf16.gmra.mrb[144].mxu1 %vm475_vm1, %v10643_v2 }
 0x2ce   :  { %1619 = vmatprep.mubr.bf16.mxu1 %v12819_v1 }
 0x2d2   :  { %7876 = vmatmul.mubr.msk.bf16.gmra.mrb[64].mxu0 %vm475_vm1, %v10386_v52  ;;  %v11076_v52 = vpop.f32.mrb[8].mxu1 }
 0x2d3   :  { %2815 = vmatprep.mubr.bf16.mxu0 %v12819_v1 }
 0x2d5   :  { %7749 = vmatmul.mubr.msk.bf16.gmra.mrb[148].mxu1 %vm475_vm1, %v10658_v4 }
 0x2d6   :  { %1629 = vmatprep.mubr.bf16.mxu1 %v12819_v1 }
 0x2da   :  { %7877 = vmatmul.mubr.msk.bf16.gmra.mrb[68].mxu0 %vm475_vm1, %v10478_v62  ;;  %v11080_v62 = vpop.f32.mrb[9].mxu1 }
 0x2db   :  { %2825 = vmatprep.mubr.bf16.mxu0 %v12819_v1 }
 0x2dd   :  { %7750 = vmatmul.mubr.msk.bf16.gmra.mrb[152].mxu1 %vm475_vm1, %v10669_v5 }
 0x2de   :  { %1639 = vmatprep.mubr.bf16.mxu1 %v12819_v1 }
 0x2e2   :  { %7878 = vmatmul.mubr.msk.bf16.gmra.mrb[72].mxu0 %vm475_vm1, %v10486_v63  ;;  %v11082_v63 = vpop.f32.mrb[10].mxu1 }
 0x2e3   :  { %2835 = vmatprep.mubr.bf16.mxu0 %v12819_v1 }
 0x2e5   :  { %7751 = vmatmul.mubr.msk.bf16.gmra.mrb[156].mxu1 %vm475_vm1, %v10680_v6 }
 0x2e6   :  { %1649 = vmatprep.mubr.bf16.mxu1 %v12819_v1 }
 0x2ea   :  { %7879 = vmatmul.mubr.msk.bf16.gmra.mrb[76].mxu0 %vm475_vm1, %v10494_v10  ;;  %v11084_v10 = vpop.f32.mrb[11].mxu1 }
 0x2eb   :  { %2845 = vmatprep.mubr.bf16.mxu0 %v12819_v1 }
 0x2ed   :  { %7752 = vmatmul.mubr.msk.bf16.gmra.mrb[160].mxu1 %vm475_vm1, %v10691_v7 }
 0x2ee   :  { %1659 = vmatprep.mubr.bf16.mxu1 %v12819_v1 }
 0x2f2   :  { %7880 = vmatmul.mubr.msk.bf16.gmra.mrb[80].mxu0 %vm475_vm1, %v10502_v12  ;;  %v11090_v12 = vpop.f32.mrb[12].mxu1 }
 0x2f3   :  { %2855 = vmatprep.mubr.bf16.mxu0 %v12819_v1 }
 0x2f5   :  { %7753 = vmatmul.mubr.msk.bf16.gmra.mrb[164].mxu1 %vm475_vm1, %v10702_v8 }
 0x2f6   :  { %1669 = vmatprep.mubr.bf16.mxu1 %v12819_v1 }
 0x2fa   :  { %7881 = vmatmul.mubr.msk.bf16.gmra.mrb[84].mxu0 %vm475_vm1, %v10510_v15  ;;  %v11094_v15 = vpop.f32.mrb[13].mxu1 }
 0x2fb   :  { %2865 = vmatprep.mubr.bf16.mxu0 %v12819_v1 }
 0x2fd   :  { %7754 = vmatmul.mubr.msk.bf16.gmra.mrb[168].mxu1 %vm475_vm1, %v10713_v9 }
 0x2fe   :  { %1679 = vmatprep.mubr.bf16.mxu1 %v12819_v1 }
 0x302   :  { %7882 = vmatmul.mubr.msk.bf16.gmra.mrb[88].mxu0 %vm475_vm1, %v10518_v16  ;;  %v11096_v16 = vpop.f32.mrb[14].mxu1 }
 0x303   :  { %2875 = vmatprep.mubr.bf16.mxu0 %v12819_v1  ;;  %v11098_v27 = vpop.f32.mrb[15].mxu1 }
 0x305   :  { %7755 = vmatmul.mubr.msk.bf16.gmra.mrb[172].mxu1 %vm475_vm1, %v10724_v11 }
 0x306   :  { %1689 = vmatprep.mubr.bf16.mxu1 %v12819_v1 }
 0x30a   :  { %7883 = vmatmul.mubr.msk.bf16.gmra.mrb[92].mxu0 %vm475_vm1, %v10531_v21  ;;  %v11104_v21 = vpop.f32.mrb[16].mxu1 }
 0x30b   :  { %2885 = vmatprep.mubr.bf16.mxu0 %v12819_v1  ;;  %v11108_v29 = vpop.f32.mrb[17].mxu1 }
 0x30c   :  { %v11110_v31 = vpop.f32.mrb[18].mxu1 }
 0x30d   :  { %v11112_v33 = vpop.f32.mrb[19].mxu1  ;;  %7756 = vmatmul.mubr.msk.bf16.gmra.mrb[176].mxu1 %vm475_vm1, %v10735_v13 }
 0x30e   :  { %1699 = vmatprep.mubr.bf16.mxu1 %v12819_v1 }
 0x312   :  { %7884 = vmatmul.mubr.msk.bf16.gmra.mrb[96].mxu0 %vm475_vm1, %v10542_v23  ;;  %v11118_v23 = vpop.f32.mrb[20].mxu1 }
 0x313   :  { %2895 = vmatprep.mubr.bf16.mxu0 %v12819_v1  ;;  %v11122_v37 = vpop.f32.mrb[21].mxu1 }
 0x314   :  { %v11124_v53 = vpop.f32.mrb[22].mxu1 }
 0x315   :  { %v11126_v55 = vpop.f32.mrb[23].mxu1  ;;  %7757 = vmatmul.mubr.msk.bf16.gmra.mrb[180].mxu1 %vm475_vm1, %v10746_v14 }
 0x316   :  { %1709 = vmatprep.mubr.bf16.mxu1 %v12819_v1 }
 0x31a   :  { %7885 = vmatmul.mubr.msk.bf16.gmra.mrb[100].mxu0 %vm475_vm1, %v10562_v30  ;;  %v11132_v30 = vpop.f32.mrb[24].mxu1 }
 0x31b   :  { %2905 = vmatprep.mubr.bf16.mxu0 %v12819_v1  ;;  %v11136_v56 = vpop.f32.mrb[25].mxu1 }
 0x31c   :  { %v11138_v57 = vpop.f32.mrb[26].mxu1 }
 0x31d   :  { %v11140_v58 = vpop.f32.mrb[27].mxu1  ;;  %7758 = vmatmul.mubr.msk.bf16.gmra.mrb[184].mxu1 %vm475_vm1, %v10757_v26 }
 0x31e   :  { %1719 = vmatprep.mubr.bf16.mxu1 %v12819_v1 }
 0x322   :  { %7886 = vmatmul.mubr.msk.bf16.gmra.mrb[104].mxu0 %vm475_vm1, %v10582_v54  ;;  %v11146_v54 = vpop.f32.mrb[28].mxu1 }
 0x323   :  { %2915 = vmatprep.mubr.bf16.mxu0 %v12819_v1  ;;  %v11150_v59 = vpop.f32.mrb[29].mxu1 }
 0x324   :  { %v11152_v3 = vpop.f32.mrb[30].mxu1 }
 0x325   :  { %v11154_v19 = vpop.f32.mrb[31].mxu1  ;;  %7759 = vmatmul.mubr.msk.bf16.gmra.mrb[188].mxu1 %vm475_vm1, %v10768_v28 }
 0x32a   :  { %7887 = vmatmul.mubr.msk.bf16.gmra.mrb[108].mxu0 %vm475_vm1, %v10598_v60  ;;  %v11160_v60 = vpop.f32.mrb[32].mxu1 }
 0x32b   :  { %2925 = vmatprep.mubr.bf16.mxu0 %v12819_v1  ;;  %v11164_v20 = vpop.f32.mrb[33].mxu1 }
 0x32c   :  { %v11166_v22 = vpop.f32.mrb[34].mxu1 }
 0x32d   :  { %v11168_v24 = vpop.f32.mrb[35].mxu1 }
 0x332   :  { %7888 = vmatmul.mubr.msk.bf16.gmra.mrb[112].mxu0 %vm475_vm1, %v10612_v61  ;;  %v11174_v61 = vpop.f32.mrb[36].mxu1 }
 0x333   :  { %2935 = vmatprep.mubr.bf16.mxu0 %v12819_v1  ;;  %v11178_v25 = vpop.f32.mrb[37].mxu1 }
 0x334   :  { %v11180_v35 = vpop.f32.mrb[38].mxu1 }
 0x335   :  { %v11182_v36 = vpop.f32.mrb[39].mxu1 }
 0x33a   :  { %7889 = vmatmul.mubr.msk.bf16.gmra.mrb[116].mxu0 %vm475_vm1, %v10627_v0  ;;  %v11188_v0 = vpop.f32.mrb[40].mxu1 }
 0x33b   :  { %2945 = vmatprep.mubr.bf16.mxu0 %v12819_v1  ;;  %v11192_v38 = vpop.f32.mrb[41].mxu1 }
 0x33c   :  { %v11194_v39 = vpop.f32.mrb[42].mxu1 }
 0x33d   :  { %v11196_v40 = vpop.f32.mrb[43].mxu1 }
 0x342   :  { %7890 = vmatmul.mubr.msk.bf16.gmra.mrb[120].mxu0 %vm475_vm1, %v10643_v2  ;;  %v11202_v2 = vpop.f32.mrb[44].mxu1 }
 0x343   :  { %2955 = vmatprep.mubr.bf16.mxu0 %v12819_v1 }
 0x34a   :  { %7891 = vmatmul.mubr.msk.bf16.gmra.mrb[124].mxu0 %vm475_vm1, %v10658_v4 }
 0x34b   :  { %2965 = vmatprep.mubr.bf16.mxu0 %v12819_v1 }
 0x352   :  { %7892 = vmatmul.mubr.msk.bf16.gmra.mrb[128].mxu0 %vm475_vm1, %v10669_v5 }
 0x353   :  { %2975 = vmatprep.mubr.bf16.mxu0 %v12819_v1 }
 0x35a   :  { %7893 = vmatmul.mubr.msk.bf16.gmra.mrb[132].mxu0 %vm475_vm1, %v10680_v6 }
 0x35b   :  { %2985 = vmatprep.mubr.bf16.mxu0 %v12819_v1 }
 0x362   :  { %7894 = vmatmul.mubr.msk.bf16.gmra.mrb[136].mxu0 %vm475_vm1, %v10691_v7 }
 0x363   :  { %2995 = vmatprep.mubr.bf16.mxu0 %v12819_v1 }
 0x36a   :  { %7895 = vmatmul.mubr.msk.bf16.gmra.mrb[140].mxu0 %vm475_vm1, %v10702_v8  ;;  %v9985_v8 = vld [vmem:[%s12806_s0 + $0x40] sm:$0xff]  }
 0x36b   :  { %3005 = vmatprep.mubr.bf16.mxu0 %v12819_v1 }
 0x372   :  { %7896 = vmatmul.mubr.msk.bf16.gmra.mrb[144].mxu0 %vm475_vm1, %v10713_v9  ;;  %v9986_v9 = vld [vmem:[%s12806_s0 + $0x48] sm:$0xff]  }
 0x373   :  { %3015 = vmatprep.mubr.bf16.mxu0 %v12819_v1 }
 0x37a   :  { %7897 = vmatmul.mubr.msk.bf16.gmra.mrb[148].mxu0 %vm475_vm1, %v10724_v11  ;;  %v9987_v11 = vld [vmem:[%s12806_s0 + $0x50] sm:$0xff]  }
 0x37b   :  { %3025 = vmatprep.mubr.bf16.mxu0 %v12819_v1 }
 0x382   :  { %7898 = vmatmul.mubr.msk.bf16.gmra.mrb[152].mxu0 %vm475_vm1, %v10735_v13  ;;  %v9988_v13 = vld [vmem:[%s12806_s0 + $0x58] sm:$0xff]  }
 0x383   :  { %3035 = vmatprep.mubr.bf16.mxu0 %v12819_v1 }
 0x38a   :  { %7899 = vmatmul.mubr.msk.bf16.gmra.mrb[156].mxu0 %vm475_vm1, %v10746_v14  ;;  %v9989_v14 = vld [vmem:[%s12806_s0 + $0x60] sm:$0xff]  }
 0x38b   :  { %3045 = vmatprep.mubr.bf16.mxu0 %v12819_v1 }
 0x392   :  { %7900 = vmatmul.mubr.msk.bf16.gmra.mrb[160].mxu0 %vm475_vm1, %v10757_v26  ;;  %v9990_v26 = vld [vmem:[%s12806_s0 + $0x68] sm:$0xff]  }
 0x393   :  { %3055 = vmatprep.mubr.bf16.mxu0 %v12819_v1 }
 0x39a   :  { %7901 = vmatmul.mubr.msk.bf16.gmra.mrb[164].mxu0 %vm475_vm1, %v10768_v28  ;;  %v9991_v28 = vld [vmem:[%s12806_s0 + $0x70] sm:$0xff]  }
 0x39b   :  { %3065 = vmatprep.mubr.bf16.mxu0 %v12819_v1 }
 0x3a2   :  { %7902 = vmatmul.mubr.msk.bf16.gmra.mrb[168].mxu0 %vm475_vm1, %v10779_v32  ;;  %v11206_v32 = vpop.f32.mrb[45].mxu1 }
 0x3a3   :  { %3075 = vmatprep.mubr.bf16.mxu0 %v12819_v1  ;;  %12821 = vst [vmem:[#allocation4_spill] sm:$0xff] %v11206_v32  ;;  %v11208_v41 = vpop.f32.mrb[46].mxu1 }
 0x3a4   :  { %v11210_v42 = vpop.f32.mrb[47].mxu1 }
 0x3a5   :  { %v11216_v4 = vpop.f32.mrb[48].mxu1 }
 0x3a6   :  { %12822 = vst [vmem:[#allocation5_spill] sm:$0xff] %v11216_v4 }
 0x3aa   :  { %7903 = vmatmul.mubr.msk.bf16.gmra.mrb[172].mxu0 %vm475_vm1, %v10790_v34  ;;  %v11220_v34 = vpop.f32.mrb[49].mxu1 }
 0x3ab   :  { %3085 = vmatprep.mubr.bf16.mxu0 %v12819_v1  ;;  %12823 = vst [vmem:[#allocation6_spill] sm:$0xff] %v11220_v34  ;;  %v11222_v43 = vpop.f32.mrb[50].mxu1 }
 0x3ac   :  { %12824 = vst [vmem:[#allocation7_spill] sm:$0xff] %v11222_v43  ;;  %v11224_v32 = vpop.f32.mrb[51].mxu1 }
 0x3ad   :  { %12825 = vst [vmem:[#allocation8_spill] sm:$0xff] %v11224_v32  ;;  %v11230_v5 = vpop.f32.mrb[52].mxu1  ;;  %v9842_v32 = vld [vmem:[%s12806_s0 + $0x1a0] sm:$0xff]  }
 0x3ae   :  { %12826 = vst [vmem:[#allocation9_spill] sm:$0xff] %v11230_v5 }
 0x3b2   :  { %7904 = vmatmul.mubr.msk.bf16.gmra.mrb[176].mxu0 %vm475_vm1, %v10801_v17  ;;  %v11234_v17 = vpop.f32.mrb[53].mxu1 }
 0x3b3   :  { %3095 = vmatprep.mubr.bf16.mxu0 %v12819_v1  ;;  %12827 = vst [vmem:[#allocation10_spill] sm:$0xff] %v11234_v17  ;;  %v11236_v4 = vpop.f32.mrb[54].mxu1  ;;  %v9843_v17 = vld [vmem:[%s12806_s0 + $0x1a8] sm:$0xff]  }
 0x3b4   :  { %12828 = vst [vmem:[#allocation11_spill] sm:$0xff] %v11236_v4  ;;  %v11238_v34 = vpop.f32.mrb[55].mxu1 }
 0x3b5   :  { %12829 = vst [vmem:[#allocation12_spill] sm:$0xff] %v11238_v34  ;;  %v11246_v6 = vpop.f32.mrb[56].mxu1 }
 0x3b6   :  { %12830 = vst [vmem:[#allocation13_spill] sm:$0xff] %v11246_v6 }
 0x3ba   :  { %7905 = vmatmul.mubr.msk.bf16.gmra.mrb[180].mxu0 %vm475_vm1, %v10812_v18  ;;  %v11250_v18 = vpop.f32.mrb[57].mxu1 }
 0x3bb   :  { %3105 = vmatprep.mubr.bf16.mxu0 %v12819_v1  ;;  %12831 = vst [vmem:[#allocation14_spill] sm:$0xff] %v11250_v18  ;;  %v11252_v4 = vpop.f32.mrb[58].mxu1 }
 0x3bc   :  { %12832 = vst [vmem:[#allocation15_spill] sm:$0xff] %v11252_v4  ;;  %v11254_v34 = vpop.f32.mrb[59].mxu1 }
 0x3bd   :  { %12833 = vst [vmem:[#allocation16_spill] sm:$0xff] %v11254_v34  ;;  %v11262_v7 = vpop.f32.mrb[60].mxu1 }
 0x3be   :  { %12834 = vst [vmem:[#allocation17_spill] sm:$0xff] %v11262_v7 }
 0x3c2   :  { %7906 = vmatmul.mubr.msk.bf16.gmra.mrb[184].mxu0 %vm475_vm1, %v9842_v32  ;;  %v11266_v32 = vpop.f32.mrb[61].mxu1 }
 0x3c3   :  { %3115 = vmatprep.mubr.bf16.mxu0 %v12819_v1  ;;  %12835 = vst [vmem:[#allocation18_spill] sm:$0xff] %v11266_v32  ;;  %v11268_v4 = vpop.f32.mrb[62].mxu1 }
 0x3c4   :  { %12836 = vst [vmem:[#allocation19_spill] sm:$0xff] %v11268_v4  ;;  %v11270_v34 = vpop.f32.mrb[63].mxu1 }
 0x3c5   :  { %12837 = vst [vmem:[#allocation20_spill] sm:$0xff] %v11270_v34 }
 0x3ca   :  { %7907 = vmatmul.mubr.msk.bf16.gmra.mrb[188].mxu0 %vm475_vm1, %v9843_v17  ;;  %v11278_v17 = vpop.f32.mrb[64].mxu1 }
 0x3cb   :  { %3439 = vmatprep.mubr.bf16.mxu0 %v12819_v1  ;;  %12838 = vst [vmem:[#allocation21_spill] sm:$0xff] %v11278_v17  ;;  %v11282_v32 = vpop.f32.mrb[65].mxu1 }
 0x3cc   :  { %12839 = vst [vmem:[#allocation22_spill] sm:$0xff] %v11282_v32  ;;  %v11284_v4 = vpop.f32.mrb[66].mxu1 }
 0x3cd   :  { %12840 = vst [vmem:[#allocation23_spill] sm:$0xff] %v11284_v4  ;;  %v11286_v34 = vpop.f32.mrb[67].mxu1 }
 0x3ce   :  { %12841 = vst [vmem:[#allocation24_spill] sm:$0xff] %v11286_v34 }
 0x3d2   :  { %7934 = vmatmul.mubr.msk.bf16.vlgmr.msra.gmra.mrb[0].mxu0 %vm475_vm1, %v9985_v8  ;;  %v11294_v8 = vpop.f32.mrb[68].mxu1 }
 0x3d3   :  { %3449 = vmatprep.mubr.bf16.mxu0 %v12819_v1  ;;  %12842 = vst [vmem:[#allocation25_spill] sm:$0xff] %v11294_v8  ;;  %v11298_v32 = vpop.f32.mrb[69].mxu1 }
 0x3d4   :  { %12843 = vst [vmem:[#allocation26_spill] sm:$0xff] %v11298_v32  ;;  %v11300_v4 = vpop.f32.mrb[70].mxu1 }
 0x3d5   :  { %12844 = vst [vmem:[#allocation27_spill] sm:$0xff] %v11300_v4  ;;  %v11302_v34 = vpop.f32.mrb[71].mxu1 }
 0x3d6   :  { %12845 = vst [vmem:[#allocation28_spill] sm:$0xff] %v11302_v34 }
 0x3da   :  { %7935 = vmatmul.mubr.msk.bf16.gmra.mrb[4].mxu0 %vm475_vm1, %v9986_v9  ;;  %v11310_v9 = vpop.f32.mrb[72].mxu1 }
 0x3db   :  { %3459 = vmatprep.mubr.bf16.mxu0 %v12819_v1  ;;  %12846 = vst [vmem:[#allocation29_spill] sm:$0xff] %v11310_v9  ;;  %v11314_v32 = vpop.f32.mrb[73].mxu1 }
 0x3dc   :  { %12847 = vst [vmem:[#allocation30_spill] sm:$0xff] %v11314_v32  ;;  %v11316_v4 = vpop.f32.mrb[74].mxu1 }
 0x3dd   :  { %12848 = vst [vmem:[#allocation31_spill] sm:$0xff] %v11316_v4  ;;  %v11318_v34 = vpop.f32.mrb[75].mxu1 }
 0x3de   :  { %12849 = vst [vmem:[#allocation32_spill] sm:$0xff] %v11318_v34 }
 0x3e2   :  { %7936 = vmatmul.mubr.msk.bf16.gmra.mrb[8].mxu0 %vm475_vm1, %v9987_v11  ;;  %v11326_v11 = vpop.f32.mrb[76].mxu1 }
 0x3e3   :  { %3469 = vmatprep.mubr.bf16.mxu0 %v12819_v1  ;;  %12850 = vst [vmem:[#allocation33_spill] sm:$0xff] %v11326_v11  ;;  %v11330_v32 = vpop.f32.mrb[77].mxu1 }
 0x3e4   :  { %12851 = vst [vmem:[#allocation34_spill] sm:$0xff] %v11330_v32  ;;  %v11332_v4 = vpop.f32.mrb[78].mxu1 }
 0x3e5   :  { %12852 = vst [vmem:[#allocation35_spill] sm:$0xff] %v11332_v4  ;;  %v11334_v34 = vpop.f32.mrb[79].mxu1 }
 0x3e6   :  { %12853 = vst [vmem:[#allocation36_spill] sm:$0xff] %v11334_v34 }
 0x3ea   :  { %7937 = vmatmul.mubr.msk.bf16.gmra.mrb[12].mxu0 %vm475_vm1, %v9988_v13  ;;  %v11342_v13 = vpop.f32.mrb[80].mxu1 }
 0x3eb   :  { %3479 = vmatprep.mubr.bf16.mxu0 %v12819_v1  ;;  %12854 = vst [vmem:[#allocation37_spill] sm:$0xff] %v11342_v13  ;;  %v11346_v32 = vpop.f32.mrb[81].mxu1 }
 0x3ec   :  { %12855 = vst [vmem:[#allocation38_spill] sm:$0xff] %v11346_v32  ;;  %v11348_v4 = vpop.f32.mrb[82].mxu1 }
 0x3ed   :  { %12856 = vst [vmem:[#allocation39_spill] sm:$0xff] %v11348_v4  ;;  %v11350_v34 = vpop.f32.mrb[83].mxu1 }
 0x3ee   :  { %12857 = vst [vmem:[#allocation40_spill] sm:$0xff] %v11350_v34 }
 0x3f2   :  { %7938 = vmatmul.mubr.msk.bf16.gmra.mrb[16].mxu0 %vm475_vm1, %v9989_v14  ;;  %v11358_v14 = vpop.f32.mrb[84].mxu1 }
 0x3f3   :  { %3489 = vmatprep.mubr.bf16.mxu0 %v12819_v1  ;;  %12858 = vst [vmem:[#allocation41_spill] sm:$0xff] %v11358_v14  ;;  %v11361_v13 = vpop.f32.mrb[85].mxu1 }
 0x3f4   :  { %12859 = vst [vmem:[#allocation42_spill] sm:$0xff] %v11361_v13  ;;  %v11363_v32 = vpop.f32.mrb[86].mxu1 }
 0x3f5   :  { %12860 = vst [vmem:[#allocation43_spill] sm:$0xff] %v11363_v32  ;;  %v11365_v4 = vpop.f32.mrb[87].mxu1 }
 0x3f6   :  { %12861 = vst [vmem:[#allocation44_spill] sm:$0xff] %v11365_v4  ;;  %v11371_v34 = vpop.f32.mrb[88].mxu1  ;;  %v9846_v4 = vld [vmem:[%s12807_s3 + $0x4] ss:$8 sps:$4 sm:$0xff]  }
 0x3f7   :  { %12862 = vst [vmem:[#allocation45_spill] sm:$0xff] %v11371_v34  ;;  %v11377_v14 = vpop.f32.mrb[89].mxu1  ;;  %4929 = vmatprep.subr.bf16.mxu1 %v9846_v4  ;;  %v9993_v4 = vld [vmem:[%s12806_s0 + $0x80] sm:$0xff]  }
 0x3f8   :  { %12863 = vst [vmem:[#allocation46_spill] sm:$0xff] %v11377_v14  ;;  %v11382_v32 = vpop.f32.mrb[90].mxu1 }
 0x3f9   :  { %12864 = vst [vmem:[#allocation47_spill] sm:$0xff] %v11382_v32  ;;  %v11384_v13 = vpop.f32.mrb[91].mxu1 }
 0x3fa   :  { %7939 = vmatmul.mubr.msk.bf16.gmra.mrb[20].mxu0 %vm475_vm1, %v9990_v26  ;;  %v9844_v26 = vld [vmem:[%s12807_s3] ss:$8 sps:$4 sm:$0xff]   ;;  %12865 = vst [vmem:[#allocation48_spill] sm:$0xff] %v11384_v13  ;;  %v11391_v34 = vpop.f32.mrb[92].mxu1 }
 0x3fb   :  { %3499 = vmatprep.mubr.bf16.mxu0 %v12819_v1  ;;  %4930 = vmatpush1.bf16.msra.mxu1 %v9844_v26  ;;  %12866 = vst [vmem:[#allocation49_spill] sm:$0xff] %v11391_v34  ;;  %v11393_v14 = vpop.f32.mrb[93].mxu1 }
 0x3fc   :  { %12867 = vst [vmem:[#allocation50_spill] sm:$0xff] %v11393_v14  ;;  %v11395_v11 = vpop.f32.mrb[94].mxu1 }
 0x3fd   :  { %12868 = vst [vmem:[#allocation51_spill] sm:$0xff] %v11395_v11  ;;  %v11397_v9 = vpop.f32.mrb[95].mxu1 }
 0x3fe   :  { %12869 = vst [vmem:[#allocation52_spill] sm:$0xff] %v11397_v9  ;;  %v11404_v26 = vpop.f32.mrb[96].mxu1  ;;  %v9994_v9 = vld [vmem:[%s12806_s0 + $0x88] sm:$0xff]  }
 0x3ff   :  { %12870 = vst [vmem:[#allocation53_spill] sm:$0xff] %v11404_v26  ;;  %v12874_v26 = vmov 0  }
 0x402   :  { %7940 = vmatmul.mubr.msk.bf16.gmra.mrb[24].mxu0 %vm475_vm1, %v9991_v28  ;;  %v9992_v28 = vld [vmem:[%s12806_s0 + $0x78] sm:$0xff]  }
 0x403   :  { %3509 = vmatprep.mubr.bf16.mxu0 %v12819_v1 }
 0x40a   :  { %7941 = vmatmul.mubr.msk.bf16.gmra.mrb[28].mxu0 %vm475_vm1, %v9992_v28  ;;  %v11406_v28 = vpop.f32.mrb[97].mxu1 }
 0x40b   :  { %3519 = vmatprep.mubr.bf16.mxu0 %v12819_v1  ;;  %12871 = vst [vmem:[#allocation54_spill] sm:$0xff] %v11406_v28  ;;  %v11408_v13 = vpop.f32.mrb[98].mxu1 }
 0x40c   :  { %12872 = vst [vmem:[#allocation55_spill] sm:$0xff] %v11408_v13  ;;  %v11410_v34 = vpop.f32.mrb[99].mxu1 }
 0x40d   :  { %12873 = vst [vmem:[#allocation56_spill] sm:$0xff] %v11410_v34  ;;  %v11423_v13 = vpop.f32.mrb[100].mxu1 }
 0x40e   :  { %12875 = vst [vmem:[#allocation57_spill] sm:$0xff] %v11423_v13  ;;  %v11425_v34 = vpop.f32.mrb[101].mxu1 }
 0x40f   :  { %12876 = vst [vmem:[#allocation58_spill] sm:$0xff] %v11425_v34  ;;  %v11427_v28 = vpop.f32.mrb[102].mxu1 }
 0x410   :  { %12877 = vst [vmem:[#allocation59_spill] sm:$0xff] %v11427_v28  ;;  %v11429_v11 = vpop.f32.mrb[103].mxu1 }
 0x411   :  { %12878 = vst [vmem:[#allocation60_spill] sm:$0xff] %v11429_v11  ;;  %v11436_v14 = vpop.f32.mrb[104].mxu1  ;;  %v9996_v11 = vld [vmem:[%s12806_s0 + $0x98] sm:$0xff]  }
 0x412   :  { %7942 = vmatmul.mubr.msk.bf16.gmra.mrb[32].mxu0 %vm475_vm1, %v9993_v4  ;;  %v9847_v4 = vld [vmem:[%s12807_s3 + $0x10] ss:$8 sps:$4 sm:$0xff]   ;;  %12879 = vst [vmem:[#allocation61_spill] sm:$0xff] %v11436_v14  ;;  %v9856_v14 = vld [vmem:[%s12807_s3 + $0x40] ss:$8 sps:$4 sm:$0xff]  }
 0x413   :  { %3529 = vmatprep.mubr.bf16.mxu0 %v12819_v1  ;;  %v9849_v1 = vld [vmem:[%s12807_s3 + $0x14] ss:$8 sps:$4 sm:$0xff]  }
 0x414   :  { %4931 = vmatprep.subr.bf16.mxu1 %v9849_v1  ;;  %v11438_v1 = vpop.f32.mrb[105].mxu1 }
 0x415   :  { %4932 = vmatpush1.bf16.msra.mxu1 %v9847_v4  ;;  %12880 = vst [vmem:[#allocation62_spill] sm:$0xff] %v11438_v1  ;;  %v11440_v13 = vpop.f32.mrb[106].mxu1 }
 0x416   :  { %12881 = vst [vmem:[#allocation63_spill] sm:$0xff] %v11440_v13  ;;  %v11442_v4 = vpop.f32.mrb[107].mxu1  ;;  %v9852_v13 = vld [vmem:[%s12807_s3 + $0x24] ss:$8 sps:$4 sm:$0xff]  }
 0x417   :  { %12882 = vst [vmem:[#allocation64_spill] sm:$0xff] %v11442_v4  ;;  %v11449_v28 = vpop.f32.mrb[108].mxu1  ;;  %v9850_v4 = vld [vmem:[%s12807_s3 + $0x20] ss:$8 sps:$4 sm:$0xff]   ;;  %4933 = vmatprep.subr.bf16.mxu1 %v9852_v13 }
 0x418   :  { %12883 = vst [vmem:[#allocation65_spill] sm:$0xff] %v11449_v28 }
 0x419   :  { %4934 = vmatpush1.bf16.msra.mxu1 %v9850_v4 }
 0x41a   :  { %7943 = vmatmul.mubr.msk.bf16.gmra.mrb[36].mxu0 %vm475_vm1, %v9994_v9  ;;  %v9995_v9 = vld [vmem:[%s12806_s0 + $0x90] sm:$0xff]  }
 0x41b   :  { %3539 = vmatprep.mubr.bf16.mxu0 %v12874_v26 }
 0x422   :  { %7944 = vmatmul.mubr.msk.bf16.gmra.mrb[40].mxu0 %vm475_vm1, %v9995_v9  ;;  %v11451_v9 = vpop.f32.mrb[109].mxu1 }
 0x423   :  { %3549 = vmatprep.mubr.bf16.mxu0 %v12874_v26  ;;  %12884 = vst [vmem:[#allocation66_spill] sm:$0xff] %v11451_v9  ;;  %v11453_v34 = vpop.f32.mrb[110].mxu1 }
 0x424   :  { %12885 = vst [vmem:[#allocation67_spill] sm:$0xff] %v11453_v34  ;;  %v11458_v1 = vpop.f32.mrb[111].mxu1  ;;  %v9855_v34 = vld [vmem:[%s12807_s3 + $0x34] ss:$8 sps:$4 sm:$0xff]  }
 0x425   :  { %12886 = vst [vmem:[#allocation68_spill] sm:$0xff] %v11458_v1  ;;  %v9853_v1 = vld [vmem:[%s12807_s3 + $0x30] ss:$8 sps:$4 sm:$0xff]   ;;  %4935 = vmatprep.subr.bf16.mxu1 %v9855_v34  ;;  %v11474_v9 = vpop.f32.mrb[112].mxu1  ;;  %v9998_v34 = vld [vmem:[%s12806_s0 + $0xa8] sm:$0xff]  }
 0x426   :  { %12887 = vst [vmem:[#allocation69_spill] sm:$0xff] %v11474_v9  ;;  %4936 = vmatpush1.bf16.msra.mxu1 %v9853_v1  ;;  %v11476_v13 = vpop.f32.mrb[113].mxu1  ;;  %v9861_v1 = vld [vmem:[%s12807_s3 + $0x54] ss:$8 sps:$4 sm:$0xff]   ;;  %v9862_v9 = vld [vmem:[%s12807_s3 + $0x60] ss:$8 sps:$4 sm:$0xff]  }
 0x427   :  { %12888 = vst [vmem:[#allocation70_spill] sm:$0xff] %v11476_v13  ;;  %v11478_v4 = vpop.f32.mrb[114].mxu1 }
 0x428   :  { %12889 = vst [vmem:[#allocation71_spill] sm:$0xff] %v11478_v4  ;;  %v11483_v28 = vpop.f32.mrb[115].mxu1 }
 0x429   :  { %12890 = vst [vmem:[#allocation72_spill] sm:$0xff] %v11483_v28  ;;  %v9859_v28 = vld [vmem:[%s12807_s3 + $0x50] ss:$8 sps:$4 sm:$0xff]   ;;  %v11499_v4 = vpop.f32.mrb[116].mxu1 }
 0x42a   :  { %7945 = vmatmul.mubr.msk.bf16.gmra.mrb[44].mxu0 %vm475_vm1, %v9996_v11  ;;  %v9997_v11 = vld [vmem:[%s12806_s0 + $0xa0] sm:$0xff]   ;;  %12891 = vst [vmem:[#allocation73_spill] sm:$0xff] %v11499_v4 }
 0x42b   :  { %3559 = vmatprep.mubr.bf16.mxu0 %v12874_v26  ;;  %v9868_v4 = vld [vmem:[%s12807_s3 + $0x80] ss:$8 sps:$4 sm:$0xff]  }
 0x432   :  { %7946 = vmatmul.mubr.msk.bf16.gmra.mrb[48].mxu0 %vm475_vm1, %v9997_v11  ;;  %v9858_v11 = vld [vmem:[%s12807_s3 + $0x44] ss:$8 sps:$4 sm:$0xff]  }
 0x433   :  { %3569 = vmatprep.mubr.bf16.mxu0 %v12874_v26  ;;  %4937 = vmatprep.subr.bf16.mxu1 %v9858_v11 }
 0x434   :  { %4938 = vmatpush1.bf16.msra.mxu1 %v9856_v14  ;;  %v11501_v14 = vpop.f32.mrb[117].mxu1 }
 0x435   :  { %4939 = vmatprep.subr.bf16.mxu1 %v9861_v1  ;;  %12892 = vst [vmem:[#allocation74_spill] sm:$0xff] %v11501_v14  ;;  %v11503_v11 = vpop.f32.mrb[118].mxu1  ;;  %v9867_v1 = vld [vmem:[%s12807_s3 + $0x74] ss:$8 sps:$4 sm:$0xff]  }
 0x436   :  { %12893 = vst [vmem:[#allocation75_spill] sm:$0xff] %v11503_v11  ;;  %v11508_v13 = vpop.f32.mrb[119].mxu1 }
 0x437   :  { %12894 = vst [vmem:[#allocation76_spill] sm:$0xff] %v11508_v13  ;;  %v9865_v13 = vld [vmem:[%s12807_s3 + $0x70] ss:$8 sps:$4 sm:$0xff]   ;;  %v11524_v11 = vpop.f32.mrb[120].mxu1 }
 0x438   :  { %4940 = vmatpush1.bf16.msra.mxu1 %v9859_v28  ;;  %v9999_v28 = vld [vmem:[%s12806_s0 + $0xb0] sm:$0xff]   ;;  %12895 = vst [vmem:[#allocation77_spill] sm:$0xff] %v11524_v11 }
 0x43a   :  { %7947 = vmatmul.mubr.msk.bf16.gmra.mrb[52].mxu0 %vm475_vm1, %v9998_v34  ;;  %v9864_v34 = vld [vmem:[%s12807_s3 + $0x64] ss:$8 sps:$4 sm:$0xff]  }
 0x43b   :  { %3579 = vmatprep.mubr.bf16.mxu0 %v12874_v26  ;;  %4941 = vmatprep.subr.bf16.mxu1 %v9864_v34 }
 0x43c   :  { %4942 = vmatpush1.bf16.msra.mxu1 %v9862_v9  ;;  %v11526_v9 = vpop.f32.mrb[121].mxu1 }
 0x43d   :  { %4943 = vmatprep.subr.bf16.mxu1 %v9867_v1  ;;  %12896 = vst [vmem:[#allocation78_spill] sm:$0xff] %v11526_v9  ;;  %v11528_v34 = vpop.f32.mrb[122].mxu1 }
 0x43e   :  { %12897 = vst [vmem:[#allocation79_spill] sm:$0xff] %v11528_v34  ;;  %v11533_v14 = vpop.f32.mrb[123].mxu1 }
 0x43f   :  { %12898 = vst [vmem:[#allocation80_spill] sm:$0xff] %v11533_v14  ;;  %v11543_v1 = vpop.f32.mrb[124].mxu1 }
 0x440   :  { %4944 = vmatpush1.bf16.msra.mxu1 %v9865_v13  ;;  %v10000_v13 = vld [vmem:[%s12806_s0 + $0xb8] sm:$0xff]   ;;  %12899 = vst [vmem:[#allocation81_spill] sm:$0xff] %v11543_v1  ;;  %v11545_v34 = vpop.f32.mrb[125].mxu1 }
 0x441   :  { %12900 = vst [vmem:[#allocation82_spill] sm:$0xff] %v11545_v34  ;;  %v11547_v9 = vpop.f32.mrb[126].mxu1 }
 0x442   :  { %7948 = vmatmul.mubr.msk.bf16.gmra.mrb[56].mxu0 %vm475_vm1, %v9999_v28  ;;  %v9870_v28 = vld [vmem:[%s12807_s3 + $0x84] ss:$8 sps:$4 sm:$0xff]   ;;  %12901 = vst [vmem:[#allocation83_spill] sm:$0xff] %v11547_v9  ;;  %v11549_v14 = vpop.f32.mrb[127].mxu1 }
 0x443   :  { %3589 = vmatprep.mubr.bf16.mxu0 %v12874_v26  ;;  %4945 = vmatprep.subr.bf16.mxu1 %v9870_v28  ;;  %12902 = vst [vmem:[#allocation84_spill] sm:$0xff] %v11549_v14  ;;  %v11556_v28 = vpop.f32.mrb[128].mxu1  ;;  %v10002_v14 = vld [vmem:[%s12806_s0 + $0xc8] sm:$0xff]  }
 0x444   :  { %4946 = vmatpush1.bf16.msra.mxu1 %v9868_v4  ;;  %v10001_v4 = vld [vmem:[%s12806_s0 + $0xc0] sm:$0xff]   ;;  %12903 = vst [vmem:[#allocation85_spill] sm:$0xff] %v11556_v28 }
 0x44a   :  { %7949 = vmatmul.mubr.msk.bf16.gmra.mrb[60].mxu0 %vm475_vm1, %v10000_v13  ;;  %v11558_v13 = vpop.f32.mrb[129].mxu1 }
 0x44b   :  { %3599 = vmatprep.mubr.bf16.mxu0 %v12874_v26  ;;  %12904 = vst [vmem:[#allocation86_spill] sm:$0xff] %v11558_v13  ;;  %v11560_v11 = vpop.f32.mrb[130].mxu1 }
 0x44c   :  { %12905 = vst [vmem:[#allocation87_spill] sm:$0xff] %v11560_v11  ;;  %v11562_v1 = vpop.f32.mrb[131].mxu1 }
 0x44d   :  { %12906 = vst [vmem:[#allocation88_spill] sm:$0xff] %v11562_v1  ;;  %v11569_v9 = vpop.f32.mrb[132].mxu1  ;;  %v10003_v1 = vld [vmem:[%s12806_s0 + $0xd0] sm:$0xff]  }
 0x44e   :  { %12907 = vst [vmem:[#allocation89_spill] sm:$0xff] %v11569_v9 }
 0x452   :  { %7950 = vmatmul.mubr.msk.bf16.gmra.mrb[64].mxu0 %vm475_vm1, %v10001_v4  ;;  %v11571_v4 = vpop.f32.mrb[133].mxu1 }
 0x453   :  { %3609 = vmatprep.mubr.bf16.mxu0 %v12874_v26  ;;  %12908 = vst [vmem:[#allocation90_spill] sm:$0xff] %v11571_v4  ;;  %v11573_v34 = vpop.f32.mrb[134].mxu1 }
 0x454   :  { %12909 = vst [vmem:[#allocation91_spill] sm:$0xff] %v11573_v34  ;;  %v11575_v28 = vpop.f32.mrb[135].mxu1 }
 0x455   :  { %12910 = vst [vmem:[#allocation92_spill] sm:$0xff] %v11575_v28  ;;  %v11582_v11 = vpop.f32.mrb[136].mxu1  ;;  %v10004_v28 = vld [vmem:[%s12806_s0 + $0xd8] sm:$0xff]  }
 0x456   :  { %12911 = vst [vmem:[#allocation93_spill] sm:$0xff] %v11582_v11 }
 0x45a   :  { %7951 = vmatmul.mubr.msk.bf16.gmra.mrb[68].mxu0 %vm475_vm1, %v10002_v14  ;;  %v11584_v14 = vpop.f32.mrb[137].mxu1 }
 0x45b   :  { %3619 = vmatprep.mubr.bf16.mxu0 %v12874_v26  ;;  %12912 = vst [vmem:[#allocation94_spill] sm:$0xff] %v11584_v14  ;;  %v11586_v13 = vpop.f32.mrb[138].mxu1 }
 0x45c   :  { %12913 = vst [vmem:[#allocation95_spill] sm:$0xff] %v11586_v13  ;;  %v11588_v9 = vpop.f32.mrb[139].mxu1 }
 0x45d   :  { %12914 = vst [vmem:[#allocation96_spill] sm:$0xff] %v11588_v9  ;;  %v11595_v34 = vpop.f32.mrb[140].mxu1  ;;  %v10005_v9 = vld [vmem:[%s12806_s0 + $0xe0] sm:$0xff]  }
 0x45e   :  { %12915 = vst [vmem:[#allocation97_spill] sm:$0xff] %v11595_v34 }
 0x462   :  { %7952 = vmatmul.mubr.msk.bf16.gmra.mrb[72].mxu0 %vm475_vm1, %v10003_v1  ;;  %v11597_v1 = vpop.f32.mrb[141].mxu1 }
 0x463   :  { %3629 = vmatprep.mubr.bf16.mxu0 %v12874_v26  ;;  %12916 = vst [vmem:[#allocation98_spill] sm:$0xff] %v11597_v1  ;;  %v11599_v4 = vpop.f32.mrb[142].mxu1 }
 0x464   :  { %12917 = vst [vmem:[#allocation99_spill] sm:$0xff] %v11599_v4  ;;  %v11601_v11 = vpop.f32.mrb[143].mxu1 }
 0x465   :  { %12918 = vst [vmem:[#allocation100_spill] sm:$0xff] %v11601_v11  ;;  %v11608_v13 = vpop.f32.mrb[144].mxu1  ;;  %v10006_v11 = vld [vmem:[%s12806_s0 + $0xe8] sm:$0xff]  }
 0x466   :  { %12919 = vst [vmem:[#allocation101_spill] sm:$0xff] %v11608_v13 }
 0x46a   :  { %7953 = vmatmul.mubr.msk.bf16.gmra.mrb[76].mxu0 %vm475_vm1, %v10004_v28  ;;  %v11610_v28 = vpop.f32.mrb[145].mxu1 }
 0x46b   :  { %3639 = vmatprep.mubr.bf16.mxu0 %v12874_v26  ;;  %12920 = vst [vmem:[#allocation102_spill] sm:$0xff] %v11610_v28  ;;  %v11612_v14 = vpop.f32.mrb[146].mxu1 }
 0x46c   :  { %12921 = vst [vmem:[#allocation103_spill] sm:$0xff] %v11612_v14  ;;  %v11614_v34 = vpop.f32.mrb[147].mxu1 }
 0x46d   :  { %12922 = vst [vmem:[#allocation104_spill] sm:$0xff] %v11614_v34  ;;  %v11621_v4 = vpop.f32.mrb[148].mxu1  ;;  %v10007_v34 = vld [vmem:[%s12806_s0 + $0xf0] sm:$0xff]  }
 0x46e   :  { %12923 = vst [vmem:[#allocation105_spill] sm:$0xff] %v11621_v4 }
 0x472   :  { %7954 = vmatmul.mubr.msk.bf16.gmra.mrb[80].mxu0 %vm475_vm1, %v10005_v9  ;;  %v11623_v9 = vpop.f32.mrb[149].mxu1 }
 0x473   :  { %3649 = vmatprep.mubr.bf16.mxu0 %v12874_v26  ;;  %12924 = vst [vmem:[#allocation106_spill] sm:$0xff] %v11623_v9  ;;  %v11625_v1 = vpop.f32.mrb[150].mxu1 }
 0x474   :  { %12925 = vst [vmem:[#allocation107_spill] sm:$0xff] %v11625_v1  ;;  %v11627_v13 = vpop.f32.mrb[151].mxu1 }
 0x475   :  { %12926 = vst [vmem:[#allocation108_spill] sm:$0xff] %v11627_v13  ;;  %v11634_v14 = vpop.f32.mrb[152].mxu1  ;;  %v10008_v13 = vld [vmem:[%s12806_s0 + $0xf8] sm:$0xff]  }
 0x476   :  { %12927 = vst [vmem:[#allocation109_spill] sm:$0xff] %v11634_v14 }
 0x47a   :  { %7955 = vmatmul.mubr.msk.bf16.gmra.mrb[84].mxu0 %vm475_vm1, %v10006_v11  ;;  %v11636_v11 = vpop.f32.mrb[153].mxu1 }
 0x47b   :  { %3659 = vmatprep.mubr.bf16.mxu0 %v12874_v26  ;;  %12928 = vst [vmem:[#allocation110_spill] sm:$0xff] %v11636_v11  ;;  %v11638_v28 = vpop.f32.mrb[154].mxu1 }
 0x47c   :  { %12929 = vst [vmem:[#allocation111_spill] sm:$0xff] %v11638_v28  ;;  %v11640_v4 = vpop.f32.mrb[155].mxu1 }
 0x47d   :  { %12930 = vst [vmem:[#allocation112_spill] sm:$0xff] %v11640_v4  ;;  %v11647_v1 = vpop.f32.mrb[156].mxu1  ;;  %v10009_v4 = vld [vmem:[%s12806_s0 + $0x100] sm:$0xff]  }
 0x47e   :  { %12931 = vst [vmem:[#allocation113_spill] sm:$0xff] %v11647_v1 }
 0x482   :  { %7956 = vmatmul.mubr.msk.bf16.gmra.mrb[88].mxu0 %vm475_vm1, %v10007_v34  ;;  %v11649_v34 = vpop.f32.mrb[157].mxu1 }
 0x483   :  { %3669 = vmatprep.mubr.bf16.mxu0 %v12874_v26  ;;  %12932 = vst [vmem:[#allocation114_spill] sm:$0xff] %v11649_v34  ;;  %v11651_v9 = vpop.f32.mrb[158].mxu1 }
 0x484   :  { %12933 = vst [vmem:[#allocation115_spill] sm:$0xff] %v11651_v9  ;;  %v11653_v14 = vpop.f32.mrb[159].mxu1 }
 0x485   :  { %12934 = vst [vmem:[#allocation116_spill] sm:$0xff] %v11653_v14  ;;  %v11660_v28 = vpop.f32.mrb[160].mxu1  ;;  %v10010_v14 = vld [vmem:[%s12806_s0 + $0x108] sm:$0xff]  }
 0x486   :  { %12935 = vst [vmem:[#allocation117_spill] sm:$0xff] %v11660_v28 }
 0x48a   :  { %7957 = vmatmul.mubr.msk.bf16.gmra.mrb[92].mxu0 %vm475_vm1, %v10008_v13  ;;  %v11662_v13 = vpop.f32.mrb[161].mxu1 }
 0x48b   :  { %3679 = vmatprep.mubr.bf16.mxu0 %v12874_v26  ;;  %12936 = vst [vmem:[#allocation118_spill] sm:$0xff] %v11662_v13  ;;  %v11664_v11 = vpop.f32.mrb[162].mxu1 }
 0x48c   :  { %12937 = vst [vmem:[#allocation119_spill] sm:$0xff] %v11664_v11  ;;  %v11666_v1 = vpop.f32.mrb[163].mxu1 }
 0x48d   :  { %12938 = vst [vmem:[#allocation120_spill] sm:$0xff] %v11666_v1  ;;  %v11673_v9 = vpop.f32.mrb[164].mxu1  ;;  %v10011_v1 = vld [vmem:[%s12806_s0 + $0x110] sm:$0xff]  }
 0x48e   :  { %12939 = vst [vmem:[#allocation121_spill] sm:$0xff] %v11673_v9 }
 0x492   :  { %7958 = vmatmul.mubr.msk.bf16.gmra.mrb[96].mxu0 %vm475_vm1, %v10009_v4  ;;  %v11675_v4 = vpop.f32.mrb[165].mxu1 }
 0x493   :  { %3689 = vmatprep.mubr.bf16.mxu0 %v12874_v26  ;;  %12940 = vst [vmem:[#allocation122_spill] sm:$0xff] %v11675_v4  ;;  %v11677_v34 = vpop.f32.mrb[166].mxu1  ;;  %v4114_v4 = vlaneseq }
 0x494   :  { %12941 = vst [vmem:[#allocation123_spill] sm:$0xff] %v11677_v34  ;;  %v11679_v28 = vpop.f32.mrb[167].mxu1 }
 0x495   :  { %12942 = vst [vmem:[#allocation124_spill] sm:$0xff] %v11679_v28  ;;  %v11686_v11 = vpop.f32.mrb[168].mxu1 }
 0x496   :  { %12943 = vst [vmem:[#allocation125_spill] sm:$0xff] %v11686_v11  ;;  %v11688_v13 = vpop.f32.mrb[169].mxu1  ;;  %v4115_v11 = vshrl.u32 %v4114_v4, 7 }
 0x497   :  { %12944 = vst [vmem:[#allocation126_spill] sm:$0xff] %v11688_v13  ;;  %v11691_v34 = vpop.f32.mrb[170].mxu1  ;;  %v10012_v13 = vld [vmem:[%s12806_s0 + $0x118] sm:$0xff]  }
 0x498   :  { %12945 = vst [vmem:[#allocation127_spill] sm:$0xff] %v11691_v34  ;;  %v11694_v17 = vpop.f32.mrb[171].mxu1 }
 0x499   :  { %12946 = vst [vmem:[#allocation128_spill] sm:$0xff] %v11694_v17 }
 0x49a   :  { %7959 = vmatmul.mubr.msk.bf16.gmra.mrb[100].mxu0 %vm475_vm1, %v10010_v14 }
 0x49b   :  { %3699 = vmatprep.mubr.bf16.mxu0 %v12874_v26 }
 0x4a2   :  { %7960 = vmatmul.mubr.msk.bf16.gmra.mrb[104].mxu0 %vm475_vm1, %v10011_v1 }
 0x4a3   :  { %3709 = vmatprep.mubr.bf16.mxu0 %v12874_v26 }
 0x4a5   :  { %v3441_v14 = vpop.f32.mrb[0].mxu0 }
 0x4a6   :  { %v8796_v9 = vadd.f32 %v3441_v14, %v11048_v44  ;;  %v3443_v32 = vpop.f32.mrb[1].mxu0  ;;  %v11703_v44 = vpop.f32.mrb[172].mxu1  ;;  %v4116_v14 = vsub.s32 0, %v4115_v11 }
 0x4a7   :  { %v8797_v28 = vadd.f32 %v3443_v32, %v11052_v45  ;;  %v3445_v8 = vpop.f32.mrb[2].mxu0  ;;  %12947 = vst [vmem:[#allocation129_spill] sm:$0xff] %v11703_v44  ;;  %v11705_v32 = vpop.f32.mrb[173].mxu1 }
 0x4a8   :  { %v8798_v1 = vadd.f32 %v3445_v8, %v11054_v46  ;;  %v3447_v7 = vpop.f32.mrb[3].mxu0  ;;  %12948 = vst [vmem:[#allocation130_spill] sm:$0xff] %v11705_v32  ;;  %v11708_v17 = vpop.f32.mrb[174].mxu1 }
 0x4a9   :  { %v8799_v18 = vadd.f32 %v3447_v7, %v11056_v47  ;;  %12949 = vst [vmem:[#allocation131_spill] sm:$0xff] %v11708_v17  ;;  %v4112_v47 = vld [vmem:[%s12808_s2] sm:$0x3]  ;;  %v4120_v7 = vsub.s32 1, %v4115_v11  ;;  %v11714_v34 = vpop.f32.mrb[175].mxu1 }
 0x4aa   :  { %7961 = vmatmul.mubr.msk.bf16.gmra.mrb[108].mxu0 %vm475_vm1, %v10012_v13  ;;  %12950 = vst [vmem:[#allocation132_spill] sm:$0xff] %v11714_v34  ;;  %v11718_v5 = vrot.slane %v4112_v47, %v4116_v14 }
 0x4ab   :  { %3719 = vmatprep.mubr.bf16.mxu0 %v12874_v26 }
 0x4ac   :  { %v4126_v34 = vadd.f32 %v8798_v1, %v11718_v5 }
 0x4ad   :  { %v3451_v45 = vpop.f32.mrb[4].mxu0 }
 0x4ae   :  { %v8800_v46 = vadd.f32 %v3451_v45, %v11062_v48  ;;  %v3453_v8 = vpop.f32.mrb[5].mxu0  ;;  %v10013_v48 = vld [vmem:[%s12806_s0 + $0x120] sm:$0xff]   ;;  %v11724_v45 = vrot.slane %v4112_v47, %v4120_v7 }
 0x4af   :  { %v8801_v13 = vadd.f32 %v3453_v8, %v11066_v49  ;;  %v3455_v4 = vpop.f32.mrb[6].mxu0  ;;  %v11727_v49 = vpop.f32.mrb[176].mxu1 }
 0x4b0   :  { %v8802_v44 = vadd.f32 %v3455_v4, %v11068_v50  ;;  %v3457_v6 = vpop.f32.mrb[7].mxu0  ;;  %12951 = vst [vmem:[#allocation133_spill] sm:$0xff] %v11727_v49  ;;  %v11729_v8 = vpop.f32.mrb[177].mxu1  ;;  %v4124_v50 = vadd.f32 %v8796_v9, %v11718_v5  ;;  %v4125_v4 = vadd.f32 %v8797_v28, %v11724_v45  ;;  %v4127_v9 = vadd.f32 %v8799_v18, %v11724_v45 }
 0x4b1   :  { %v8803_v32 = vadd.f32 %v3457_v6, %v11070_v51  ;;  %12952 = vst [vmem:[#allocation134_spill] sm:$0xff] %v11729_v8  ;;  %v11733_v14 = vpop.f32.mrb[178].mxu1  ;;  %v4318_v18 = vmax.f32 %v4126_v34, 0.0  ;;  %v4129_v34 = vadd.f32 %v8801_v13, %v11724_v45 }
 0x4b2   :  { %7962 = vmatmul.mubr.msk.bf16.gmra.mrb[112].mxu0 %vm475_vm1, %v10013_v48  ;;  %12953 = vst [vmem:[#allocation135_spill] sm:$0xff] %v11733_v14  ;;  %v11737_v7 = vpop.f32.mrb[179].mxu1  ;;  %v4316_v14 = vmax.f32 %v4124_v50, 0.0  ;;  %v4317_v1 = vmax.f32 %v4125_v4, 0.0 }
 0x4b3   :  { %3729 = vmatprep.mubr.bf16.mxu0 %v12874_v26  ;;  %12954 = vst [vmem:[#allocation136_spill] sm:$0xff] %v11737_v7 }
 0x4b5   :  { %v3461_v11 = vpop.f32.mrb[8].mxu0 }
 0x4b6   :  { %v8804_v51 = vadd.f32 %v3461_v11, %v11076_v52  ;;  %v3463_v6 = vpop.f32.mrb[9].mxu0 }
 0x4b7   :  { %v8805_v48 = vadd.f32 %v3463_v6, %v11080_v62  ;;  %v3465_v47 = vpop.f32.mrb[10].mxu0  ;;  %v10014_v6 = vld [vmem:[%s12806_s0 + $0x128] sm:$0xff]  }
 0x4b8   :  { %v4132_v49 = vadd.f32 %v8804_v51, %v11718_v5  ;;  %v8806_v8 = vadd.f32 %v3465_v47, %v11082_v63  ;;  %v3467_v17 = vpop.f32.mrb[11].mxu0 }
 0x4b9   :  { %v4133_v52 = vadd.f32 %v8805_v48, %v11724_v45  ;;  %v8807_v11 = vadd.f32 %v3467_v17, %v11084_v10  ;;  %v11754_v17 = vpop.f32.mrb[180].mxu1 }
 0x4ba   :  { %v4324_v28 = vmax.f32 %v4132_v49, 0.0  ;;  %v4134_v62 = vadd.f32 %v8806_v8, %v11718_v5  ;;  %7963 = vmatmul.mubr.msk.bf16.gmra.mrb[116].mxu0 %vm475_vm1, %v10014_v6  ;;  %v4319_v49 = vmax.f32 %v4127_v9, 0.0  ;;  %v11756_v7 = vpop.f32.mrb[181].mxu1  ;;  %v4128_v6 = vadd.f32 %v8800_v46, %v11718_v5 }
 0x4bb   :  { %v4325_v51 = vmax.f32 %v4133_v52, 0.0  ;;  %v4135_v63 = vadd.f32 %v8807_v11, %v11724_v45  ;;  %3739 = vmatprep.mubr.bf16.mxu0 %v12874_v26  ;;  %v11760_v43 = vpop.f32.mrb[182].mxu1 }
 0x4bc   :  { %v11752_v48 = vmax.f32 %v4316_v14, %v4324_v28  ;;  %v4326_v10 = vmax.f32 %v4134_v62, 0.0  ;;  %v11764_v62 = vpop.f32.mrb[183].mxu1 }
 0x4bd   :  { %v4509_v8 = vmax.f32 %v4317_v1, %v4325_v51  ;;  %v4327_v50 = vmax.f32 %v4135_v63, 0.0  ;;  %v3471_v47 = vpop.f32.mrb[12].mxu0  ;;  %v4130_v1 = vadd.f32 %v8802_v44, %v11718_v5  ;;  %v10015_v44 = vld [vmem:[%s12806_s0 + $0x130] sm:$0xff]  }
 0x4be   :  { %v4510_v4 = vmax.f32 %v4318_v18, %v4326_v10  ;;  %v8808_v52 = vadd.f32 %v3471_v47, %v11090_v12  ;;  %v3473_v11 = vpop.f32.mrb[13].mxu0  ;;  %v4131_v18 = vadd.f32 %v8803_v32, %v11724_v45 }
 0x4bf   :  { %v4511_v14 = vmax.f32 %v4319_v49, %v4327_v50  ;;  %v8809_v28 = vadd.f32 %v3473_v11, %v11094_v15  ;;  %v3475_v9 = vpop.f32.mrb[14].mxu0  ;;  %v4320_v15 = vmax.f32 %v4128_v6, 0.0 }
 0x4c0   :  { %v4516_v51 = vpack.c.bf16 %v4510_v4, %v11752_v48  ;;  %v4136_v46 = vadd.f32 %v8808_v52, %v11718_v5  ;;  %v8810_v12 = vadd.f32 %v3475_v9, %v11096_v16  ;;  %v3477_v63 = vpop.f32.mrb[15].mxu0  ;;  %v4321_v48 = vmax.f32 %v4129_v34, 0.0  ;;  %v11781_v4 = vpop.f32.mrb[184].mxu1 }
 0x4c1   :  { %v4517_v10 = vpack.c.bf16 %v4511_v14, %v4509_v8  ;;  %v4137_v13 = vadd.f32 %v8809_v28, %v11724_v45  ;;  %v8811_v49 = vadd.f32 %v3477_v63, %v11098_v27  ;;  %v4322_v8 = vmax.f32 %v4130_v1, 0.0  ;;  %v11783_v9 = vpop.f32.mrb[185].mxu1 }
 0x4c2   :  { %v4328_v50 = vmax.f32 %v4136_v46, 0.0  ;;  %v4138_v47 = vadd.f32 %v8810_v12, %v11718_v5  ;;  %7964 = vmatmul.mubr.msk.bf16.gmra.mrb[120].mxu0 %vm475_vm1, %v10015_v44  ;;  %v4323_v52 = vmax.f32 %v4131_v18, 0.0  ;;  %v11786_v63 = vpop.f32.mrb[186].mxu1 }
 0x4c3   :  { %4522 = vst.msk [vmem:[#allocation2 + $0x8] sm:$0xff] %vm4521_vm2, %v4517_v10  ;;  %v4329_v16 = vmax.f32 %v4137_v13, 0.0  ;;  %v4139_v32 = vadd.f32 %v8811_v49, %v11724_v45  ;;  %3749 = vmatprep.mubr.bf16.mxu0 %v12874_v26  ;;  %v11789_v49 = vpop.f32.mrb[187].mxu1 }
 0x4c4   :  { %v4512_v27 = vmax.f32 %v4320_v15, %v4328_v50  ;;  %v4330_v6 = vmax.f32 %v4138_v47, 0.0 }
 0x4c5   :  { %v4513_v11 = vmax.f32 %v4321_v48, %v4329_v16  ;;  %v4331_v14 = vmax.f32 %v4139_v32, 0.0  ;;  %v3481_v28 = vpop.f32.mrb[16].mxu0 }
 0x4c6   :  { %v4514_v46 = vmax.f32 %v4322_v8, %v4330_v6  ;;  %v8812_v34 = vadd.f32 %v3481_v28, %v11104_v21  ;;  %v3483_v12 = vpop.f32.mrb[17].mxu0  ;;  %v10016_v21 = vld [vmem:[%s12806_s0 + $0x138] sm:$0xff]   ;;  %v10017_v28 = vld [vmem:[%s12806_s0 + $0x140] sm:$0xff]  }
 0x4c7   :  { %v4515_v10 = vmax.f32 %v4323_v52, %v4331_v14  ;;  %v8813_v13 = vadd.f32 %v3483_v12, %v11108_v29  ;;  %v3485_v1 = vpop.f32.mrb[18].mxu0  ;;  %v11800_v29 = vpop.f32.mrb[188].mxu1 }
 0x4c8   :  { %v4518_v15 = vpack.c.bf16 %v4514_v46, %v4512_v27  ;;  %v8814_v18 = vadd.f32 %v3485_v1, %v11110_v31  ;;  %v3487_v50 = vpop.f32.mrb[19].mxu0  ;;  %v11802_v16 = vpop.f32.mrb[189].mxu1  ;;  %v4140_v46 = vadd.f32 %v8812_v34, %v11718_v5 }
 0x4c9   :  { %v4519_v47 = vpack.c.bf16 %v4515_v10, %v4513_v11  ;;  %v8815_v44 = vadd.f32 %v3487_v50, %v11112_v33  ;;  %v11805_v8 = vpop.f32.mrb[190].mxu1 }
 0x4ca   :  { %7965 = vmatmul.mubr.msk.bf16.gmra.mrb[124].mxu0 %vm475_vm1, %v10016_v21  ;;  %v4702_v48 = vld [vmem:[#allocation2 + $0x8] sm:$0xff]  ;;  %v11808_v52 = vpop.f32.mrb[191].mxu1  ;;  %v4142_v50 = vadd.f32 %v8814_v18, %v11718_v5 }
 0x4cb   :  { %4524 = vst.msk [vmem:[#allocation2 + $0x18] sm:$0xff] %vm4521_vm2, %v4519_v47  ;;  %8000 = vmatprep.mubr.msk.bf16.mxu1 %vm4521_vm2, %v4702_v48  ;;  %3759 = vmatprep.mubr.bf16.mxu0 %v12874_v26 }
 0x4cc   :  { %4962 = vmatmul.mubr.bf16.vlgmr.msra.gmra.mrb[192].mxu1 %v4516_v51 }
 0x4cd   :  { %v3491_v31 = vpop.f32.mrb[20].mxu0 }
 0x4ce   :  { %v8816_v33 = vadd.f32 %v3491_v31, %v11118_v23  ;;  %v3493_v32 = vpop.f32.mrb[21].mxu0 }
 0x4cf   :  { %v8817_v27 = vadd.f32 %v3493_v32, %v11122_v37  ;;  %v3495_v6 = vpop.f32.mrb[22].mxu0 }
 0x4d0   :  { %v8818_v11 = vadd.f32 %v3495_v6, %v11124_v53  ;;  %v3497_v14 = vpop.f32.mrb[23].mxu0 }
 0x4d1   :  { %v8819_v51 = vadd.f32 %v3497_v14, %v11126_v55  ;;  %v4141_v55 = vadd.f32 %v8813_v13, %v11724_v45 }
 0x4d2   :  { %7966 = vmatmul.mubr.msk.bf16.gmra.mrb[128].mxu0 %vm475_vm1, %v10017_v28  ;;  %v4704_v23 = vld [vmem:[#allocation2 + $0x18] sm:$0xff] }
 0x4d3   :  { %8001 = vmatprep.mubr.msk.bf16.mxu1 %vm4521_vm2, %v4704_v23  ;;  %3769 = vmatprep.mubr.bf16.mxu0 %v12874_v26  ;;  %v4333_v18 = vmax.f32 %v4141_v55, 0.0  ;;  %v4145_v55 = vadd.f32 %v8817_v27, %v11724_v45 }
 0x4d4   :  { %4972 = vmatmul.mubr.bf16.gmra.mrb[196].mxu1 %v4518_v15  ;;  %v4143_v15 = vadd.f32 %v8815_v44, %v11724_v45  ;;  %v4334_v44 = vmax.f32 %v4142_v50, 0.0  ;;  %v4146_v50 = vadd.f32 %v8818_v11, %v11718_v5  ;;  %v10019_v11 = vld [vmem:[%s12806_s0 + $0x150] sm:$0xff]  }
 0x4d5   :  { %v3501_v37 = vpop.f32.mrb[24].mxu0 }
 0x4d6   :  { %v8820_v53 = vadd.f32 %v3501_v37, %v11132_v30  ;;  %v3503_v12 = vpop.f32.mrb[25].mxu0  ;;  %v4332_v30 = vmax.f32 %v4140_v46, 0.0 }
 0x4d7   :  { %v8821_v10 = vadd.f32 %v3503_v12, %v11136_v56  ;;  %v3505_v1 = vpop.f32.mrb[26].mxu0  ;;  %v10018_v56 = vld [vmem:[%s12806_s0 + $0x148] sm:$0xff]  }
 0x4d8   :  { %v4148_v47 = vadd.f32 %v8820_v53, %v11718_v5  ;;  %v8822_v21 = vadd.f32 %v3505_v1, %v11138_v57  ;;  %v3507_v48 = vpop.f32.mrb[27].mxu0  ;;  %v4144_v53 = vadd.f32 %v8816_v33, %v11718_v5  ;;  %v4147_v33 = vadd.f32 %v8819_v51, %v11724_v45 }
 0x4d9   :  { %v4149_v31 = vadd.f32 %v8821_v10, %v11724_v45  ;;  %v8823_v34 = vadd.f32 %v3507_v48, %v11140_v58  ;;  %v4335_v58 = vmax.f32 %v4143_v15, 0.0 }
 0x4da   :  { %v4340_v32 = vmax.f32 %v4148_v47, 0.0  ;;  %v4150_v13 = vadd.f32 %v8822_v21, %v11718_v5  ;;  %7967 = vmatmul.mubr.msk.bf16.gmra.mrb[132].mxu0 %vm475_vm1, %v10018_v56  ;;  %v4336_v27 = vmax.f32 %v4144_v53, 0.0 }
 0x4db   :  { %v4341_v6 = vmax.f32 %v4149_v31, 0.0  ;;  %v4151_v57 = vadd.f32 %v8823_v34, %v11724_v45  ;;  %3779 = vmatprep.mubr.bf16.mxu0 %v12874_v26 }
 0x4dc   :  { %v4525_v14 = vmax.f32 %v4332_v30, %v4340_v32  ;;  %v4342_v28 = vmax.f32 %v4150_v13, 0.0 }
 0x4dd   :  { %v4526_v23 = vmax.f32 %v4333_v18, %v4341_v6  ;;  %v4343_v37 = vmax.f32 %v4151_v57, 0.0  ;;  %v3511_v46 = vpop.f32.mrb[28].mxu0  ;;  %v4337_v18 = vmax.f32 %v4145_v55, 0.0  ;;  %v4338_v6 = vmax.f32 %v4146_v50, 0.0  ;;  %v10020_v50 = vld [vmem:[%s12806_s0 + $0x158] sm:$0xff]  }
 0x4de   :  { %v4527_v12 = vmax.f32 %v4334_v44, %v4342_v28  ;;  %v8824_v10 = vadd.f32 %v3511_v46, %v11146_v54  ;;  %v3513_v1 = vpop.f32.mrb[29].mxu0  ;;  %v4339_v44 = vmax.f32 %v4147_v33, 0.0 }
 0x4df   :  { %v4528_v47 = vmax.f32 %v4335_v58, %v4343_v37  ;;  %v8825_v21 = vadd.f32 %v3513_v1, %v11150_v59  ;;  %v3515_v48 = vpop.f32.mrb[30].mxu0 }
 0x4e0   :  { %v4533_v31 = vpack.c.bf16 %v4527_v12, %v4525_v14  ;;  %v4152_v15 = vadd.f32 %v8824_v10, %v11718_v5  ;;  %v8826_v34 = vadd.f32 %v3515_v48, %v11152_v3  ;;  %v3517_v30 = vpop.f32.mrb[31].mxu0 }
 0x4e1   :  { %v4534_v32 = vpack.c.bf16 %v4528_v47, %v4526_v23  ;;  %v4153_v54 = vadd.f32 %v8825_v21, %v11724_v45  ;;  %v8827_v13 = vadd.f32 %v3517_v30, %v11154_v19 }
 0x4e2   :  { %v4344_v56 = vmax.f32 %v4152_v15, 0.0  ;;  %v4154_v59 = vadd.f32 %v8826_v34, %v11718_v5  ;;  %7968 = vmatmul.mubr.msk.bf16.gmra.mrb[136].mxu0 %vm475_vm1, %v10019_v11 }
 0x4e3   :  { %4538 = vst.msk [vmem:[#allocation2 + $0x28] sm:$0xff] %vm4521_vm2, %v4534_v32  ;;  %v4345_v3 = vmax.f32 %v4153_v54, 0.0  ;;  %v4155_v51 = vadd.f32 %v8827_v13, %v11724_v45  ;;  %3789 = vmatprep.mubr.bf16.mxu0 %v12874_v26  ;;  %v10021_v54 = vld [vmem:[%s12806_s0 + $0x160] sm:$0xff]  }
 0x4e4   :  { %v4529_v19 = vmax.f32 %v4336_v27, %v4344_v56  ;;  %v4346_v57 = vmax.f32 %v4154_v59, 0.0 }
 0x4e5   :  { %v4530_v14 = vmax.f32 %v4337_v18, %v4345_v3  ;;  %v4347_v28 = vmax.f32 %v4155_v51, 0.0  ;;  %v3521_v58 = vpop.f32.mrb[32].mxu0 }
 0x4e6   :  { %v4531_v23 = vmax.f32 %v4338_v6, %v4346_v57  ;;  %v8828_v37 = vadd.f32 %v3521_v58, %v11160_v60  ;;  %v3523_v46 = vpop.f32.mrb[33].mxu0 }
 0x4e7   :  { %v4532_v53 = vmax.f32 %v4339_v44, %v4347_v28  ;;  %v8829_v12 = vadd.f32 %v3523_v46, %v11164_v20  ;;  %v3525_v10 = vpop.f32.mrb[34].mxu0 }
 0x4e8   :  { %v4535_v1 = vpack.c.bf16 %v4531_v23, %v4529_v19  ;;  %v8830_v55 = vadd.f32 %v3525_v10, %v11166_v22  ;;  %v3527_v47 = vpop.f32.mrb[35].mxu0 }
 0x4e9   :  { %v4536_v21 = vpack.c.bf16 %v4532_v53, %v4530_v14  ;;  %v8831_v48 = vadd.f32 %v3527_v47, %v11168_v24 }
 0x4ea   :  { %7969 = vmatmul.mubr.msk.bf16.gmra.mrb[140].mxu0 %vm475_vm1, %v10020_v50  ;;  %v4706_v15 = vld [vmem:[#allocation2 + $0x28] sm:$0xff]  ;;  %v4158_v59 = vadd.f32 %v8830_v55, %v11718_v5  ;;  %v12955_v50 = vld [vmem:[#allocation4_spill] sm:$0xff] }
 0x4eb   :  { %4540 = vst.msk [vmem:[#allocation2 + $0x38] sm:$0xff] %vm4521_vm2, %v4536_v21  ;;  %8002 = vmatprep.mubr.msk.bf16.mxu1 %vm4521_vm2, %v4706_v15  ;;  %3799 = vmatprep.mubr.bf16.mxu0 %v12874_v26  ;;  %v4159_v51 = vadd.f32 %v8831_v48, %v11724_v45 }
 0x4ec   :  { %4982 = vmatmul.mubr.bf16.gmra.mrb[200].mxu1 %v4533_v31  ;;  %v4350_v58 = vmax.f32 %v4158_v59, 0.0 }
 0x4ed   :  { %v3531_v60 = vpop.f32.mrb[36].mxu0 }
 0x4ee   :  { %v8832_v20 = vadd.f32 %v3531_v60, %v11174_v61  ;;  %v3533_v22 = vpop.f32.mrb[37].mxu0 }
 0x4ef   :  { %v8833_v24 = vadd.f32 %v3533_v22, %v11178_v25  ;;  %v3535_v34 = vpop.f32.mrb[38].mxu0  ;;  %v4156_v25 = vadd.f32 %v8828_v37, %v11718_v5 }
 0x4f0   :  { %v8834_v30 = vadd.f32 %v3535_v34, %v11180_v35  ;;  %v3537_v33 = vpop.f32.mrb[39].mxu0  ;;  %v4160_v10 = vadd.f32 %v8832_v20, %v11718_v5 }
 0x4f1   :  { %v8835_v32 = vadd.f32 %v3537_v33, %v11182_v36  ;;  %v4157_v36 = vadd.f32 %v8829_v12, %v11724_v45  ;;  %v4161_v21 = vadd.f32 %v8833_v24, %v11724_v45 }
 0x4f2   :  { %7970 = vmatmul.mubr.msk.bf16.gmra.mrb[144].mxu0 %vm475_vm1, %v10021_v54  ;;  %v4708_v13 = vld [vmem:[#allocation2 + $0x38] sm:$0xff]  ;;  %v4162_v22 = vadd.f32 %v8834_v30, %v11718_v5  ;;  %v4352_v24 = vmax.f32 %v4160_v10, 0.0  ;;  %v10023_v30 = vld [vmem:[%s12806_s0 + $0x170] sm:$0xff]  }
 0x4f3   :  { %8003 = vmatprep.mubr.msk.bf16.mxu1 %vm4521_vm2, %v4708_v13  ;;  %3809 = vmatprep.mubr.bf16.mxu0 %v12874_v26  ;;  %v4349_v14 = vmax.f32 %v4157_v36, 0.0  ;;  %v4163_v20 = vadd.f32 %v8835_v32, %v11724_v45  ;;  %v4353_v36 = vmax.f32 %v4161_v21, 0.0  ;;  %v12961_v21 = vld [vmem:[#allocation10_spill] sm:$0xff] }
 0x4f4   :  { %4992 = vmatmul.mubr.bf16.gmra.mrb[204].mxu1 %v4535_v1 }
 0x4f5   :  { %v3541_v61 = vpop.f32.mrb[40].mxu0  ;;  %v4355_v59 = vmax.f32 %v4163_v20, 0.0 }
 0x4f6   :  { %v8836_v35 = vadd.f32 %v3541_v61, %v11188_v0  ;;  %v3543_v31 = vpop.f32.mrb[41].mxu0  ;;  %v4348_v0 = vmax.f32 %v4156_v25, 0.0 }
 0x4f7   :  { %v8837_v27 = vadd.f32 %v3543_v31, %v11192_v38  ;;  %v3545_v56 = vpop.f32.mrb[42].mxu0  ;;  %v10022_v38 = vld [vmem:[%s12806_s0 + $0x168] sm:$0xff]  }
 0x4f8   :  { %v4164_v11 = vadd.f32 %v8836_v35, %v11718_v5  ;;  %v8838_v18 = vadd.f32 %v3545_v56, %v11194_v39  ;;  %v3547_v3 = vpop.f32.mrb[43].mxu0 }
 0x4f9   :  { %v4165_v6 = vadd.f32 %v8837_v27, %v11724_v45  ;;  %v8839_v19 = vadd.f32 %v3547_v3, %v11196_v40  ;;  %v4351_v40 = vmax.f32 %v4159_v51, 0.0  ;;  %v4354_v27 = vmax.f32 %v4162_v22, 0.0 }
 0x4fa   :  { %v4356_v57 = vmax.f32 %v4164_v11, 0.0  ;;  %v4166_v44 = vadd.f32 %v8838_v18, %v11718_v5  ;;  %7971 = vmatmul.mubr.msk.bf16.gmra.mrb[148].mxu0 %vm475_vm1, %v10022_v38 }
 0x4fb   :  { %v4357_v28 = vmax.f32 %v4165_v6, 0.0  ;;  %v4167_v39 = vadd.f32 %v8839_v19, %v11724_v45  ;;  %3819 = vmatprep.mubr.bf16.mxu0 %v12874_v26  ;;  %v12956_v6 = vld [vmem:[#allocation5_spill] sm:$0xff] }
 0x4fc   :  { %v4541_v23 = vmax.f32 %v4348_v0, %v4356_v57  ;;  %v4358_v37 = vmax.f32 %v4166_v44, 0.0  ;;  %v12957_v44 = vld [vmem:[#allocation6_spill] sm:$0xff] }
 0x4fd   :  { %v4542_v46 = vmax.f32 %v4349_v14, %v4357_v28  ;;  %v4359_v53 = vmax.f32 %v4167_v39, 0.0  ;;  %v3551_v12 = vpop.f32.mrb[44].mxu0  ;;  %v12958_v39 = vld [vmem:[#allocation7_spill] sm:$0xff] }
 0x4fe   :  { %v4543_v1 = vmax.f32 %v4350_v58, %v4358_v37  ;;  %v8840_v55 = vadd.f32 %v3551_v12, %v11202_v2  ;;  %v3553_v47 = vpop.f32.mrb[45].mxu0 }
 0x4ff   :  { %v4544_v48 = vmax.f32 %v4351_v40, %v4359_v53  ;;  %v8841_v15 = vadd.f32 %v3553_v47, %v12955_v50  ;;  %v3555_v60 = vpop.f32.mrb[46].mxu0  ;;  %v12959_v40 = vld [vmem:[#allocation8_spill] sm:$0xff]  ;;  %v10024_v53 = vld [vmem:[%s12806_s0 + $0x178] sm:$0xff]  }
 0x500   :  { %v4549_v34 = vpack.c.bf16 %v4543_v1, %v4541_v23  ;;  %v4168_v33 = vadd.f32 %v8840_v55, %v11718_v5  ;;  %v8842_v54 = vadd.f32 %v3555_v60, %v11208_v41  ;;  %v3557_v13 = vpop.f32.mrb[47].mxu0  ;;  %v12960_v1 = vld [vmem:[#allocation9_spill] sm:$0xff] }
 0x501   :  { %v4550_v61 = vpack.c.bf16 %v4544_v48, %v4542_v46  ;;  %v4169_v2 = vadd.f32 %v8841_v15, %v11724_v45  ;;  %v8843_v25 = vadd.f32 %v3557_v13, %v11210_v42  ;;  %v12962_v15 = vld [vmem:[#allocation11_spill] sm:$0xff]  ;;  %v10025_v13 = vld [vmem:[%s12806_s0 + $0x180] sm:$0xff]  }
 0x502   :  { %v4360_v35 = vmax.f32 %v4168_v33, 0.0  ;;  %v4170_v31 = vadd.f32 %v8842_v54, %v11718_v5  ;;  %7972 = vmatmul.mubr.msk.bf16.gmra.mrb[152].mxu0 %vm475_vm1, %v10023_v30  ;;  %v12963_v33 = vld [vmem:[#allocation12_spill] sm:$0xff] }
 0x503   :  { %4554 = vst.msk [vmem:[#allocation2 + $0x48] sm:$0xff] %vm4521_vm2, %v4550_v61  ;;  %v4361_v41 = vmax.f32 %v4169_v2, 0.0  ;;  %v4171_v32 = vadd.f32 %v8843_v25, %v11724_v45  ;;  %3829 = vmatprep.mubr.bf16.mxu0 %v12874_v26  ;;  %v12964_v2 = vld [vmem:[#allocation13_spill] sm:$0xff] }
 0x504   :  { %v4545_v42 = vmax.f32 %v4352_v24, %v4360_v35  ;;  %v4362_v56 = vmax.f32 %v4170_v31, 0.0  ;;  %v12965_v31 = vld [vmem:[#allocation14_spill] sm:$0xff] }
 0x505   :  { %v4546_v11 = vmax.f32 %v4353_v36, %v4361_v41  ;;  %v4363_v18 = vmax.f32 %v4171_v32, 0.0  ;;  %v3561_v3 = vpop.f32.mrb[48].mxu0 }
 0x506   :  { %v4547_v51 = vmax.f32 %v4354_v27, %v4362_v56  ;;  %v8844_v19 = vadd.f32 %v3561_v3, %v12956_v6  ;;  %v3563_v0 = vpop.f32.mrb[49].mxu0  ;;  %v12966_v27 = vld [vmem:[#allocation15_spill] sm:$0xff] }
 0x507   :  { %v4548_v57 = vmax.f32 %v4355_v59, %v4363_v18  ;;  %v8845_v38 = vadd.f32 %v3563_v0, %v12957_v44  ;;  %v3565_v14 = vpop.f32.mrb[50].mxu0  ;;  %v12967_v18 = vld [vmem:[#allocation16_spill] sm:$0xff]  ;;  %v10026_v0 = vld [vmem:[%s12806_s0 + $0x188] sm:$0xff]  }
 0x508   :  { %v4551_v28 = vpack.c.bf16 %v4547_v51, %v4545_v42  ;;  %v8846_v58 = vadd.f32 %v3565_v14, %v12958_v39  ;;  %v3567_v23 = vpop.f32.mrb[51].mxu0  ;;  %v4172_v61 = vadd.f32 %v8844_v19, %v11718_v5 }
 0x509   :  { %v4552_v37 = vpack.c.bf16 %v4548_v57, %v4546_v11  ;;  %v8847_v46 = vadd.f32 %v3567_v23, %v12959_v40  ;;  %v4173_v35 = vadd.f32 %v8845_v38, %v11724_v45 }
 0x50a   :  { %7973 = vmatmul.mubr.msk.bf16.gmra.mrb[156].mxu0 %vm475_vm1, %v10024_v53  ;;  %v4710_v12 = vld [vmem:[#allocation2 + $0x48] sm:$0xff]  ;;  %v4174_v41 = vadd.f32 %v8846_v58, %v11718_v5  ;;  %v4364_v51 = vmax.f32 %v4172_v61, 0.0 }
 0x50b   :  { %4556 = vst.msk [vmem:[#allocation2 + $0x58] sm:$0xff] %vm4521_vm2, %v4552_v37  ;;  %8004 = vmatprep.mubr.msk.bf16.mxu1 %vm4521_vm2, %v4710_v12  ;;  %3839 = vmatprep.mubr.bf16.mxu0 %v12874_v26  ;;  %v4175_v59 = vadd.f32 %v8847_v46, %v11724_v45  ;;  %v4365_v57 = vmax.f32 %v4173_v35, 0.0  ;;  %v12968_v12 = vld [vmem:[#allocation17_spill] sm:$0xff]  ;;  %v12971_v35 = vld [vmem:[#allocation20_spill] sm:$0xff] }
 0x50c   :  { %5002 = vmatmul.mubr.bf16.gmra.mrb[208].mxu1 %v4549_v34  ;;  %v4366_v14 = vmax.f32 %v4174_v41, 0.0 }
 0x50d   :  { %v3571_v10 = vpop.f32.mrb[52].mxu0  ;;  %v4367_v58 = vmax.f32 %v4175_v59, 0.0 }
 0x50e   :  { %v8848_v55 = vadd.f32 %v3571_v10, %v12960_v1  ;;  %v3573_v47 = vpop.f32.mrb[53].mxu0 }
 0x50f   :  { %v8849_v48 = vadd.f32 %v3573_v47, %v12961_v21  ;;  %v3575_v50 = vpop.f32.mrb[54].mxu0 }
 0x510   :  { %v8850_v60 = vadd.f32 %v3575_v50, %v12962_v15  ;;  %v3577_v22 = vpop.f32.mrb[55].mxu0  ;;  %v4176_v46 = vadd.f32 %v8848_v55, %v11718_v5  ;;  %v12969_v50 = vld [vmem:[#allocation18_spill] sm:$0xff] }
 0x511   :  { %v8851_v54 = vadd.f32 %v3577_v22, %v12963_v33  ;;  %v4177_v47 = vadd.f32 %v8849_v48, %v11724_v45 }
 0x512   :  { %7974 = vmatmul.mubr.msk.bf16.gmra.mrb[160].mxu0 %vm475_vm1, %v10025_v13  ;;  %v4712_v20 = vld [vmem:[#allocation2 + $0x58] sm:$0xff]  ;;  %v4178_v33 = vadd.f32 %v8850_v60, %v11718_v5  ;;  %v4368_v48 = vmax.f32 %v4176_v46, 0.0  ;;  %v10027_v60 = vld [vmem:[%s12806_s0 + $0x190] sm:$0xff]  }
 0x513   :  { %8005 = vmatprep.mubr.msk.bf16.mxu1 %vm4521_vm2, %v4712_v20  ;;  %3849 = vmatprep.mubr.bf16.mxu0 %v12874_v26  ;;  %v4179_v55 = vadd.f32 %v8851_v54, %v11724_v45  ;;  %v4369_v41 = vmax.f32 %v4177_v47, 0.0 }
 0x514   :  { %5012 = vmatmul.mubr.bf16.gmra.mrb[212].mxu1 %v4551_v28 }
 0x515   :  { %v3581_v34 = vpop.f32.mrb[56].mxu0  ;;  %v4371_v59 = vmax.f32 %v4179_v55, 0.0  ;;  %v10029_v55 = vld [vmem:[%s12806_s0 + $0x1a0] sm:$0xff]  }
 0x516   :  { %v8852_v25 = vadd.f32 %v3581_v34, %v12964_v2  ;;  %v3583_v24 = vpop.f32.mrb[57].mxu0  ;;  %v12970_v34 = vld [vmem:[#allocation19_spill] sm:$0xff] }
 0x517   :  { %v8853_v30 = vadd.f32 %v3583_v24, %v12965_v31  ;;  %v3585_v36 = vpop.f32.mrb[58].mxu0 }
 0x518   :  { %v4180_v32 = vadd.f32 %v8852_v25, %v11718_v5  ;;  %v8854_v42 = vadd.f32 %v3585_v36, %v12966_v27  ;;  %v3587_v56 = vpop.f32.mrb[59].mxu0  ;;  %v4370_v27 = vmax.f32 %v4178_v33, 0.0  ;;  %v12978_v33 = vld [vmem:[#allocation27_spill] sm:$0xff] }
 0x519   :  { %v4181_v11 = vadd.f32 %v8853_v30, %v11724_v45  ;;  %v8855_v3 = vadd.f32 %v3587_v56, %v12967_v18 }
 0x51a   :  { %v4372_v6 = vmax.f32 %v4180_v32, 0.0  ;;  %v4182_v19 = vadd.f32 %v8854_v42, %v11718_v5  ;;  %7975 = vmatmul.mubr.msk.bf16.gmra.mrb[164].mxu0 %vm475_vm1, %v10026_v0 }
 0x51b   :  { %v4373_v44 = vmax.f32 %v4181_v11, 0.0  ;;  %v4183_v38 = vadd.f32 %v8855_v3, %v11724_v45  ;;  %3859 = vmatprep.mubr.bf16.mxu0 %v12874_v26 }
 0x51c   :  { %v4557_v28 = vmax.f32 %v4364_v51, %v4372_v6  ;;  %v4374_v39 = vmax.f32 %v4182_v19, 0.0  ;;  %v12972_v6 = vld [vmem:[#allocation21_spill] sm:$0xff] }
 0x51d   :  { %v4558_v23 = vmax.f32 %v4365_v57, %v4373_v44  ;;  %v4375_v37 = vmax.f32 %v4183_v38, 0.0  ;;  %v3591_v40 = vpop.f32.mrb[60].mxu0  ;;  %v12973_v44 = vld [vmem:[#allocation22_spill] sm:$0xff] }
 0x51e   :  { %v4559_v53 = vmax.f32 %v4366_v14, %v4374_v39  ;;  %v8856_v10 = vadd.f32 %v3591_v40, %v12968_v12  ;;  %v3593_v1 = vpop.f32.mrb[61].mxu0  ;;  %v12974_v39 = vld [vmem:[#allocation23_spill] sm:$0xff]  ;;  %v12975_v40 = vld [vmem:[#allocation24_spill] sm:$0xff] }
 0x51f   :  { %v4560_v21 = vmax.f32 %v4367_v58, %v4375_v37  ;;  %v8857_v15 = vadd.f32 %v3593_v1, %v12969_v50  ;;  %v3595_v22 = vpop.f32.mrb[62].mxu0  ;;  %v12976_v1 = vld [vmem:[#allocation25_spill] sm:$0xff]  ;;  %v12977_v50 = vld [vmem:[#allocation26_spill] sm:$0xff] }
 0x520   :  { %v4565_v13 = vpack.c.bf16 %v4559_v53, %v4557_v28  ;;  %v4184_v20 = vadd.f32 %v8856_v10, %v11718_v5  ;;  %v8858_v61 = vadd.f32 %v3595_v22, %v12970_v34  ;;  %v3597_v2 = vpop.f32.mrb[63].mxu0  ;;  %v10028_v53 = vld [vmem:[%s12806_s0 + $0x198] sm:$0xff]  }
 0x521   :  { %v4566_v25 = vpack.c.bf16 %v4560_v21, %v4558_v23  ;;  %v4185_v24 = vadd.f32 %v8857_v15, %v11724_v45  ;;  %v8859_v31 = vadd.f32 %v3597_v2, %v12971_v35  ;;  %v12980_v35 = vld [vmem:[#allocation29_spill] sm:$0xff] }
 0x522   :  { %v4376_v30 = vmax.f32 %v4184_v20, 0.0  ;;  %v4186_v36 = vadd.f32 %v8858_v61, %v11718_v5  ;;  %7976 = vmatmul.mubr.msk.bf16.gmra.mrb[168].mxu0 %vm475_vm1, %v10027_v60  ;;  %v12979_v61 = vld [vmem:[#allocation28_spill] sm:$0xff] }
 0x523   :  { %4570 = vst.msk [vmem:[#allocation2 + $0x68] sm:$0xff] %vm4521_vm2, %v4566_v25  ;;  %v4377_v32 = vmax.f32 %v4185_v24, 0.0  ;;  %v4187_v54 = vadd.f32 %v8859_v31, %v11724_v45  ;;  %3869 = vmatprep.mubr.bf16.mxu0 %v12874_v26 }
 0x524   :  { %v4561_v42 = vmax.f32 %v4368_v48, %v4376_v30  ;;  %v4378_v56 = vmax.f32 %v4186_v36, 0.0  ;;  %v12981_v36 = vld [vmem:[#allocation30_spill] sm:$0xff] }
 0x525   :  { %v4562_v11 = vmax.f32 %v4369_v41, %v4377_v32  ;;  %v4379_v18 = vmax.f32 %v4187_v54, 0.0  ;;  %v3601_v3 = vpop.f32.mrb[64].mxu0 }
 0x526   :  { %v4563_v51 = vmax.f32 %v4370_v27, %v4378_v56  ;;  %v8860_v19 = vadd.f32 %v3601_v3, %v12972_v6  ;;  %v3603_v0 = vpop.f32.mrb[65].mxu0  ;;  %v12982_v27 = vld [vmem:[#allocation31_spill] sm:$0xff] }
 0x527   :  { %v4564_v57 = vmax.f32 %v4371_v59, %v4379_v18  ;;  %v8861_v38 = vadd.f32 %v3603_v0, %v12973_v44  ;;  %v3605_v14 = vpop.f32.mrb[66].mxu0  ;;  %v12983_v18 = vld [vmem:[#allocation32_spill] sm:$0xff]  ;;  %v10030_v0 = vld [vmem:[%s12806_s0 + $0x1a8] sm:$0xff]  }
 0x528   :  { %v4567_v28 = vpack.c.bf16 %v4563_v51, %v4561_v42  ;;  %v8862_v58 = vadd.f32 %v3605_v14, %v12974_v39  ;;  %v3607_v23 = vpop.f32.mrb[67].mxu0  ;;  %v4188_v24 = vadd.f32 %v8860_v19, %v11718_v5 }
 0x529   :  { %v4568_v37 = vpack.c.bf16 %v4564_v57, %v4562_v11  ;;  %v8863_v46 = vadd.f32 %v3607_v23, %v12975_v40  ;;  %v4189_v30 = vadd.f32 %v8861_v38, %v11724_v45 }
 0x52a   :  { %7977 = vmatmul.mubr.msk.bf16.gmra.mrb[172].mxu0 %vm475_vm1, %v10028_v53  ;;  %v4714_v12 = vld [vmem:[#allocation2 + $0x68] sm:$0xff]  ;;  %v4190_v32 = vadd.f32 %v8862_v58, %v11718_v5  ;;  %v4380_v51 = vmax.f32 %v4188_v24, 0.0 }
 0x52b   :  { %4572 = vst.msk [vmem:[#allocation2 + $0x78] sm:$0xff] %vm4521_vm2, %v4568_v37  ;;  %8006 = vmatprep.mubr.msk.bf16.mxu1 %vm4521_vm2, %v4714_v12  ;;  %3879 = vmatprep.mubr.bf16.mxu0 %v12874_v26  ;;  %v4191_v59 = vadd.f32 %v8863_v46, %v11724_v45  ;;  %v4381_v57 = vmax.f32 %v4189_v30, 0.0  ;;  %v12987_v30 = vld [vmem:[#allocation36_spill] sm:$0xff] }
 0x52c   :  { %5022 = vmatmul.mubr.bf16.gmra.mrb[216].mxu1 %v4565_v13  ;;  %v4382_v14 = vmax.f32 %v4190_v32, 0.0 }
 0x52d   :  { %v3611_v10 = vpop.f32.mrb[68].mxu0  ;;  %v4383_v58 = vmax.f32 %v4191_v59, 0.0 }
 0x52e   :  { %v8864_v47 = vadd.f32 %v3611_v10, %v12976_v1  ;;  %v3613_v21 = vpop.f32.mrb[69].mxu0  ;;  %v12984_v1 = vld [vmem:[#allocation33_spill] sm:$0xff] }
 0x52f   :  { %v8865_v15 = vadd.f32 %v3613_v21, %v12977_v50  ;;  %v3615_v22 = vpop.f32.mrb[70].mxu0 }
 0x530   :  { %v8866_v20 = vadd.f32 %v3615_v22, %v12978_v33  ;;  %v3617_v34 = vpop.f32.mrb[71].mxu0  ;;  %v4192_v23 = vadd.f32 %v8864_v47, %v11718_v5  ;;  %v9871_v22 = vld [vmem:[%s12806_s0 + $0x1b0] sm:$0xff]  }
 0x531   :  { %v8867_v2 = vadd.f32 %v3617_v34, %v12979_v61  ;;  %v4193_v53 = vadd.f32 %v8865_v15, %v11724_v45  ;;  %v12985_v34 = vld [vmem:[#allocation34_spill] sm:$0xff]  ;;  %v12986_v15 = vld [vmem:[#allocation35_spill] sm:$0xff] }
 0x532   :  { %7978 = vmatmul.mubr.msk.bf16.gmra.mrb[176].mxu0 %vm475_vm1, %v10029_v55  ;;  %v4716_v25 = vld [vmem:[#allocation2 + $0x78] sm:$0xff]  ;;  %v4194_v12 = vadd.f32 %v8866_v20, %v11718_v5 }
 0x533   :  { %8007 = vmatprep.mubr.msk.bf16.mxu1 %vm4521_vm2, %v4716_v25  ;;  %3889 = vmatprep.mubr.bf16.mxu0 %v12874_v26  ;;  %v4195_v47 = vadd.f32 %v8867_v2, %v11724_v45 }
 0x534   :  { %5032 = vmatmul.mubr.bf16.gmra.mrb[220].mxu1 %v4567_v28 }
 0x535   :  { %v3621_v13 = vpop.f32.mrb[72].mxu0 }
 0x536   :  { %v8868_v31 = vadd.f32 %v3621_v13, %v12980_v35  ;;  %v3623_v48 = vpop.f32.mrb[73].mxu0  ;;  %v4384_v35 = vmax.f32 %v4192_v23, 0.0  ;;  %v12990_v23 = vld [vmem:[#allocation39_spill] sm:$0xff] }
 0x537   :  { %v8869_v60 = vadd.f32 %v3623_v48, %v12981_v36  ;;  %v3625_v41 = vpop.f32.mrb[74].mxu0 }
 0x538   :  { %v4196_v54 = vadd.f32 %v8868_v31, %v11718_v5  ;;  %v8870_v42 = vadd.f32 %v3625_v41, %v12982_v27  ;;  %v3627_v56 = vpop.f32.mrb[75].mxu0  ;;  %v4386_v41 = vmax.f32 %v4194_v12, 0.0 }
 0x539   :  { %v4197_v11 = vadd.f32 %v8869_v60, %v11724_v45  ;;  %v8871_v3 = vadd.f32 %v3627_v56, %v12983_v18  ;;  %v4385_v60 = vmax.f32 %v4193_v53, 0.0  ;;  %v4387_v56 = vmax.f32 %v4195_v47, 0.0  ;;  %v12991_v53 = vld [vmem:[#allocation40_spill] sm:$0xff] }
 0x53a   :  { %v4388_v6 = vmax.f32 %v4196_v54, 0.0  ;;  %v4198_v19 = vadd.f32 %v8870_v42, %v11718_v5  ;;  %7979 = vmatmul.mubr.msk.bf16.gmra.mrb[180].mxu0 %vm475_vm1, %v10030_v0  ;;  %v9873_v42 = vld [vmem:[%s12809_s4 + $0x40] sm:$0xff]  }
 0x53b   :  { %v4389_v44 = vmax.f32 %v4197_v11, 0.0  ;;  %v4199_v38 = vadd.f32 %v8871_v3, %v11724_v45  ;;  %3899 = vmatprep.mubr.bf16.mxu0 %v12874_v26  ;;  %8424 = vmatprep.subr.bf16.mxu1 %v9873_v42 }
 0x53c   :  { %v4573_v28 = vmax.f32 %v4380_v51, %v4388_v6  ;;  %v4390_v39 = vmax.f32 %v4198_v19, 0.0  ;;  %v12988_v19 = vld [vmem:[#allocation37_spill] sm:$0xff]  ;;  %8425 = vmatpush3.bf16.msra.mxu1 %v9873_v42 }
 0x53d   :  { %v4574_v37 = vmax.f32 %v4381_v57, %v4389_v44  ;;  %v4391_v40 = vmax.f32 %v4199_v38, 0.0  ;;  %v3631_v46 = vpop.f32.mrb[76].mxu0  ;;  %v9872_v44 = vld [vmem:[%s12806_s0 + $0x1b8] sm:$0xff]  }
 0x53e   :  { %v4575_v10 = vmax.f32 %v4382_v14, %v4390_v39  ;;  %v8872_v21 = vadd.f32 %v3631_v46, %v12984_v1  ;;  %v3633_v50 = vpop.f32.mrb[77].mxu0  ;;  %v12989_v14 = vld [vmem:[#allocation38_spill] sm:$0xff] }
 0x53f   :  { %v4576_v33 = vmax.f32 %v4383_v58, %v4391_v40  ;;  %v8873_v61 = vadd.f32 %v3633_v50, %v12985_v34  ;;  %v3635_v55 = vpop.f32.mrb[78].mxu0 }
 0x540   :  { %v4581_v25 = vpack.c.bf16 %v4575_v10, %v4573_v28  ;;  %v4200_v13 = vadd.f32 %v8872_v21, %v11718_v5  ;;  %v8874_v24 = vadd.f32 %v3635_v55, %v12986_v15  ;;  %v3637_v20 = vpop.f32.mrb[79].mxu0  ;;  %v12992_v21 = vld [vmem:[#allocation41_spill] sm:$0xff]  ;;  %v12994_v55 = vld [vmem:[#allocation43_spill] sm:$0xff]  ;;  %v12995_v15 = vld [vmem:[#allocation44_spill] sm:$0xff] }
 0x541   :  { %v4582_v31 = vpack.c.bf16 %v4576_v33, %v4574_v37  ;;  %v4201_v48 = vadd.f32 %v8873_v61, %v11724_v45  ;;  %v8875_v36 = vadd.f32 %v3637_v20, %v12987_v30  ;;  %v12993_v33 = vld [vmem:[#allocation42_spill] sm:$0xff]  ;;  %v12996_v30 = vld [vmem:[#allocation45_spill] sm:$0xff] }
 0x542   :  { %v4392_v32 = vmax.f32 %v4200_v13, 0.0  ;;  %v4202_v54 = vadd.f32 %v8874_v24, %v11718_v5  ;;  %7980 = vmatmul.mubr.msk.bf16.gmra.mrb[184].mxu0 %vm475_vm1, %v9871_v22 }
 0x543   :  { %4586 = vst.msk [vmem:[#allocation2 + $0x88] sm:$0xff] %vm4521_vm2, %v4582_v31  ;;  %v4393_v2 = vmax.f32 %v4201_v48, 0.0  ;;  %v4203_v27 = vadd.f32 %v8875_v36, %v11724_v45  ;;  %3909 = vmatprep.mubr.bf16.mxu0 %v12874_v26 }
 0x544   :  { %v4577_v59 = vmax.f32 %v4384_v35, %v4392_v32  ;;  %v4394_v11 = vmax.f32 %v4202_v54, 0.0  ;;  %v12997_v32 = vld [vmem:[#allocation46_spill] sm:$0xff] }
 0x545   :  { %v4578_v18 = vmax.f32 %v4385_v60, %v4393_v2  ;;  %v4395_v3 = vmax.f32 %v4203_v27, 0.0  ;;  %v3641_v51 = vpop.f32.mrb[80].mxu0 }
 0x546   :  { %v4579_v6 = vmax.f32 %v4386_v41, %v4394_v11  ;;  %v8876_v0 = vadd.f32 %v3641_v51, %v12988_v19  ;;  %v3643_v57 = vpop.f32.mrb[81].mxu0  ;;  %v12999_v51 = vld [vmem:[#allocation48_spill] sm:$0xff] }
 0x547   :  { %v4580_v38 = vmax.f32 %v4387_v56, %v4395_v3  ;;  %v8877_v28 = vadd.f32 %v3643_v57, %v12989_v14  ;;  %v3645_v39 = vpop.f32.mrb[82].mxu0 }
 0x548   :  { %v4583_v58 = vpack.c.bf16 %v4579_v6, %v4577_v59  ;;  %v8878_v37 = vadd.f32 %v3645_v39, %v12990_v23  ;;  %v3647_v40 = vpop.f32.mrb[83].mxu0  ;;  %v4204_v35 = vadd.f32 %v8876_v0, %v11718_v5  ;;  %v12998_v59 = vld [vmem:[#allocation47_spill] sm:$0xff] }
 0x549   :  { %v4584_v46 = vpack.c.bf16 %v4580_v38, %v4578_v18  ;;  %v8879_v12 = vadd.f32 %v3647_v40, %v12991_v53  ;;  %v4205_v48 = vadd.f32 %v8877_v28, %v11724_v45 }
 0x54a   :  { %7981 = vmatmul.mubr.msk.bf16.gmra.mrb[188].mxu0 %vm475_vm1, %v9872_v44  ;;  %v4718_v10 = vld [vmem:[#allocation2 + $0x88] sm:$0xff]  ;;  %v4206_v41 = vadd.f32 %v8878_v37, %v11718_v5  ;;  %v4396_v27 = vmax.f32 %v4204_v35, 0.0 }
 0x54b   :  { %4588 = vst.msk [vmem:[#allocation2 + $0x98] sm:$0xff] %vm4521_vm2, %v4584_v46  ;;  %8008 = vmatprep.mubr.msk.bf16.mxu1 %vm4521_vm2, %v4718_v10  ;;  %v4207_v42 = vadd.f32 %v8879_v12, %v11724_v45  ;;  %v4397_v19 = vmax.f32 %v4205_v48, 0.0  ;;  %v13000_v10 = vld [vmem:[#allocation49_spill] sm:$0xff] }
 0x54c   :  { %5042 = vmatmul.mubr.bf16.gmra.mrb[224].mxu1 %v4581_v25  ;;  %v9874_v25 = vld [vmem:[%s12809_s4 + $0x48] sm:$0xff]   ;;  %v4398_v44 = vmax.f32 %v4206_v41, 0.0 }
 0x54d   :  { %v3651_v1 = vpop.f32.mrb[84].mxu0  ;;  %8426 = vmatprep.subr.bf16.mxu1 %v9874_v25  ;;  %v4399_v39 = vmax.f32 %v4207_v42, 0.0 }
 0x54e   :  { %v8880_v50 = vadd.f32 %v3651_v1, %v12992_v21  ;;  %v3653_v22 = vpop.f32.mrb[85].mxu0  ;;  %8427 = vmatpush3.bf16.msra.mxu1 %v9874_v25  ;;  %v13002_v25 = vld [vmem:[#allocation51_spill] sm:$0xff] }
 0x54f   :  { %v8881_v34 = vadd.f32 %v3653_v22, %v12993_v33  ;;  %v3655_v61 = vpop.f32.mrb[86].mxu0 }
 0x550   :  { %v8882_v47 = vadd.f32 %v3655_v61, %v12994_v55  ;;  %v3657_v13 = vpop.f32.mrb[87].mxu0  ;;  %v4208_v38 = vadd.f32 %v8880_v50, %v11718_v5  ;;  %v13001_v50 = vld [vmem:[#allocation50_spill] sm:$0xff] }
 0x551   :  { %v8883_v24 = vadd.f32 %v3657_v13, %v12995_v15  ;;  %v4209_v53 = vadd.f32 %v8881_v34, %v11724_v45 }
 0x552   :  { %v4720_v20 = vld [vmem:[#allocation2 + $0x98] sm:$0xff]  ;;  %v4400_v22 = vmax.f32 %v4208_v38, 0.0  ;;  %v4210_v33 = vadd.f32 %v8882_v47, %v11718_v5 }
 0x553   :  { %8009 = vmatprep.mubr.msk.bf16.mxu1 %vm4521_vm2, %v4720_v20  ;;  %v4211_v15 = vadd.f32 %v8883_v24, %v11724_v45  ;;  %v4401_v41 = vmax.f32 %v4209_v53, 0.0  ;;  %v9875_v53 = vld [vmem:[%s12809_s4 + $0x50] sm:$0xff]  }
 0x554   :  { %5052 = vmatmul.mubr.bf16.gmra.mrb[228].mxu1 %v4583_v58  ;;  %8428 = vmatprep.subr.bf16.mxu1 %v9875_v53 }
 0x555   :  { %v3661_v31 = vpop.f32.mrb[88].mxu0  ;;  %8429 = vmatpush3.bf16.msra.mxu1 %v9875_v53 }
 0x556   :  { %v8884_v36 = vadd.f32 %v3661_v31, %v12996_v30  ;;  %v3663_v60 = vpop.f32.mrb[89].mxu0 }
 0x557   :  { %v8885_v54 = vadd.f32 %v3663_v60, %v12997_v32  ;;  %v3665_v2 = vpop.f32.mrb[90].mxu0 }
 0x558   :  { %v4212_v56 = vadd.f32 %v8884_v36, %v11718_v5  ;;  %v8886_v11 = vadd.f32 %v3665_v2, %v12998_v59  ;;  %v3667_v18 = vpop.f32.mrb[91].mxu0  ;;  %v13003_v36 = vld [vmem:[#allocation52_spill] sm:$0xff] }
 0x559   :  { %v4213_v3 = vadd.f32 %v8885_v54, %v11724_v45  ;;  %v8887_v6 = vadd.f32 %v3667_v18, %v12999_v51  ;;  %v4402_v54 = vmax.f32 %v4210_v33, 0.0  ;;  %v13004_v51 = vld [vmem:[#allocation53_spill] sm:$0xff] }
 0x55a   :  { %v4404_v0 = vmax.f32 %v4212_v56, 0.0  ;;  %v4214_v57 = vadd.f32 %v8886_v11, %v11718_v5 }
 0x55b   :  { %v4405_v14 = vmax.f32 %v4213_v3, 0.0  ;;  %v4215_v28 = vadd.f32 %v8887_v6, %v11724_v45 }
 0x55c   :  { %v4589_v58 = vmax.f32 %v4396_v27, %v4404_v0  ;;  %v4406_v23 = vmax.f32 %v4214_v57, 0.0  ;;  %v4403_v27 = vmax.f32 %v4211_v15, 0.0  ;;  %v13005_v57 = vld [vmem:[#allocation54_spill] sm:$0xff]  ;;  %v13011_v15 = vld [vmem:[#allocation60_spill] sm:$0xff] }
 0x55d   :  { %v4590_v37 = vmax.f32 %v4397_v19, %v4405_v14  ;;  %v4407_v40 = vmax.f32 %v4215_v28, 0.0  ;;  %v3671_v46 = vpop.f32.mrb[92].mxu0  ;;  %v13006_v28 = vld [vmem:[#allocation55_spill] sm:$0xff] }
 0x55e   :  { %v4591_v12 = vmax.f32 %v4398_v44, %v4406_v23  ;;  %v8888_v1 = vadd.f32 %v3671_v46, %v13000_v10  ;;  %v3673_v21 = vpop.f32.mrb[93].mxu0  ;;  %v13008_v10 = vld [vmem:[#allocation57_spill] sm:$0xff] }
 0x55f   :  { %v4592_v61 = vmax.f32 %v4399_v39, %v4407_v40  ;;  %v8889_v55 = vadd.f32 %v3673_v21, %v13001_v50  ;;  %v3675_v13 = vpop.f32.mrb[94].mxu0  ;;  %v13010_v50 = vld [vmem:[#allocation59_spill] sm:$0xff] }
 0x560   :  { %v4597_v20 = vpack.c.bf16 %v4591_v12, %v4589_v58  ;;  %v4216_v35 = vadd.f32 %v8888_v1, %v11718_v5  ;;  %v8890_v31 = vadd.f32 %v3675_v13, %v13002_v25  ;;  %v3677_v48 = vpop.f32.mrb[95].mxu0 }
 0x561   :  { %v4598_v34 = vpack.c.bf16 %v4592_v61, %v4590_v37  ;;  %v4217_v30 = vadd.f32 %v8889_v55, %v11724_v45  ;;  %v8891_v60 = vadd.f32 %v3677_v48, %v13003_v36  ;;  %v13007_v37 = vld [vmem:[#allocation56_spill] sm:$0xff]  ;;  %v13012_v48 = vld [vmem:[#allocation61_spill] sm:$0xff] }
 0x562   :  { %v4408_v32 = vmax.f32 %v4216_v35, 0.0  ;;  %v4218_v47 = vadd.f32 %v8890_v31, %v11718_v5 }
 0x563   :  { %4602 = vst.msk [vmem:[#allocation2 + $0xa8] sm:$0xff] %vm4521_vm2, %v4598_v34  ;;  %v4409_v2 = vmax.f32 %v4217_v30, 0.0  ;;  %v4219_v24 = vadd.f32 %v8891_v60, %v11724_v45  ;;  %v13013_v60 = vld [vmem:[#allocation62_spill] sm:$0xff] }
 0x564   :  { %v4593_v42 = vmax.f32 %v4400_v22, %v4408_v32  ;;  %v4410_v56 = vmax.f32 %v4218_v47, 0.0  ;;  %v13009_v22 = vld [vmem:[#allocation58_spill] sm:$0xff] }
 0x565   :  { %v4594_v59 = vmax.f32 %v4401_v41, %v4409_v2  ;;  %v4411_v11 = vmax.f32 %v4219_v24, 0.0  ;;  %v3681_v18 = vpop.f32.mrb[96].mxu0  ;;  %v13014_v2 = vld [vmem:[#allocation63_spill] sm:$0xff] }
 0x566   :  { %v4595_v3 = vmax.f32 %v4402_v54, %v4410_v56  ;;  %v8892_v6 = vadd.f32 %v3681_v18, %v13004_v51  ;;  %v3683_v19 = vpop.f32.mrb[97].mxu0 }
 0x567   :  { %v4596_v0 = vmax.f32 %v4403_v27, %v4411_v11  ;;  %v8893_v44 = vadd.f32 %v3683_v19, %v13005_v57  ;;  %v3685_v38 = vpop.f32.mrb[98].mxu0 }
 0x568   :  { %v4599_v14 = vpack.c.bf16 %v4595_v3, %v4593_v42  ;;  %v8894_v39 = vadd.f32 %v3685_v38, %v13006_v28  ;;  %v3687_v58 = vpop.f32.mrb[99].mxu0  ;;  %v4220_v31 = vadd.f32 %v8892_v6, %v11718_v5 }
 0x569   :  { %v4600_v23 = vpack.c.bf16 %v4596_v0, %v4594_v59  ;;  %v8895_v40 = vadd.f32 %v3687_v58, %v13007_v37  ;;  %v4221_v36 = vadd.f32 %v8893_v44, %v11724_v45  ;;  %v13015_v59 = vld [vmem:[#allocation64_spill] sm:$0xff] }
 0x56a   :  { %v4722_v46 = vld [vmem:[#allocation2 + $0xa8] sm:$0xff]  ;;  %v4222_v47 = vadd.f32 %v8894_v39, %v11718_v5  ;;  %v4412_v18 = vmax.f32 %v4220_v31, 0.0 }
 0x56b   :  { %4604 = vst.msk [vmem:[#allocation2 + $0xb8] sm:$0xff] %vm4521_vm2, %v4600_v23  ;;  %8010 = vmatprep.mubr.msk.bf16.mxu1 %vm4521_vm2, %v4722_v46  ;;  %v4223_v42 = vadd.f32 %v8895_v40, %v11724_v45  ;;  %v4413_v6 = vmax.f32 %v4221_v36, 0.0  ;;  %v13016_v40 = vld [vmem:[#allocation65_spill] sm:$0xff] }
 0x56c   :  { %5062 = vmatmul.mubr.bf16.gmra.mrb[232].mxu1 %v4597_v20  ;;  %v4414_v57 = vmax.f32 %v4222_v47, 0.0 }
 0x56d   :  { %v3691_v12 = vpop.f32.mrb[100].mxu0 }
 0x56e   :  { %v8896_v1 = vadd.f32 %v3691_v12, %v13008_v10  ;;  %v3693_v21 = vpop.f32.mrb[101].mxu0 }
 0x56f   :  { %v8897_v33 = vadd.f32 %v3693_v21, %v13009_v22  ;;  %v3695_v61 = vpop.f32.mrb[102].mxu0  ;;  %v13017_v21 = vld [vmem:[#allocation66_spill] sm:$0xff] }
 0x570   :  { %v8898_v55 = vadd.f32 %v3695_v61, %v13010_v50  ;;  %v3697_v13 = vpop.f32.mrb[103].mxu0  ;;  %v4224_v23 = vadd.f32 %v8896_v1, %v11718_v5 }
 0x571   :  { %v8899_v35 = vadd.f32 %v3697_v13, %v13011_v15  ;;  %v4225_v12 = vadd.f32 %v8897_v33, %v11724_v45 }
 0x572   :  { %v4724_v25 = vld [vmem:[#allocation2 + $0xb8] sm:$0xff]  ;;  %v4226_v50 = vadd.f32 %v8898_v55, %v11718_v5  ;;  %v4416_v33 = vmax.f32 %v4224_v23, 0.0 }
 0x573   :  { %8011 = vmatprep.mubr.msk.bf16.mxu1 %vm4521_vm2, %v4724_v25  ;;  %v13018_v25 = vld [vmem:[#allocation67_spill] sm:$0xff]  ;;  %v4227_v1 = vadd.f32 %v8899_v35, %v11724_v45 }
 0x574   :  { %5072 = vmatmul.mubr.bf16.gmra.mrb[236].mxu1 %v4599_v14  ;;  %v4415_v14 = vmax.f32 %v4223_v42, 0.0 }
 0x575   :  { %v3701_v20 = vpop.f32.mrb[104].mxu0 }
 0x576   :  { %v8900_v34 = vadd.f32 %v3701_v20, %v13012_v48  ;;  %v3703_v30 = vpop.f32.mrb[105].mxu0 }
 0x577   :  { %v8901_v41 = vadd.f32 %v3703_v30, %v13013_v60  ;;  %v3705_v32 = vpop.f32.mrb[106].mxu0  ;;  %v13019_v30 = vld [vmem:[#allocation68_spill] sm:$0xff] }
 0x578   :  { %v4228_v54 = vadd.f32 %v8900_v34, %v11718_v5  ;;  %v8902_v24 = vadd.f32 %v3705_v32, %v13014_v2  ;;  %v3707_v27 = vpop.f32.mrb[107].mxu0  ;;  %v4417_v32 = vmax.f32 %v4225_v12, 0.0 }
 0x579   :  { %v4229_v56 = vadd.f32 %v8901_v41, %v11724_v45  ;;  %v8903_v11 = vadd.f32 %v3707_v27, %v13015_v59  ;;  %v4419_v27 = vmax.f32 %v4227_v1, 0.0 }
 0x57a   :  { %v4420_v3 = vmax.f32 %v4228_v54, 0.0  ;;  %v4230_v51 = vadd.f32 %v8902_v24, %v11718_v5  ;;  %v4418_v54 = vmax.f32 %v4226_v50, 0.0 }
 0x57b   :  { %v4421_v19 = vmax.f32 %v4229_v56, 0.0  ;;  %v4231_v0 = vadd.f32 %v8903_v11, %v11724_v45  ;;  %v13020_v11 = vld [vmem:[#allocation69_spill] sm:$0xff] }
 0x57c   :  { %v4605_v44 = vmax.f32 %v4412_v18, %v4420_v3  ;;  %v4422_v38 = vmax.f32 %v4230_v51, 0.0 }
 0x57d   :  { %v4606_v28 = vmax.f32 %v4413_v6, %v4421_v19  ;;  %v4423_v39 = vmax.f32 %v4231_v0, 0.0  ;;  %v3711_v58 = vpop.f32.mrb[108].mxu0  ;;  %v13021_v6 = vld [vmem:[#allocation70_spill] sm:$0xff] }
 0x57e   :  { %v4607_v37 = vmax.f32 %v4414_v57, %v4422_v38  ;;  %v8904_v46 = vadd.f32 %v3711_v58, %v13016_v40  ;;  %v3713_v53 = vpop.f32.mrb[109].mxu0 }
 0x57f   :  { %v4608_v10 = vmax.f32 %v4415_v14, %v4423_v39  ;;  %v8905_v22 = vadd.f32 %v3713_v53, %v13017_v21  ;;  %v3715_v61 = vpop.f32.mrb[110].mxu0  ;;  %v13023_v39 = vld [vmem:[#allocation72_spill] sm:$0xff] }
 0x580   :  { %v4613_v13 = vpack.c.bf16 %v4607_v37, %v4605_v44  ;;  %v4232_v15 = vadd.f32 %v8904_v46, %v11718_v5  ;;  %v8906_v20 = vadd.f32 %v3715_v61, %v13018_v25  ;;  %v3717_v31 = vpop.f32.mrb[111].mxu0  ;;  %v13022_v44 = vld [vmem:[#allocation71_spill] sm:$0xff]  ;;  %v13024_v46 = vld [vmem:[#allocation73_spill] sm:$0xff]  ;;  %v13027_v25 = vld [vmem:[#allocation76_spill] sm:$0xff] }
 0x581   :  { %v4614_v48 = vpack.c.bf16 %v4608_v10, %v4606_v28  ;;  %v4233_v34 = vadd.f32 %v8905_v22, %v11724_v45  ;;  %v8907_v36 = vadd.f32 %v3717_v31, %v13019_v30  ;;  %v9876_v37 = vld [vmem:[%s12809_s4 + $0x58] sm:$0xff]   ;;  %v13025_v10 = vld [vmem:[#allocation74_spill] sm:$0xff] }
 0x582   :  { %v4424_v60 = vmax.f32 %v4232_v15, 0.0  ;;  %v4234_v41 = vadd.f32 %v8906_v20, %v11718_v5  ;;  %8430 = vmatprep.subr.bf16.mxu1 %v9876_v37  ;;  %v13026_v61 = vld [vmem:[#allocation75_spill] sm:$0xff] }
 0x583   :  { %4618 = vst.msk [vmem:[#allocation2 + $0xc8] sm:$0xff] %vm4521_vm2, %v4614_v48  ;;  %v4425_v55 = vmax.f32 %v4233_v34, 0.0  ;;  %v4235_v47 = vadd.f32 %v8907_v36, %v11724_v45  ;;  %8431 = vmatpush3.bf16.msra.mxu1 %v9876_v37  ;;  %v13028_v48 = vld [vmem:[#allocation77_spill] sm:$0xff] }
 0x584   :  { %v4609_v2 = vmax.f32 %v4416_v33, %v4424_v60  ;;  %v4426_v24 = vmax.f32 %v4234_v41, 0.0  ;;  %v13029_v33 = vld [vmem:[#allocation78_spill] sm:$0xff] }
 0x585   :  { %v4610_v35 = vmax.f32 %v4417_v32, %v4425_v55  ;;  %v4427_v42 = vmax.f32 %v4235_v47, 0.0  ;;  %v3721_v56 = vpop.f32.mrb[112].mxu0  ;;  %v13030_v47 = vld [vmem:[#allocation79_spill] sm:$0xff] }
 0x586   :  { %v4611_v59 = vmax.f32 %v4418_v54, %v4426_v24  ;;  %v8908_v18 = vadd.f32 %v3721_v56, %v13020_v11  ;;  %v3723_v3 = vpop.f32.mrb[113].mxu0 }
 0x587   :  { %v4612_v51 = vmax.f32 %v4419_v27, %v4427_v42  ;;  %v8909_v19 = vadd.f32 %v3723_v3, %v13021_v6  ;;  %v3725_v0 = vpop.f32.mrb[114].mxu0 }
 0x588   :  { %v4615_v57 = vpack.c.bf16 %v4611_v59, %v4609_v2  ;;  %v8910_v38 = vadd.f32 %v3725_v0, %v13022_v44  ;;  %v3727_v14 = vpop.f32.mrb[115].mxu0 }
 0x589   :  { %v4616_v28 = vpack.c.bf16 %v4612_v51, %v4610_v35  ;;  %v8911_v58 = vadd.f32 %v3727_v14, %v13023_v39  ;;  %v4237_v36 = vadd.f32 %v8909_v19, %v11724_v45  ;;  %v13031_v35 = vld [vmem:[#allocation80_spill] sm:$0xff] }
 0x58a   :  { %v4726_v23 = vld [vmem:[#allocation2 + $0xc8] sm:$0xff]  ;;  %v4238_v32 = vadd.f32 %v8910_v38, %v11718_v5 }
 0x58b   :  { %4620 = vst.msk [vmem:[#allocation2 + $0xd8] sm:$0xff] %vm4521_vm2, %v4616_v28  ;;  %8012 = vmatprep.mubr.msk.bf16.mxu1 %vm4521_vm2, %v4726_v23  ;;  %v4239_v24 = vadd.f32 %v8911_v58, %v11724_v45  ;;  %v13032_v58 = vld [vmem:[#allocation81_spill] sm:$0xff] }
 0x58c   :  { %5082 = vmatmul.mubr.bf16.gmra.mrb[240].mxu1 %v4613_v13  ;;  %v4236_v13 = vadd.f32 %v8908_v18, %v11718_v5  ;;  %v4429_v18 = vmax.f32 %v4237_v36, 0.0  ;;  %v4430_v6 = vmax.f32 %v4238_v32, 0.0  ;;  %v13035_v36 = vld [vmem:[#allocation84_spill] sm:$0xff] }
 0x58d   :  { %v3731_v40 = vpop.f32.mrb[116].mxu0 }
 0x58e   :  { %v8912_v53 = vadd.f32 %v3731_v40, %v13024_v46  ;;  %v3733_v12 = vpop.f32.mrb[117].mxu0  ;;  %v4428_v56 = vmax.f32 %v4236_v13, 0.0 }
 0x58f   :  { %v8913_v21 = vadd.f32 %v3733_v12, %v13025_v10  ;;  %v3735_v22 = vpop.f32.mrb[118].mxu0  ;;  %v13033_v10 = vld [vmem:[#allocation82_spill] sm:$0xff] }
 0x590   :  { %v8914_v50 = vadd.f32 %v3735_v22, %v13026_v61  ;;  %v3737_v15 = vpop.f32.mrb[119].mxu0  ;;  %v4240_v28 = vadd.f32 %v8912_v53, %v11718_v5  ;;  %v13034_v53 = vld [vmem:[#allocation83_spill] sm:$0xff] }
 0x591   :  { %v8915_v20 = vadd.f32 %v3737_v15, %v13027_v25  ;;  %v4241_v40 = vadd.f32 %v8913_v21, %v11724_v45 }
 0x592   :  { %v4728_v31 = vld [vmem:[#allocation2 + $0xd8] sm:$0xff]  ;;  %v4242_v46 = vadd.f32 %v8914_v50, %v11718_v5 }
 0x593   :  { %8013 = vmatprep.mubr.msk.bf16.mxu1 %vm4521_vm2, %v4728_v31  ;;  %v4243_v25 = vadd.f32 %v8915_v20, %v11724_v45 }
 0x594   :  { %5092 = vmatmul.mubr.bf16.gmra.mrb[244].mxu1 %v4615_v57  ;;  %v4431_v57 = vmax.f32 %v4239_v24, 0.0 }
 0x595   :  { %v3741_v1 = vpop.f32.mrb[120].mxu0 }
 0x596   :  { %v8916_v34 = vadd.f32 %v3741_v1, %v13028_v48  ;;  %v3743_v30 = vpop.f32.mrb[121].mxu0 }
 0x597   :  { %v8917_v60 = vadd.f32 %v3743_v30, %v13029_v33  ;;  %v3745_v41 = vpop.f32.mrb[122].mxu0 }
 0x598   :  { %v4244_v55 = vadd.f32 %v8916_v34, %v11718_v5  ;;  %v8918_v54 = vadd.f32 %v3745_v41, %v13030_v47  ;;  %v3747_v2 = vpop.f32.mrb[123].mxu0  ;;  %v4432_v41 = vmax.f32 %v4240_v28, 0.0  ;;  %v9877_v47 = vld [vmem:[%s12809_s4 + $0x60] sm:$0xff]  }
 0x599   :  { %v4245_v27 = vadd.f32 %v8917_v60, %v11724_v45  ;;  %v8919_v42 = vadd.f32 %v3747_v2, %v13031_v35  ;;  %v4434_v35 = vmax.f32 %v4242_v46, 0.0  ;;  %8432 = vmatprep.subr.bf16.mxu1 %v9877_v47 }
 0x59a   :  { %v4436_v59 = vmax.f32 %v4244_v55, 0.0  ;;  %v4246_v11 = vadd.f32 %v8918_v54, %v11718_v5  ;;  %v4433_v54 = vmax.f32 %v4241_v40, 0.0  ;;  %8433 = vmatpush3.bf16.msra.mxu1 %v9877_v47 }
 0x59b   :  { %v4437_v3 = vmax.f32 %v4245_v27, 0.0  ;;  %v4247_v51 = vadd.f32 %v8919_v42, %v11724_v45 }
 0x59c   :  { %v12132_v19 = vmax.f32 %v4428_v56, %v4436_v59  ;;  %v4438_v0 = vmax.f32 %v4246_v11, 0.0  ;;  %v4435_v59 = vmax.f32 %v4243_v25, 0.0 }
 0x59d   :  { %v4622_v44 = vmax.f32 %v4429_v18, %v4437_v3  ;;  %v4439_v38 = vmax.f32 %v4247_v51, 0.0  ;;  %v3751_v14 = vpop.f32.mrb[124].mxu0 }
 0x59e   :  { %v4623_v39 = vmax.f32 %v4430_v6, %v4438_v0  ;;  %v8920_v23 = vadd.f32 %v3751_v14, %v13032_v58  ;;  %v3753_v37 = vpop.f32.mrb[125].mxu0 }
 0x59f   :  { %v4624_v12 = vmax.f32 %v4431_v57, %v4439_v38  ;;  %v8921_v22 = vadd.f32 %v3753_v37, %v13033_v10  ;;  %v3755_v61 = vpop.f32.mrb[126].mxu0  ;;  %v4963_v15 = vpop.f32.mrb[192].mxu1  ;;  %v13037_v38 = vld [vmem:[#allocation86_spill] sm:$0xff]  ;;  %v13039_v10 = vld [vmem:[#allocation88_spill] sm:$0xff] }
 0x5a0   :  { %v4629_v31 = vpack.c.bf16 %v4623_v39, %v12132_v19  ;;  %v4248_v1 = vadd.f32 %v8920_v23, %v11718_v5  ;;  %v8922_v13 = vadd.f32 %v3755_v61, %v13034_v53  ;;  %v3757_v48 = vpop.f32.mrb[127].mxu0  ;;  %v4965_v34 = vpop.f32.mrb[193].mxu1  ;;  %v13036_v19 = vld [vmem:[#allocation85_spill] sm:$0xff]  ;;  %v13038_v23 = vld [vmem:[#allocation87_spill] sm:$0xff] }
 0x5a1   :  { %v4630_v30 = vpack.c.bf16 %v4624_v12, %v4622_v44  ;;  %v4249_v21 = vadd.f32 %v8921_v22, %v11724_v45  ;;  %v8923_v50 = vadd.f32 %v3757_v48, %v13035_v36  ;;  %v5202_v33 = vmax.f32 %v4963_v15, %v4965_v34  ;;  %v4967_v60 = vpop.f32.mrb[194].mxu1  ;;  %v9878_v34 = vld [vmem:[%s12809_s4 + $0x68] sm:$0xff]  }
 0x5a2   :  { %v4440_v32 = vmax.f32 %v4248_v1, 0.0  ;;  %v4250_v55 = vadd.f32 %v8922_v13, %v11718_v5  ;;  %v4969_v20 = vpop.f32.mrb[195].mxu1  ;;  %8434 = vmatprep.subr.bf16.mxu1 %v9878_v34 }
 0x5a3   :  { %4634 = vst.msk [vmem:[#allocation2 + $0xe8] sm:$0xff] %vm4521_vm2, %v4630_v30  ;;  %v4441_v2 = vmax.f32 %v4249_v21, 0.0  ;;  %v4251_v24 = vadd.f32 %v8923_v50, %v11724_v45  ;;  %v5203_v27 = vmax.f32 %v4967_v60, %v4969_v20  ;;  %v13040_v30 = vld [vmem:[#allocation89_spill] sm:$0xff]  ;;  %v13041_v50 = vld [vmem:[#allocation90_spill] sm:$0xff]  ;;  %8435 = vmatpush3.bf16.msra.mxu1 %v9878_v34  ;;  %v13043_v20 = vld [vmem:[#allocation92_spill] sm:$0xff] }
 0x5a4   :  { %v4625_v42 = vmax.f32 %v4432_v41, %v4440_v32  ;;  %v4442_v56 = vmax.f32 %v4250_v55, 0.0  ;;  %v13042_v41 = vld [vmem:[#allocation91_spill] sm:$0xff] }
 0x5a5   :  { %v4626_v11 = vmax.f32 %v4433_v54, %v4441_v2  ;;  %v4443_v18 = vmax.f32 %v4251_v24, 0.0  ;;  %v12151_v3 = vpack.c.bf16 %v5203_v27, %v5202_v33  ;;  %v3761_v51 = vpop.f32.mrb[128].mxu0  ;;  %v9879_v54 = vld [vmem:[%s12809_s4 + $0x70] sm:$0xff]   ;;  %v9880_v24 = vld [vmem:[%s12809_s4 + $0x78] sm:$0xff]  }
 0x5a6   :  { %v4627_v6 = vmax.f32 %v4434_v35, %v4442_v56  ;;  %v8924_v0 = vadd.f32 %v3761_v51, %v13036_v19  ;;  %v3763_v57 = vpop.f32.mrb[129].mxu0  ;;  %8436 = vmatprep.subr.bf16.mxu1 %v9879_v54  ;;  %v13044_v35 = vld [vmem:[#allocation93_spill] sm:$0xff] }
 0x5a7   :  { %v4628_v44 = vmax.f32 %v4435_v59, %v4443_v18  ;;  %v8925_v14 = vadd.f32 %v3763_v57, %v13037_v38  ;;  %v3765_v28 = vpop.f32.mrb[130].mxu0  ;;  %v4973_v39 = vpop.f32.mrb[196].mxu1  ;;  %8437 = vmatpush3.bf16.msra.mxu1 %v9879_v54  ;;  %v13046_v57 = vld [vmem:[#allocation95_spill] sm:$0xff] }
 0x5a8   :  { %v4631_v58 = vpack.c.bf16 %v4627_v6, %v4625_v42  ;;  %v8926_v37 = vadd.f32 %v3765_v28, %v13038_v23  ;;  %v3767_v40 = vpop.f32.mrb[131].mxu0  ;;  %v4975_v46 = vpop.f32.mrb[197].mxu1  ;;  %v4252_v27 = vadd.f32 %v8924_v0, %v11718_v5  ;;  %8438 = vmatprep.subr.bf16.mxu1 %v9880_v24 }
 0x5a9   :  { %v4632_v12 = vpack.c.bf16 %v4628_v44, %v4626_v11  ;;  %v8927_v22 = vadd.f32 %v3767_v40, %v13039_v10  ;;  %v5204_v61 = vmax.f32 %v4973_v39, %v4975_v46  ;;  %v4977_v15 = vpop.f32.mrb[198].mxu1  ;;  %v4253_v59 = vadd.f32 %v8925_v14, %v11724_v45  ;;  %v13045_v11 = vld [vmem:[#allocation94_spill] sm:$0xff]  ;;  %v13047_v39 = vld [vmem:[#allocation96_spill] sm:$0xff] }
 0x5aa   :  { %v4979_v25 = vpop.f32.mrb[199].mxu1  ;;  %v4730_v1 = vld [vmem:[#allocation2 + $0xe8] sm:$0xff]  ;;  %v4254_v6 = vadd.f32 %v8926_v37, %v11718_v5  ;;  %v4444_v23 = vmax.f32 %v4252_v27, 0.0 }
 0x5ab   :  { %4636 = vst.msk [vmem:[#allocation2 + $0xf8] sm:$0xff] %vm4521_vm2, %v4632_v12  ;;  %v5205_v53 = vmax.f32 %v4977_v15, %v4979_v25  ;;  %8014 = vmatprep.mubr.msk.bf16.mxu1 %vm4521_vm2, %v4730_v1  ;;  %v4255_v28 = vadd.f32 %v8927_v22, %v11724_v45  ;;  %8439 = vmatpush3.bf16.msra.mxu1 %v9880_v24  ;;  %v4445_v46 = vmax.f32 %v4253_v59, 0.0 }
 0x5ac   :  { %5102 = vmatmul.mubr.bf16.gmra.mrb[248].mxu1 %v4629_v31  ;;  %v4446_v10 = vmax.f32 %v4254_v6, 0.0 }
 0x5ad   :  { %v12159_v13 = vpack.c.bf16 %v5205_v53, %v5204_v61  ;;  %v3771_v48 = vpop.f32.mrb[132].mxu0  ;;  %v4447_v25 = vmax.f32 %v4255_v28, 0.0 }
 0x5ae   :  { %v8928_v21 = vadd.f32 %v3771_v48, %v13040_v30  ;;  %v3773_v36 = vpop.f32.mrb[133].mxu0  ;;  %v13048_v30 = vld [vmem:[#allocation97_spill] sm:$0xff] }
 0x5af   :  { %v8929_v33 = vadd.f32 %v3773_v36, %v13041_v50  ;;  %v3775_v60 = vpop.f32.mrb[134].mxu0 }
 0x5b0   :  { %v8930_v32 = vadd.f32 %v3775_v60, %v13042_v41  ;;  %v3777_v55 = vpop.f32.mrb[135].mxu0  ;;  %v4256_v48 = vadd.f32 %v8928_v21, %v11718_v5  ;;  %v13050_v21 = vld [vmem:[#allocation99_spill] sm:$0xff] }
 0x5b1   :  { %v8931_v31 = vadd.f32 %v3777_v55, %v13043_v20  ;;  %v4257_v60 = vadd.f32 %v8929_v33, %v11724_v45  ;;  %v13049_v20 = vld [vmem:[#allocation98_spill] sm:$0xff] }
 0x5b2   :  { %v4732_v47 = vld [vmem:[#allocation2 + $0xf8] sm:$0xff]  ;;  %v4258_v41 = vadd.f32 %v8930_v32, %v11718_v5 }
 0x5b3   :  { %8015 = vmatprep.mubr.msk.bf16.mxu1 %vm4521_vm2, %v4732_v47  ;;  %v4259_v24 = vadd.f32 %v8931_v31, %v11724_v45 }
 0x5b4   :  { %5112 = vmatmul.mubr.bf16.gmra.mrb[252].mxu1 %v4631_v58 }
 0x5b5   :  { %v3781_v2 = vpop.f32.mrb[136].mxu0 }
 0x5b6   :  { %v8932_v42 = vadd.f32 %v3781_v2, %v13044_v35  ;;  %v3783_v56 = vpop.f32.mrb[137].mxu0 }
 0x5b7   :  { %v8933_v18 = vadd.f32 %v3783_v56, %v13045_v11  ;;  %v3785_v51 = vpop.f32.mrb[138].mxu0 }
 0x5b8   :  { %v4260_v19 = vadd.f32 %v8932_v42, %v11718_v5  ;;  %v8934_v44 = vadd.f32 %v3785_v51, %v13046_v57  ;;  %v3787_v38 = vpop.f32.mrb[139].mxu0 }
 0x5b9   :  { %v4261_v0 = vadd.f32 %v8933_v18, %v11724_v45  ;;  %v8935_v58 = vadd.f32 %v3787_v38, %v13047_v39  ;;  %v13051_v18 = vld [vmem:[#allocation100_spill] sm:$0xff]  ;;  %v4449_v38 = vmax.f32 %v4257_v60, 0.0 }
 0x5ba   :  { %v4452_v14 = vmax.f32 %v4260_v19, 0.0  ;;  %v4262_v40 = vadd.f32 %v8934_v44, %v11718_v5  ;;  %v4448_v19 = vmax.f32 %v4256_v48, 0.0 }
 0x5bb   :  { %v4453_v12 = vmax.f32 %v4261_v0, 0.0  ;;  %v4263_v37 = vadd.f32 %v8935_v58, %v11724_v45  ;;  %v4450_v58 = vmax.f32 %v4258_v41, 0.0 }
 0x5bc   :  { %v12187_v61 = vmax.f32 %v4444_v23, %v4452_v14  ;;  %v4454_v15 = vmax.f32 %v4262_v40, 0.0  ;;  %v4451_v40 = vmax.f32 %v4259_v24, 0.0 }
 0x5bd   :  { %v4638_v1 = vmax.f32 %v4445_v46, %v4453_v12  ;;  %v4455_v22 = vmax.f32 %v4263_v37, 0.0  ;;  %v3791_v53 = vpop.f32.mrb[140].mxu0 }
 0x5be   :  { %v4639_v34 = vmax.f32 %v4446_v10, %v4454_v15  ;;  %v8936_v36 = vadd.f32 %v3791_v53, %v13048_v30  ;;  %v3793_v50 = vpop.f32.mrb[141].mxu0  ;;  %v13052_v15 = vld [vmem:[#allocation101_spill] sm:$0xff]  ;;  %v13053_v53 = vld [vmem:[#allocation102_spill] sm:$0xff] }
 0x5bf   :  { %v4640_v55 = vmax.f32 %v4447_v25, %v4455_v22  ;;  %v8937_v47 = vadd.f32 %v3793_v50, %v13049_v20  ;;  %v3795_v54 = vpop.f32.mrb[142].mxu0  ;;  %v4983_v2 = vpop.f32.mrb[200].mxu1  ;;  %v13054_v50 = vld [vmem:[#allocation103_spill] sm:$0xff] }
 0x5c0   :  { %v4645_v27 = vpack.c.bf16 %v4639_v34, %v12187_v61  ;;  %v4264_v35 = vadd.f32 %v8936_v36, %v11718_v5  ;;  %v8938_v42 = vadd.f32 %v3795_v54, %v13050_v21  ;;  %v3797_v56 = vpop.f32.mrb[143].mxu0  ;;  %v4985_v59 = vpop.f32.mrb[201].mxu1 }
 0x5c1   :  { %v4646_v11 = vpack.c.bf16 %v4640_v55, %v4638_v1  ;;  %v4265_v33 = vadd.f32 %v8937_v47, %v11724_v45  ;;  %v8939_v32 = vadd.f32 %v3797_v56, %v13051_v18  ;;  %v5206_v51 = vmax.f32 %v4983_v2, %v4985_v59  ;;  %v4987_v6 = vpop.f32.mrb[202].mxu1  ;;  %v13055_v47 = vld [vmem:[#allocation104_spill] sm:$0xff] }
 0x5c2   :  { %v4456_v57 = vmax.f32 %v4264_v35, 0.0  ;;  %v4266_v44 = vadd.f32 %v8938_v42, %v11718_v5  ;;  %v4989_v31 = vpop.f32.mrb[203].mxu1 }
 0x5c3   :  { %4650 = vst.msk [vmem:[#allocation2 + $0x108] sm:$0xff] %vm4521_vm2, %v4646_v11  ;;  %v4457_v28 = vmax.f32 %v4265_v33, 0.0  ;;  %v4267_v0 = vadd.f32 %v8939_v32, %v11724_v45  ;;  %v5207_v39 = vmax.f32 %v4987_v6, %v4989_v31  ;;  %v13056_v11 = vld [vmem:[#allocation105_spill] sm:$0xff]  ;;  %v13057_v32 = vld [vmem:[#allocation106_spill] sm:$0xff]  ;;  %v13059_v31 = vld [vmem:[#allocation108_spill] sm:$0xff] }
 0x5c4   :  { %v4641_v23 = vmax.f32 %v4448_v19, %v4456_v57  ;;  %v4458_v14 = vmax.f32 %v4266_v44, 0.0  ;;  %v13058_v19 = vld [vmem:[#allocation107_spill] sm:$0xff] }
 0x5c5   :  { %v4642_v46 = vmax.f32 %v4449_v38, %v4457_v28  ;;  %v4459_v12 = vmax.f32 %v4267_v0, 0.0  ;;  %v12203_v37 = vpack.c.bf16 %v5207_v39, %v5206_v51  ;;  %v3801_v10 = vpop.f32.mrb[144].mxu0  ;;  %v13060_v39 = vld [vmem:[#allocation109_spill] sm:$0xff] }
 0x5c6   :  { %v4643_v61 = vmax.f32 %v4450_v58, %v4458_v14  ;;  %v8940_v25 = vadd.f32 %v3801_v10, %v13052_v15  ;;  %v3803_v1 = vpop.f32.mrb[145].mxu0  ;;  %v13062_v15 = vld [vmem:[#allocation111_spill] sm:$0xff] }
 0x5c7   :  { %v4644_v22 = vmax.f32 %v4451_v40, %v4459_v12  ;;  %v8941_v48 = vadd.f32 %v3803_v1, %v13053_v53  ;;  %v3805_v34 = vpop.f32.mrb[146].mxu0  ;;  %v4993_v30 = vpop.f32.mrb[204].mxu1  ;;  %v13061_v40 = vld [vmem:[#allocation110_spill] sm:$0xff] }
 0x5c8   :  { %v4647_v36 = vpack.c.bf16 %v4643_v61, %v4641_v23  ;;  %v8942_v60 = vadd.f32 %v3805_v34, %v13054_v50  ;;  %v3807_v41 = vpop.f32.mrb[147].mxu0  ;;  %v4995_v55 = vpop.f32.mrb[205].mxu1 }
 0x5c9   :  { %v4648_v20 = vpack.c.bf16 %v4644_v22, %v4642_v46  ;;  %v8943_v54 = vadd.f32 %v3807_v41, %v13055_v47  ;;  %v5208_v2 = vmax.f32 %v4993_v30, %v4995_v55  ;;  %v4997_v24 = vpop.f32.mrb[206].mxu1  ;;  %v4269_v14 = vadd.f32 %v8941_v48, %v11724_v45 }
 0x5ca   :  { %v4999_v35 = vpop.f32.mrb[207].mxu1  ;;  %v4734_v21 = vld [vmem:[#allocation2 + $0x108] sm:$0xff]  ;;  %v4270_v10 = vadd.f32 %v8942_v60, %v11718_v5 }
 0x5cb   :  { %4652 = vst.msk [vmem:[#allocation2 + $0x118] sm:$0xff] %vm4521_vm2, %v4648_v20  ;;  %v5209_v42 = vmax.f32 %v4997_v24, %v4999_v35  ;;  %8016 = vmatprep.mubr.msk.bf16.mxu1 %vm4521_vm2, %v4734_v21  ;;  %v4271_v53 = vadd.f32 %v8943_v54, %v11724_v45  ;;  %v4461_v41 = vmax.f32 %v4269_v14, 0.0 }
 0x5cc   :  { %5122 = vmatmul.mubr.bf16.gmra.mrb[0].mxu1 %v4645_v27  ;;  %v4268_v27 = vadd.f32 %v8940_v25, %v11718_v5  ;;  %v13063_v25 = vld [vmem:[#allocation112_spill] sm:$0xff]  ;;  %v4462_v60 = vmax.f32 %v4270_v10, 0.0 }
 0x5cd   :  { %v12211_v56 = vpack.c.bf16 %v5209_v42, %v5208_v2  ;;  %v3811_v59 = vpop.f32.mrb[148].mxu0  ;;  %v4463_v24 = vmax.f32 %v4271_v53, 0.0  ;;  %v13067_v10 = vld [vmem:[#allocation116_spill] sm:$0xff] }
 0x5ce   :  { %v8944_v33 = vadd.f32 %v3811_v59, %v13056_v11  ;;  %v3813_v18 = vpop.f32.mrb[149].mxu0  ;;  %v13064_v11 = vld [vmem:[#allocation113_spill] sm:$0xff] }
 0x5cf   :  { %v8945_v51 = vadd.f32 %v3813_v18, %v13057_v32  ;;  %v3815_v6 = vpop.f32.mrb[150].mxu0 }
 0x5d0   :  { %v8946_v57 = vadd.f32 %v3815_v6, %v13058_v19  ;;  %v3817_v44 = vpop.f32.mrb[151].mxu0  ;;  %v4272_v42 = vadd.f32 %v8944_v33, %v11718_v5  ;;  %v13066_v33 = vld [vmem:[#allocation115_spill] sm:$0xff] }
 0x5d1   :  { %v8947_v38 = vadd.f32 %v3817_v44, %v13059_v31  ;;  %v4273_v6 = vadd.f32 %v8945_v51, %v11724_v45  ;;  %v13065_v31 = vld [vmem:[#allocation114_spill] sm:$0xff] }
 0x5d2   :  { %v4736_v28 = vld [vmem:[#allocation2 + $0x118] sm:$0xff]  ;;  %v4274_v19 = vadd.f32 %v8946_v57, %v11718_v5 }
 0x5d3   :  { %8017 = vmatprep.mubr.msk.bf16.mxu1 %vm4521_vm2, %v4736_v28 }
 0x5d4   :  { %5132 = vmatmul.mubr.bf16.gmra.mrb[4].mxu1 %v4647_v36  ;;  %v4460_v36 = vmax.f32 %v4268_v27, 0.0 }
 0x5d5   :  { %v3821_v0 = vpop.f32.mrb[152].mxu0 }
 0x5d6   :  { %v8948_v58 = vadd.f32 %v3821_v0, %v13060_v39  ;;  %v3823_v23 = vpop.f32.mrb[153].mxu0  ;;  %v4275_v39 = vadd.f32 %v8947_v38, %v11724_v45 }
 0x5d7   :  { %v8949_v46 = vadd.f32 %v3823_v23, %v13061_v40  ;;  %v3825_v12 = vpop.f32.mrb[154].mxu0 }
 0x5d8   :  { %v4276_v61 = vadd.f32 %v8948_v58, %v11718_v5  ;;  %v8950_v1 = vadd.f32 %v3825_v12, %v13062_v15  ;;  %v3827_v22 = vpop.f32.mrb[155].mxu0 }
 0x5d9   :  { %v4277_v34 = vadd.f32 %v8949_v46, %v11724_v45  ;;  %v8951_v30 = vadd.f32 %v3827_v22, %v13063_v25 }
 0x5da   :  { %v4468_v50 = vmax.f32 %v4276_v61, 0.0  ;;  %v4278_v48 = vadd.f32 %v8950_v1, %v11718_v5  ;;  %v4464_v1 = vmax.f32 %v4272_v42, 0.0 }
 0x5db   :  { %v4469_v55 = vmax.f32 %v4277_v34, 0.0  ;;  %v4279_v20 = vadd.f32 %v8951_v30, %v11724_v45  ;;  %v4465_v34 = vmax.f32 %v4273_v6, 0.0 }
 0x5dc   :  { %v12230_v47 = vmax.f32 %v4460_v36, %v4468_v50  ;;  %v4470_v2 = vmax.f32 %v4278_v48, 0.0  ;;  %v4466_v50 = vmax.f32 %v4274_v19, 0.0 }
 0x5dd   :  { %v4654_v35 = vmax.f32 %v4461_v41, %v4469_v55  ;;  %v4471_v21 = vmax.f32 %v4279_v20, 0.0  ;;  %v3831_v54 = vpop.f32.mrb[156].mxu0  ;;  %v4467_v55 = vmax.f32 %v4275_v39, 0.0 }
 0x5de   :  { %v4655_v59 = vmax.f32 %v4462_v60, %v4470_v2  ;;  %v8952_v18 = vadd.f32 %v3831_v54, %v13064_v11  ;;  %v3833_v32 = vpop.f32.mrb[157].mxu0 }
 0x5df   :  { %v4656_v44 = vmax.f32 %v4463_v24, %v4471_v21  ;;  %v8953_v28 = vadd.f32 %v3833_v32, %v13065_v31  ;;  %v3835_v0 = vpop.f32.mrb[158].mxu0  ;;  %v5003_v27 = vpop.f32.mrb[208].mxu1 }
 0x5e0   :  { %v4661_v58 = vpack.c.bf16 %v4655_v59, %v12230_v47  ;;  %v4280_v23 = vadd.f32 %v8952_v18, %v11718_v5  ;;  %v8954_v14 = vadd.f32 %v3835_v0, %v13066_v33  ;;  %v3837_v40 = vpop.f32.mrb[159].mxu0  ;;  %v5005_v46 = vpop.f32.mrb[209].mxu1  ;;  %v13069_v59 = vld [vmem:[#allocation118_spill] sm:$0xff] }
 0x5e1   :  { %v4662_v12 = vpack.c.bf16 %v4656_v44, %v4654_v35  ;;  %v4281_v51 = vadd.f32 %v8953_v28, %v11724_v45  ;;  %v8955_v57 = vadd.f32 %v3837_v40, %v13067_v10  ;;  %v5210_v61 = vmax.f32 %v5003_v27, %v5005_v46  ;;  %v5007_v15 = vpop.f32.mrb[210].mxu1  ;;  %v13068_v35 = vld [vmem:[#allocation117_spill] sm:$0xff]  ;;  %v13070_v44 = vld [vmem:[#allocation119_spill] sm:$0xff]  ;;  %v13071_v27 = vld [vmem:[#allocation120_spill] sm:$0xff] }
 0x5e2   :  { %v4472_v22 = vmax.f32 %v4280_v23, 0.0  ;;  %v4282_v53 = vadd.f32 %v8954_v14, %v11718_v5  ;;  %v5009_v38 = vpop.f32.mrb[211].mxu1  ;;  %v13072_v10 = vld [vmem:[#allocation121_spill] sm:$0xff] }
 0x5e3   :  { %4666 = vst.msk [vmem:[#allocation2 + $0x128] sm:$0xff] %vm4521_vm2, %v4662_v12  ;;  %v4473_v25 = vmax.f32 %v4281_v51, 0.0  ;;  %v4283_v30 = vadd.f32 %v8955_v57, %v11724_v45  ;;  %v5211_v36 = vmax.f32 %v5007_v15, %v5009_v38  ;;  %v13073_v15 = vld [vmem:[#allocation122_spill] sm:$0xff]  ;;  %v13074_v38 = vld [vmem:[#allocation123_spill] sm:$0xff] }
 0x5e4   :  { %v4657_v48 = vmax.f32 %v4464_v1, %v4472_v22  ;;  %v4474_v41 = vmax.f32 %v4282_v53, 0.0  ;;  %v12261_v53 = vld [vmem:[%s12809_s4] sm:$0xff]  }
 0x5e5   :  { %v4658_v20 = vmax.f32 %v4465_v34, %v4473_v25  ;;  %v4475_v60 = vmax.f32 %v4283_v30, 0.0  ;;  %v12246_v47 = vpack.c.bf16 %v5211_v36, %v5210_v61  ;;  %v3841_v2 = vpop.f32.mrb[160].mxu0  ;;  %v13075_v30 = vld [vmem:[#allocation124_spill] sm:$0xff]  ;;  %8472 = vmatprep.subr.bf16.mxu1 %v12261_v53 }
 0x5e6   :  { %v4659_v24 = vmax.f32 %v4466_v50, %v4474_v41  ;;  %v8956_v21 = vadd.f32 %v3841_v2, %v13068_v35  ;;  %v3843_v54 = vpop.f32.mrb[161].mxu0  ;;  %v13076_v41 = vld [vmem:[#allocation125_spill] sm:$0xff]  ;;  %v13077_v2 = vld [vmem:[#allocation126_spill] sm:$0xff] }
 0x5e7   :  { %v4660_v42 = vmax.f32 %v4467_v55, %v4475_v60  ;;  %v8957_v11 = vadd.f32 %v3843_v54, %v13069_v59  ;;  %v3845_v18 = vpop.f32.mrb[162].mxu0  ;;  %v5013_v32 = vpop.f32.mrb[212].mxu1  ;;  %v13078_v59 = vld [vmem:[#allocation127_spill] sm:$0xff] }
 0x5e8   :  { %v4663_v6 = vpack.c.bf16 %v4659_v24, %v4657_v48  ;;  %v8958_v19 = vadd.f32 %v3845_v18, %v13070_v44  ;;  %v3847_v31 = vpop.f32.mrb[163].mxu0  ;;  %v5015_v28 = vpop.f32.mrb[213].mxu1  ;;  %v4284_v48 = vadd.f32 %v8956_v21, %v11718_v5  ;;  %v13079_v21 = vld [vmem:[#allocation128_spill] sm:$0xff] }
 0x5e9   :  { %v4664_v0 = vpack.c.bf16 %v4660_v42, %v4658_v20  ;;  %v8959_v39 = vadd.f32 %v3847_v31, %v13071_v27  ;;  %v5212_v23 = vmax.f32 %v5013_v32, %v5015_v28  ;;  %v5017_v33 = vpop.f32.mrb[214].mxu1  ;;  %v4285_v60 = vadd.f32 %v8957_v11, %v11724_v45 }
 0x5ea   :  { %v5019_v14 = vpop.f32.mrb[215].mxu1  ;;  %v4738_v40 = vld [vmem:[#allocation2 + $0x128] sm:$0xff]  ;;  %v4286_v54 = vadd.f32 %v8958_v19, %v11718_v5  ;;  %v4476_v28 = vmax.f32 %v4284_v48, 0.0  ;;  %v13081_v48 = vld [vmem:[#allocation130_spill] sm:$0xff] }
 0x5eb   :  { %4668 = vst.msk [vmem:[#allocation2 + $0x138] sm:$0xff] %vm4521_vm2, %v4664_v0  ;;  %v5213_v46 = vmax.f32 %v5017_v33, %v5019_v14  ;;  %8018 = vmatprep.mubr.msk.bf16.mxu1 %vm4521_vm2, %v4738_v40  ;;  %v4477_v27 = vmax.f32 %v4285_v60, 0.0 }
 0x5ec   :  { %5142 = vmatmul.mubr.bf16.gmra.mrb[8].mxu1 %v4661_v58  ;;  %v4478_v19 = vmax.f32 %v4286_v54, 0.0 }
 0x5ed   :  { %v12254_v12 = vpack.c.bf16 %v5213_v46, %v5212_v23  ;;  %v3851_v51 = vpop.f32.mrb[164].mxu0 }
 0x5ee   :  { %v8960_v57 = vadd.f32 %v3851_v51, %v13072_v10  ;;  %v3853_v61 = vpop.f32.mrb[165].mxu0 }
 0x5ef   :  { %v8961_v1 = vadd.f32 %v3853_v61, %v13073_v15  ;;  %v3855_v22 = vpop.f32.mrb[166].mxu0 }
 0x5f0   :  { %v8962_v34 = vadd.f32 %v3855_v22, %v13074_v38  ;;  %v3857_v25 = vpop.f32.mrb[167].mxu0  ;;  %v4288_v61 = vadd.f32 %v8960_v57, %v11718_v5  ;;  %v13080_v22 = vld [vmem:[#allocation129_spill] sm:$0xff]  ;;  %v13082_v57 = vld [vmem:[#allocation131_spill] sm:$0xff] }
 0x5f1   :  { %v8963_v36 = vadd.f32 %v3857_v25, %v13075_v30  ;;  %v4289_v30 = vadd.f32 %v8961_v1, %v11724_v45 }
 0x5f2   :  { %v4740_v58 = vld [vmem:[#allocation2 + $0x138] sm:$0xff] }
 0x5f3   :  { %8019 = vmatprep.mubr.msk.bf16.mxu1 %vm4521_vm2, %v4740_v58  ;;  %v4290_v58 = vadd.f32 %v8962_v34, %v11718_v5  ;;  %v4291_v60 = vadd.f32 %v8963_v36, %v11724_v45 }
 0x5f4   :  { %5152 = vmatmul.mubr.bf16.gmra.mrb[12].mxu1 %v4663_v6  ;;  %v4287_v6 = vadd.f32 %v8959_v39, %v11724_v45 }
 0x5f5   :  { %v3861_v50 = vpop.f32.mrb[168].mxu0 }
 0x5f6   :  { %v8964_v55 = vadd.f32 %v3861_v50, %v13076_v41  ;;  %v3863_v20 = vpop.f32.mrb[169].mxu0  ;;  %v4479_v46 = vmax.f32 %v4287_v6, 0.0 }
 0x5f7   :  { %v8965_v24 = vadd.f32 %v3863_v20, %v13077_v2  ;;  %v3865_v35 = vpop.f32.mrb[170].mxu0 }
 0x5f8   :  { %v4292_v42 = vadd.f32 %v8964_v55, %v11718_v5  ;;  %v8966_v18 = vadd.f32 %v3865_v35, %v13078_v59  ;;  %v3867_v32 = vpop.f32.mrb[171].mxu0 }
 0x5f9   :  { %v4293_v44 = vadd.f32 %v8965_v24, %v11724_v45  ;;  %v8967_v31 = vadd.f32 %v3867_v32, %v13079_v21 }
 0x5fa   :  { %v4484_v0 = vmax.f32 %v4292_v42, 0.0  ;;  %v4294_v11 = vadd.f32 %v8966_v18, %v11718_v5  ;;  %v13083_v18 = vld [vmem:[#allocation132_spill] sm:$0xff] }
 0x5fb   :  { %v4485_v23 = vmax.f32 %v4293_v44, 0.0  ;;  %v4295_v33 = vadd.f32 %v8967_v31, %v11724_v45  ;;  %v4480_v44 = vmax.f32 %v4288_v61, 0.0  ;;  %v13084_v61 = vld [vmem:[#allocation133_spill] sm:$0xff] }
 0x5fc   :  { %v12279_v14 = vmax.f32 %v4476_v28, %v4484_v0  ;;  %v4486_v40 = vmax.f32 %v4294_v11, 0.0  ;;  %v4481_v28 = vmax.f32 %v4289_v30, 0.0 }
 0x5fd   :  { %v4670_v51 = vmax.f32 %v4477_v27, %v4485_v23  ;;  %v4487_v10 = vmax.f32 %v4295_v33, 0.0  ;;  %v3871_v39 = vpop.f32.mrb[172].mxu0  ;;  %v4482_v23 = vmax.f32 %v4290_v58, 0.0 }
 0x5fe   :  { %v4671_v15 = vmax.f32 %v4478_v19, %v4486_v40  ;;  %v8968_v38 = vadd.f32 %v3871_v39, %v13080_v22  ;;  %v3873_v25 = vpop.f32.mrb[173].mxu0 }
 0x5ff   :  { %v4672_v50 = vmax.f32 %v4479_v46, %v4487_v10  ;;  %v8969_v41 = vadd.f32 %v3873_v25, %v13081_v48  ;;  %v3875_v55 = vpop.f32.mrb[174].mxu0  ;;  %v5023_v20 = vpop.f32.mrb[216].mxu1  ;;  %v13085_v25 = vld [vmem:[#allocation134_spill] sm:$0xff] }
 0x600   :  { %v4677_v2 = vpack.c.bf16 %v4671_v15, %v12279_v14  ;;  %v4296_v24 = vadd.f32 %v8968_v38, %v11718_v5  ;;  %v8970_v35 = vadd.f32 %v3875_v55, %v13082_v57  ;;  %v3877_v54 = vpop.f32.mrb[175].mxu0  ;;  %v5025_v42 = vpop.f32.mrb[217].mxu1  ;;  %v4483_v14 = vmax.f32 %v4291_v60, 0.0  ;;  %v13086_v55 = vld [vmem:[#allocation135_spill] sm:$0xff]  ;;  %v13087_v57 = vld [vmem:[#allocation136_spill] sm:$0xff] }
 0x601   :  { %v4678_v59 = vpack.c.bf16 %v4672_v50, %v4670_v51  ;;  %v4297_v1 = vadd.f32 %v8969_v41, %v11724_v45  ;;  %v8971_v34 = vadd.f32 %v3877_v54, %v13083_v18  ;;  %v5214_v32 = vmax.f32 %v5023_v20, %v5025_v42  ;;  %v5027_v6 = vpop.f32.mrb[218].mxu1 }
 0x602   :  { %v4488_v21 = vmax.f32 %v4296_v24, 0.0  ;;  %v4298_v31 = vadd.f32 %v8970_v35, %v11718_v5  ;;  %v5029_v36 = vpop.f32.mrb[219].mxu1 }
 0x603   :  { %4682 = vst.msk [vmem:[#allocation2 + $0x148] sm:$0xff] %vm4521_vm2, %v4678_v59  ;;  %v4489_v0 = vmax.f32 %v4297_v1, 0.0  ;;  %v4299_v11 = vadd.f32 %v8971_v34, %v11724_v45  ;;  %v5215_v27 = vmax.f32 %v5027_v6, %v5029_v36 }
 0x604   :  { %v4673_v33 = vmax.f32 %v4480_v44, %v4488_v21  ;;  %v4490_v19 = vmax.f32 %v4298_v31, 0.0 }
 0x605   :  { %v4674_v40 = vmax.f32 %v4481_v28, %v4489_v0  ;;  %v4491_v46 = vmax.f32 %v4299_v11, 0.0  ;;  %v12295_v51 = vpack.c.bf16 %v5215_v27, %v5214_v32  ;;  %v3881_v10 = vpop.f32.mrb[176].mxu0 }
 0x606   :  { %v4675_v39 = vmax.f32 %v4482_v23, %v4490_v19  ;;  %v8972_v15 = vadd.f32 %v3881_v10, %v13084_v61  ;;  %v3883_v22 = vpop.f32.mrb[177].mxu0 }
 0x607   :  { %v4676_v38 = vmax.f32 %v4483_v14, %v4491_v46  ;;  %v8973_v30 = vadd.f32 %v3883_v22, %v13085_v25  ;;  %v3885_v50 = vpop.f32.mrb[178].mxu0  ;;  %v5033_v48 = vpop.f32.mrb[220].mxu1 }
 0x608   :  { %v4679_v41 = vpack.c.bf16 %v4675_v39, %v4673_v33  ;;  %v8974_v58 = vadd.f32 %v3885_v50, %v13086_v55  ;;  %v3887_v20 = vpop.f32.mrb[179].mxu0  ;;  %v5035_v24 = vpop.f32.mrb[221].mxu1 }
 0x609   :  { %v4680_v60 = vpack.c.bf16 %v4676_v38, %v4674_v40  ;;  %v8975_v35 = vadd.f32 %v3887_v20, %v13087_v57  ;;  %v5216_v54 = vmax.f32 %v5033_v48, %v5035_v24  ;;  %v5037_v42 = vpop.f32.mrb[222].mxu1 }
 0x60a   :  { %v5039_v59 = vpop.f32.mrb[223].mxu1  ;;  %v4742_v1 = vld [vmem:[#allocation2 + $0x148] sm:$0xff] }
 0x60b   :  { %4684 = vst.msk [vmem:[#allocation2 + $0x158] sm:$0xff] %vm4521_vm2, %v4680_v60  ;;  %v5217_v18 = vmax.f32 %v5037_v42, %v5039_v59  ;;  %8020 = vmatprep.mubr.msk.bf16.mxu1 %vm4521_vm2, %v4742_v1  ;;  %v4303_v46 = vadd.f32 %v8975_v35, %v11724_v45 }
 0x60c   :  { %5162 = vmatmul.mubr.bf16.gmra.mrb[16].mxu1 %v4677_v2  ;;  %v4300_v2 = vadd.f32 %v8972_v15, %v11718_v5 }
 0x60d   :  { %v12303_v34 = vpack.c.bf16 %v5217_v18, %v5216_v54  ;;  %v3891_v32 = vpop.f32.mrb[180].mxu0  ;;  %v4495_v48 = vmax.f32 %v4303_v46, 0.0 }
 0x60e   :  { %v8976_v6 = vadd.f32 %v3891_v32, %v11754_v17  ;;  %v3893_v44 = vpop.f32.mrb[181].mxu0  ;;  %v4301_v17 = vadd.f32 %v8973_v30, %v11724_v45 }
 0x60f   :  { %v8977_v21 = vadd.f32 %v3893_v44, %v11756_v7  ;;  %v3895_v31 = vpop.f32.mrb[182].mxu0 }
 0x610   :  { %v8978_v36 = vadd.f32 %v3895_v31, %v11760_v43  ;;  %v3897_v28 = vpop.f32.mrb[183].mxu0  ;;  %v4302_v43 = vadd.f32 %v8974_v58, %v11718_v5  ;;  %v4493_v22 = vmax.f32 %v4301_v17, 0.0  ;;  %v4304_v58 = vadd.f32 %v8976_v6, %v11718_v5 }
 0x611   :  { %v8979_v0 = vadd.f32 %v3897_v28, %v11764_v62  ;;  %v4305_v60 = vadd.f32 %v8977_v21, %v11724_v45 }
 0x612   :  { %v4744_v11 = vld [vmem:[#allocation2 + $0x158] sm:$0xff]  ;;  %v4494_v25 = vmax.f32 %v4302_v43, 0.0  ;;  %v4306_v57 = vadd.f32 %v8978_v36, %v11718_v5 }
 0x613   :  { %8021 = vmatprep.mubr.msk.bf16.mxu1 %vm4521_vm2, %v4744_v11  ;;  %v4307_v1 = vadd.f32 %v8979_v0, %v11724_v45  ;;  %v4497_v0 = vmax.f32 %v4305_v60, 0.0  ;;  %v9885_v60 = vld [vmem:[%s12809_s4 + $0x20] sm:$0xff]  }
 0x614   :  { %5172 = vmatmul.mubr.bf16.gmra.mrb[20].mxu1 %v4679_v41 }
 0x615   :  { %v3901_v27 = vpop.f32.mrb[184].mxu0 }
 0x616   :  { %v8980_v23 = vadd.f32 %v3901_v27, %v11781_v4  ;;  %v3903_v33 = vpop.f32.mrb[185].mxu0  ;;  %v4492_v4 = vmax.f32 %v4300_v2, 0.0  ;;  %v4496_v27 = vmax.f32 %v4304_v58, 0.0 }
 0x617   :  { %v8981_v7 = vadd.f32 %v3903_v33, %v11783_v9  ;;  %v3905_v19 = vpop.f32.mrb[186].mxu0 }
 0x618   :  { %v4308_v14 = vadd.f32 %v8980_v23, %v11718_v5  ;;  %v8982_v62 = vadd.f32 %v3905_v19, %v11786_v63  ;;  %v3907_v40 = vpop.f32.mrb[187].mxu0 }
 0x619   :  { %v4309_v10 = vadd.f32 %v8981_v7, %v11724_v45  ;;  %v8983_v39 = vadd.f32 %v3907_v40, %v11789_v49  ;;  %v4498_v7 = vmax.f32 %v4306_v57, 0.0 }
 0x61a   :  { %v4500_v61 = vmax.f32 %v4308_v14, 0.0  ;;  %v4310_v15 = vadd.f32 %v8982_v62, %v11718_v5  ;;  %v4499_v14 = vmax.f32 %v4307_v1, 0.0  ;;  %v9886_v1 = vld [vmem:[%s12809_s4 + $0x28] sm:$0xff]  }
 0x61b   :  { %v4501_v9 = vmax.f32 %v4309_v10, 0.0  ;;  %v4311_v38 = vadd.f32 %v8983_v39, %v11724_v45 }
 0x61c   :  { %v4685_v30 = vmax.f32 %v4492_v4, %v4500_v61  ;;  %v4502_v50 = vmax.f32 %v4310_v15, 0.0 }
 0x61d   :  { %v4686_v63 = vmax.f32 %v4493_v22, %v4501_v9  ;;  %v4503_v41 = vmax.f32 %v4311_v38, 0.0  ;;  %v3911_v55 = vpop.f32.mrb[188].mxu0 }
 0x61e   :  { %v4687_v20 = vmax.f32 %v4494_v25, %v4502_v50  ;;  %v8984_v49 = vadd.f32 %v3911_v55, %v11800_v29  ;;  %v3913_v24 = vpop.f32.mrb[189].mxu0  ;;  %v9882_v50 = vld [vmem:[%s12809_s4 + $0x8] sm:$0xff]  }
 0x61f   :  { %v4688_v35 = vmax.f32 %v4495_v48, %v4503_v41  ;;  %v8985_v54 = vadd.f32 %v3913_v24, %v11802_v16  ;;  %v3915_v42 = vpop.f32.mrb[190].mxu0  ;;  %v5043_v59 = vpop.f32.mrb[224].mxu1  ;;  %v9883_v48 = vld [vmem:[%s12809_s4 + $0x10] sm:$0xff]  }
 0x620   :  { %v4693_v18 = vpack.c.bf16 %v4687_v20, %v4685_v30  ;;  %v4312_v32 = vadd.f32 %v8984_v49, %v11718_v5  ;;  %v8986_v6 = vadd.f32 %v3915_v42, %v11805_v8  ;;  %v3917_v44 = vpop.f32.mrb[191].mxu0  ;;  %v5045_v31 = vpop.f32.mrb[225].mxu1  ;;  %v9884_v49 = vld [vmem:[%s12809_s4 + $0x18] sm:$0xff]  }
 0x621   :  { %v4694_v29 = vpack.c.bf16 %v4688_v35, %v4686_v63  ;;  %v4313_v28 = vadd.f32 %v8985_v54, %v11724_v45  ;;  %v8987_v21 = vadd.f32 %v3917_v44, %v11808_v52  ;;  %v5218_v36 = vmax.f32 %v5043_v59, %v5045_v31  ;;  %v5047_v11 = vpop.f32.mrb[226].mxu1  ;;  %v9888_v44 = vld [vmem:[%s12809_s4 + $0x38] sm:$0xff]   ;;  %v9889_v31 = vld [vmem:[%s12809_s4 + $0x80] sm:$0xff]  }
 0x622   :  { %v4504_v16 = vmax.f32 %v4312_v32, 0.0  ;;  %v4314_v2 = vadd.f32 %v8986_v6, %v11718_v5  ;;  %v5049_v23 = vpop.f32.mrb[227].mxu1  ;;  %v9887_v6 = vld [vmem:[%s12809_s4 + $0x30] sm:$0xff]  }
 0x623   :  { %4698 = vst.msk [vmem:[#allocation2 + $0x168] sm:$0xff] %vm4521_vm2, %v4694_v29  ;;  %v4505_v33 = vmax.f32 %v4313_v28, 0.0  ;;  %v4315_v8 = vadd.f32 %v8987_v21, %v11724_v45  ;;  %v5219_v17 = vmax.f32 %v5047_v11, %v5049_v23 }
 0x624   :  { %v4689_v19 = vmax.f32 %v4496_v27, %v4504_v16  ;;  %v4506_v43 = vmax.f32 %v4314_v2, 0.0 }
 0x625   :  { %v4690_v62 = vmax.f32 %v4497_v0, %v4505_v33  ;;  %v4507_v52 = vmax.f32 %v4315_v8, 0.0  ;;  %v12335_v40 = vpack.c.bf16 %v5219_v17, %v5218_v36 }
 0x626   :  { %v4691_v46 = vmax.f32 %v4498_v7, %v4506_v43 }
 0x627   :  { %v4692_v10 = vmax.f32 %v4499_v14, %v4507_v52  ;;  %v5053_v39 = vpop.f32.mrb[228].mxu1 }
 0x628   :  { %v4695_v5 = vpack.c.bf16 %v4691_v46, %v4689_v19  ;;  %v5055_v4 = vpop.f32.mrb[229].mxu1 }
 0x629   :  { %v4696_v61 = vpack.c.bf16 %v4692_v10, %v4690_v62  ;;  %v5220_v15 = vmax.f32 %v5053_v39, %v5055_v4  ;;  %v5057_v22 = vpop.f32.mrb[230].mxu1 }
 0x62a   :  { %v5059_v9 = vpop.f32.mrb[231].mxu1  ;;  %v4746_v38 = vld [vmem:[#allocation2 + $0x168] sm:$0xff] }
 0x62b   :  { %4700 = vst.msk [vmem:[#allocation2 + $0x178] sm:$0xff] %vm4521_vm2, %v4696_v61  ;;  %v5221_v45 = vmax.f32 %v5057_v22, %v5059_v9  ;;  %8022 = vmatprep.mubr.msk.bf16.mxu1 %vm4521_vm2, %v4746_v38 }
 0x62c   :  { %5182 = vmatmul.mubr.bf16.gmra.mrb[24].mxu1 %v4693_v18 }
 0x62d   :  { %v12339_v25 = vpack.c.bf16 %v5221_v45, %v5220_v15 }
 0x632   :  { %v4748_v30 = vld [vmem:[#allocation2 + $0x178] sm:$0xff] }
 0x633   :  { %8023 = vmatprep.mubr.msk.bf16.mxu1 %vm4521_vm2, %v4748_v30 }
 0x634   :  { %5192 = vmatmul.mubr.bf16.gmra.mrb[28].mxu1 %v4695_v5 }
 0x635   :  { %8440 = vmatprep.mubr.bf16.mxu1 %v12203_v37 }
 0x63c   :  { %8441 = vmatmul.mubr.bf16.vlgmr.msra.gmra.mrb[32].mxu1 %v12211_v56 }
 0x63d   :  { %8444 = vmatprep.mubr.bf16.mxu1 %v12246_v47  ;;  %8473 = vmatpush3.bf16.msra.mxu1 %v12261_v53 }
 0x63e   :  { %8474 = vmatprep.subr.bf16.mxu1 %v9882_v50 }
 0x63f   :  { %v5063_v63 = vpop.f32.mrb[232].mxu1 }
 0x640   :  { %v5065_v41 = vpop.f32.mrb[233].mxu1 }
 0x641   :  { %v5222_v55 = vmax.f32 %v5063_v63, %v5065_v41  ;;  %v5067_v58 = vpop.f32.mrb[234].mxu1  ;;  %8475 = vmatpush3.bf16.msra.mxu1 %v9882_v50 }
 0x642   :  { %v5069_v20 = vpop.f32.mrb[235].mxu1  ;;  %8476 = vmatprep.subr.bf16.mxu1 %v9883_v48 }
 0x643   :  { %v5223_v24 = vmax.f32 %v5067_v58, %v5069_v20 }
 0x644   :  { %8445 = vmatmul.mubr.bf16.gmra.mrb[36].mxu1 %v12254_v12 }
 0x645   :  { %v12356_v53 = vpack.c.bf16 %v5223_v24, %v5222_v55  ;;  %8448 = vmatprep.mubr.bf16.mxu1 %v12295_v51  ;;  %8477 = vmatpush3.bf16.msra.mxu1 %v9883_v48 }
 0x646   :  { %8478 = vmatprep.subr.bf16.mxu1 %v9884_v49 }
 0x647   :  { %v5073_v57 = vpop.f32.mrb[236].mxu1 }
 0x648   :  { %v5075_v35 = vpop.f32.mrb[237].mxu1 }
 0x649   :  { %v5224_v54 = vmax.f32 %v5073_v57, %v5075_v35  ;;  %v5077_v42 = vpop.f32.mrb[238].mxu1  ;;  %8479 = vmatpush3.bf16.msra.mxu1 %v9884_v49  ;;  %v9890_v35 = vld [vmem:[%s12809_s4 + $0x88] sm:$0xff]  }
 0x64a   :  { %v5079_v59 = vpop.f32.mrb[239].mxu1  ;;  %8480 = vmatprep.subr.bf16.mxu1 %v9885_v60 }
 0x64b   :  { %v5225_v18 = vmax.f32 %v5077_v42, %v5079_v59 }
 0x64c   :  { %8449 = vmatmul.mubr.bf16.gmra.mrb[40].mxu1 %v12303_v34 }
 0x64d   :  { %v12366_v32 = vpack.c.bf16 %v5225_v18, %v5224_v54  ;;  %8452 = vmatprep.mubr.bf16.mxu1 %v12335_v40  ;;  %8481 = vmatpush3.bf16.msra.mxu1 %v9885_v60  ;;  %v9891_v54 = vld [vmem:[%s12809_s4 + $0x90] sm:$0xff]  }
 0x64e   :  { %8482 = vmatprep.subr.bf16.mxu1 %v9886_v1 }
 0x651   :  { %8483 = vmatpush3.bf16.msra.mxu1 %v9886_v1  ;;  %v9893_v1 = vld [vmem:[%s12809_s4 + $0xa0] sm:$0xff]  }
 0x652   :  { %8484 = vmatprep.subr.bf16.mxu1 %v9887_v6 }
 0x654   :  { %8453 = vmatmul.mubr.bf16.gmra.mrb[44].mxu1 %v12339_v25 }
 0x655   :  { %8456 = vmatprep.mubr.bf16.mxu1 %v12356_v53  ;;  %8485 = vmatpush3.bf16.msra.mxu1 %v9887_v6 }
 0x656   :  { %8486 = vmatprep.subr.bf16.mxu1 %v9888_v44 }
 0x659   :  { %8487 = vmatpush3.bf16.msra.mxu1 %v9888_v44 }
 0x65a   :  { %8520 = vmatprep.subr.bf16.mxu1 %v9889_v31 }
 0x65c   :  { %8457 = vmatmul.mubr.bf16.gmra.mrb[48].mxu1 %v12366_v32 }
 0x65f   :  { %v5083_v29 = vpop.f32.mrb[240].mxu1 }
 0x660   :  { %v5085_v28 = vpop.f32.mrb[241].mxu1 }
 0x661   :  { %v5226_v21 = vmax.f32 %v5083_v29, %v5085_v28  ;;  %v5087_v36 = vpop.f32.mrb[242].mxu1 }
 0x662   :  { %v5089_v11 = vpop.f32.mrb[243].mxu1 }
 0x663   :  { %v5227_v27 = vmax.f32 %v5087_v36, %v5089_v11  ;;  %v9895_v36 = vld [vmem:[%s12809_s4 + $0xb0] sm:$0xff]  }
 0x665   :  { %v12381_v16 = vpack.c.bf16 %v5227_v27, %v5226_v21 }
 0x667   :  { %v5093_v2 = vpop.f32.mrb[244].mxu1  ;;  %8460 = vmatprep.mubr.bf16.mxu1 %v12381_v16 }
 0x668   :  { %v5095_v23 = vpop.f32.mrb[245].mxu1 }
 0x669   :  { %v5228_v0 = vmax.f32 %v5093_v2, %v5095_v23  ;;  %v5097_v33 = vpop.f32.mrb[246].mxu1  ;;  %v9896_v23 = vld [vmem:[%s12809_s4 + $0xb8] sm:$0xff]  }
 0x66a   :  { %v5099_v8 = vpop.f32.mrb[247].mxu1 }
 0x66b   :  { %v5229_v17 = vmax.f32 %v5097_v33, %v5099_v8 }
 0x66d   :  { %v12384_v7 = vpack.c.bf16 %v5229_v17, %v5228_v0  ;;  %v9897_v0 = vld [vmem:[%s12809_s4 + $0xc0] sm:$0xff]  }
 0x66f   :  { %8461 = vmatmul.mubr.bf16.gmra.mrb[52].mxu1 %v12384_v7 }
 0x67f   :  { %v5103_v19 = vpop.f32.mrb[248].mxu1 }
 0x680   :  { %v5105_v43 = vpop.f32.mrb[249].mxu1 }
 0x681   :  { %v5230_v14 = vmax.f32 %v5103_v19, %v5105_v43  ;;  %v5107_v62 = vpop.f32.mrb[250].mxu1 }
 0x682   :  { %v5109_v52 = vpop.f32.mrb[251].mxu1 }
 0x683   :  { %v5231_v46 = vmax.f32 %v5107_v62, %v5109_v52 }
 0x685   :  { %v12387_v10 = vpack.c.bf16 %v5231_v46, %v5230_v14 }
 0x687   :  { %v5113_v39 = vpop.f32.mrb[252].mxu1  ;;  %8464 = vmatprep.mubr.bf16.mxu1 %v12387_v10 }
 0x688   :  { %v5115_v5 = vpop.f32.mrb[253].mxu1 }
 0x689   :  { %v5232_v4 = vmax.f32 %v5113_v39, %v5115_v5  ;;  %v5117_v61 = vpop.f32.mrb[254].mxu1 }
 0x68a   :  { %v5119_v15 = vpop.f32.mrb[255].mxu1 }
 0x68b   :  { %v5233_v22 = vmax.f32 %v5117_v61, %v5119_v15 }
 0x68d   :  { %v12390_v9 = vpack.c.bf16 %v5233_v22, %v5232_v4  ;;  %v9898_v22 = vld [vmem:[%s12809_s4 + $0xc8] sm:$0xff]  }
 0x68f   :  { %8465 = vmatmul.mubr.bf16.gmra.mrb[56].mxu1 %v12390_v9 }
 0x69f   :  { %v5123_v38 = vpop.f32.mrb[0].mxu1 }
 0x6a0   :  { %v5125_v45 = vpop.f32.mrb[1].mxu1 }
 0x6a1   :  { %v5234_v30 = vmax.f32 %v5123_v38, %v5125_v45  ;;  %v5127_v50 = vpop.f32.mrb[2].mxu1  ;;  %v9899_v38 = vld [vmem:[%s12809_s4 + $0xd0] sm:$0xff]  }
 0x6a2   :  { %v5129_v48 = vpop.f32.mrb[3].mxu1 }
 0x6a3   :  { %v5235_v63 = vmax.f32 %v5127_v50, %v5129_v48  ;;  %v9901_v48 = vld [vmem:[%s12809_s4 + $0xe0] sm:$0xff]  }
 0x6a5   :  { %v12393_v41 = vpack.c.bf16 %v5235_v63, %v5234_v30 }
 0x6a7   :  { %v5133_v55 = vpop.f32.mrb[4].mxu1  ;;  %8468 = vmatprep.mubr.bf16.mxu1 %v12393_v41 }
 0x6a8   :  { %v5135_v58 = vpop.f32.mrb[5].mxu1 }
 0x6a9   :  { %v5236_v20 = vmax.f32 %v5133_v55, %v5135_v58  ;;  %v5137_v49 = vpop.f32.mrb[6].mxu1 }
 0x6aa   :  { %v5139_v24 = vpop.f32.mrb[7].mxu1 }
 0x6ab   :  { %v5237_v60 = vmax.f32 %v5137_v49, %v5139_v24 }
 0x6ad   :  { %v12396_v57 = vpack.c.bf16 %v5237_v60, %v5236_v20  ;;  %v9902_v20 = vld [vmem:[%s12809_s4 + $0xe8] sm:$0xff]  }
 0x6af   :  { %8469 = vmatmul.mubr.bf16.gmra.mrb[60].mxu1 %v12396_v57 }
 0x6b0   :  { %8488 = vmatprep.mubr.bf16.mxu1 %v12151_v3  ;;  %v9892_v3 = vld [vmem:[%s12809_s4 + $0x98] sm:$0xff]  }
 0x6b7   :  { %8489 = vmatmul.mubr.bf16.vlgmr.msra.gmra.mrb[32].mxu1 %v12159_v13 }
 0x6b8   :  { %8492 = vmatprep.mubr.bf16.mxu1 %v12203_v37  ;;  %8521 = vmatpush3.bf16.msra.mxu1 %v9889_v31 }
 0x6b9   :  { %8522 = vmatprep.subr.bf16.mxu1 %v9890_v35 }
 0x6bc   :  { %8523 = vmatpush3.bf16.msra.mxu1 %v9890_v35 }
 0x6bd   :  { %8524 = vmatprep.subr.bf16.mxu1 %v9891_v54 }
 0x6bf   :  { %v5143_v42 = vpop.f32.mrb[8].mxu1  ;;  %8493 = vmatmul.mubr.bf16.gmra.mrb[36].mxu1 %v12211_v56  ;;  %v9894_v56 = vld [vmem:[%s12809_s4 + $0xa8] sm:$0xff]  }
 0x6c0   :  { %v5145_v59 = vpop.f32.mrb[9].mxu1  ;;  %8496 = vmatprep.mubr.bf16.mxu1 %v12246_v47  ;;  %8525 = vmatpush3.bf16.msra.mxu1 %v9891_v54  ;;  %v9903_v54 = vld [vmem:[%s12809_s4 + $0xf0] sm:$0xff]  }
 0x6c1   :  { %v5238_v13 = vmax.f32 %v5143_v42, %v5145_v59  ;;  %v5147_v37 = vpop.f32.mrb[10].mxu1  ;;  %8526 = vmatprep.subr.bf16.mxu1 %v9892_v3 }
 0x6c2   :  { %v5149_v18 = vpop.f32.mrb[11].mxu1 }
 0x6c3   :  { %v5239_v6 = vmax.f32 %v5147_v37, %v5149_v18  ;;  %v9905_v37 = vld [vmem:[%s12809_s4 + $0x100] sm:$0xff]   ;;  %v9907_v18 = vld [vmem:[%s12809_s4 + $0x110] sm:$0xff]  }
 0x6c4   :  { %8527 = vmatpush3.bf16.msra.mxu1 %v9892_v3 }
 0x6c5   :  { %v12416_v44 = vpack.c.bf16 %v5239_v6, %v5238_v13  ;;  %8528 = vmatprep.subr.bf16.mxu1 %v9893_v1  ;;  %v9904_v13 = vld [vmem:[%s12809_s4 + $0xf8] sm:$0xff]   ;;  %v9910_v6 = vld [vmem:[%s12809_s4 + $0x128] sm:$0xff]  }
 0x6c7   :  { %v5153_v31 = vpop.f32.mrb[12].mxu1  ;;  %8497 = vmatmul.mubr.bf16.gmra.mrb[40].mxu1 %v12254_v12 }
 0x6c8   :  { %v5155_v29 = vpop.f32.mrb[13].mxu1  ;;  %8500 = vmatprep.mubr.bf16.mxu1 %v12295_v51  ;;  %8529 = vmatpush3.bf16.msra.mxu1 %v9893_v1  ;;  %v9906_v1 = vld [vmem:[%s12809_s4 + $0x108] sm:$0xff]  }
 0x6c9   :  { %v5240_v28 = vmax.f32 %v5153_v31, %v5155_v29  ;;  %v5157_v21 = vpop.f32.mrb[14].mxu1  ;;  %8530 = vmatprep.subr.bf16.mxu1 %v9894_v56  ;;  %v9912_v31 = vld [vmem:[%s12809_s4 + $0x138] sm:$0xff]   ;;  %v9915_v29 = vld [vmem:[%s12810_s6 + $0x4] ss:$8 sps:$4 sm:$0xff]  }
 0x6ca   :  { %v5159_v11 = vpop.f32.mrb[15].mxu1 }
 0x6cb   :  { %v5241_v27 = vmax.f32 %v5157_v21, %v5159_v11  ;;  %v9918_v21 = vld [vmem:[%s12810_s6 + $0x14] ss:$8 sps:$4 sm:$0xff]   ;;  %v9919_v11 = vld [vmem:[%s12810_s6 + $0x20] ss:$8 sps:$4 sm:$0xff]  }
 0x6cc   :  { %8531 = vmatpush3.bf16.msra.mxu1 %v9894_v56  ;;  %v9911_v56 = vld [vmem:[%s12809_s4 + $0x130] sm:$0xff]  }
 0x6cd   :  { %v12426_v2 = vpack.c.bf16 %v5241_v27, %v5240_v28  ;;  %8532 = vmatprep.subr.bf16.mxu1 %v9895_v36  ;;  %v9913_v28 = vld [vmem:[%s12810_s6] ss:$8 sps:$4 sm:$0xff]   ;;  %v9927_v27 = vld [vmem:[%s12810_s6 + $0x44] ss:$8 sps:$4 sm:$0xff]  }
 0x6cf   :  { %8501 = vmatmul.mubr.bf16.gmra.mrb[44].mxu1 %v12303_v34 }
 0x6d0   :  { %8504 = vmatprep.mubr.bf16.mxu1 %v12335_v40  ;;  %8533 = vmatpush3.bf16.msra.mxu1 %v9895_v36  ;;  %v9916_v36 = vld [vmem:[%s12810_s6 + $0x10] ss:$8 sps:$4 sm:$0xff]  }
 0x6d1   :  { %8534 = vmatprep.subr.bf16.mxu1 %v9896_v23 }
 0x6d4   :  { %8535 = vmatpush3.bf16.msra.mxu1 %v9896_v23  ;;  %v9925_v23 = vld [vmem:[%s12810_s6 + $0x40] ss:$8 sps:$4 sm:$0xff]  }
 0x6d5   :  { %8568 = vmatprep.subr.bf16.mxu1 %v9897_v0 }
 0x6d7   :  { %8505 = vmatmul.mubr.bf16.gmra.mrb[48].mxu1 %v12339_v25 }
 0x6d8   :  { %8508 = vmatprep.mubr.bf16.mxu1 %v12356_v53 }
 0x6df   :  { %v5163_v33 = vpop.f32.mrb[16].mxu1  ;;  %8509 = vmatmul.mubr.bf16.gmra.mrb[52].mxu1 %v12366_v32 }
 0x6e0   :  { %v5165_v8 = vpop.f32.mrb[17].mxu1  ;;  %8512 = vmatprep.mubr.bf16.mxu1 %v12381_v16 }
 0x6e1   :  { %v5242_v17 = vmax.f32 %v5163_v33, %v5165_v8  ;;  %v5167_v19 = vpop.f32.mrb[18].mxu1  ;;  %v12599_v8 = vld [vmem:[%s12812_s5] ss:$0 sm:$0xff] }
 0x6e2   :  { %v5169_v43 = vpop.f32.mrb[19].mxu1 }
 0x6e3   :  { %v5243_v14 = vmax.f32 %v5167_v19, %v5169_v43 }
 0x6e5   :  { %v12440_v62 = vpack.c.bf16 %v5243_v14, %v5242_v17 }
 0x6e7   :  { %v5173_v52 = vpop.f32.mrb[20].mxu1  ;;  %8513 = vmatmul.mubr.bf16.gmra.mrb[56].mxu1 %v12384_v7 }
 0x6e8   :  { %v5175_v46 = vpop.f32.mrb[21].mxu1  ;;  %8516 = vmatprep.mubr.bf16.mxu1 %v12387_v10 }
 0x6e9   :  { %v5244_v39 = vmax.f32 %v5173_v52, %v5175_v46  ;;  %v5177_v5 = vpop.f32.mrb[22].mxu1 }
 0x6ea   :  { %v5179_v4 = vpop.f32.mrb[23].mxu1 }
 0x6eb   :  { %v5245_v61 = vmax.f32 %v5177_v5, %v5179_v4 }
 0x6ed   :  { %v12444_v15 = vpack.c.bf16 %v5245_v61, %v5244_v39 }
 0x6ef   :  { %8517 = vmatmul.mubr.bf16.gmra.mrb[60].mxu1 %v12390_v9 }
 0x6f0   :  { %8536 = vmatprep.mubr.bf16.mxu1 %v12246_v47  ;;  %v9900_v47 = vld [vmem:[%s12809_s4 + $0xd8] sm:$0xff]  }
 0x6f7   :  { %8537 = vmatmul.mubr.bf16.vlgmr.msra.gmra.mrb[32].mxu1 %v12254_v12 }
 0x6f8   :  { %8540 = vmatprep.mubr.bf16.mxu1 %v12295_v51  ;;  %8569 = vmatpush3.bf16.msra.mxu1 %v9897_v0 }
 0x6f9   :  { %8570 = vmatprep.subr.bf16.mxu1 %v9898_v22 }
 0x6fc   :  { %8571 = vmatpush3.bf16.msra.mxu1 %v9898_v22 }
 0x6fd   :  { %8572 = vmatprep.subr.bf16.mxu1 %v9899_v38 }
 0x6ff   :  { %v5183_v45 = vpop.f32.mrb[24].mxu1  ;;  %8541 = vmatmul.mubr.bf16.gmra.mrb[36].mxu1 %v12303_v34 }
 0x700   :  { %v5185_v30 = vpop.f32.mrb[25].mxu1  ;;  %8544 = vmatprep.mubr.bf16.mxu1 %v12335_v40  ;;  %8573 = vmatpush3.bf16.msra.mxu1 %v9899_v38 }
 0x701   :  { %v5246_v12 = vmax.f32 %v5183_v45, %v5185_v30  ;;  %v5187_v50 = vpop.f32.mrb[26].mxu1  ;;  %8574 = vmatprep.subr.bf16.mxu1 %v9900_v47 }
 0x702   :  { %v5189_v63 = vpop.f32.mrb[27].mxu1 }
 0x703   :  { %v5247_v55 = vmax.f32 %v5187_v50, %v5189_v63 }
 0x704   :  { %8575 = vmatpush3.bf16.msra.mxu1 %v9900_v47 }
 0x705   :  { %v12464_v58 = vpack.c.bf16 %v5247_v55, %v5246_v12  ;;  %8576 = vmatprep.subr.bf16.mxu1 %v9901_v48 }
 0x707   :  { %v5193_v49 = vpop.f32.mrb[28].mxu1  ;;  %8545 = vmatmul.mubr.bf16.gmra.mrb[40].mxu1 %v12339_v25 }
 0x708   :  { %v5195_v24 = vpop.f32.mrb[29].mxu1  ;;  %8548 = vmatprep.mubr.bf16.mxu1 %v12356_v53  ;;  %8577 = vmatpush3.bf16.msra.mxu1 %v9901_v48 }
 0x709   :  { %v5248_v60 = vmax.f32 %v5193_v49, %v5195_v24  ;;  %v5197_v35 = vpop.f32.mrb[30].mxu1  ;;  %8578 = vmatprep.subr.bf16.mxu1 %v9902_v20 }
 0x70a   :  { %v5199_v3 = vpop.f32.mrb[31].mxu1 }
 0x70b   :  { %v5249_v42 = vmax.f32 %v5197_v35, %v5199_v3  ;;  %v9938_v3 = vld [vmem:[%s12811_s7 + $0x48] sm:$0xff]  }
 0x70c   :  { %8579 = vmatpush3.bf16.msra.mxu1 %v9902_v20 }
 0x70d   :  { %v12474_v59 = vpack.c.bf16 %v5249_v42, %v5248_v60  ;;  %8580 = vmatprep.subr.bf16.mxu1 %v9903_v54 }
 0x70f   :  { %8549 = vmatmul.mubr.bf16.gmra.mrb[44].mxu1 %v12366_v32 }
 0x710   :  { %8552 = vmatprep.mubr.bf16.mxu1 %v12381_v16  ;;  %8581 = vmatpush3.bf16.msra.mxu1 %v9903_v54 }
 0x711   :  { %8582 = vmatprep.subr.bf16.mxu1 %v9904_v13 }
 0x714   :  { %8583 = vmatpush3.bf16.msra.mxu1 %v9904_v13 }
 0x715   :  { %8616 = vmatprep.subr.bf16.mxu1 %v9905_v37 }
 0x717   :  { %8553 = vmatmul.mubr.bf16.gmra.mrb[48].mxu1 %v12384_v7 }
 0x718   :  { %8556 = vmatprep.mubr.bf16.mxu1 %v12387_v10 }
 0x71f   :  { %8557 = vmatmul.mubr.bf16.gmra.mrb[52].mxu1 %v12390_v9 }
 0x720   :  { %8560 = vmatprep.mubr.bf16.mxu1 %v12393_v41 }
 0x727   :  { %8561 = vmatmul.mubr.bf16.gmra.mrb[56].mxu1 %v12396_v57 }
 0x728   :  { %8564 = vmatprep.mubr.bf16.mxu1 %v12416_v44 }
 0x72f   :  { %8565 = vmatmul.mubr.bf16.gmra.mrb[60].mxu1 %v12426_v2 }
 0x730   :  { %8584 = vmatprep.mubr.bf16.mxu1 %v12295_v51  ;;  %v9908_v51 = vld [vmem:[%s12809_s4 + $0x118] sm:$0xff]  }
 0x737   :  { %8585 = vmatmul.mubr.bf16.vlgmr.msra.gmra.mrb[32].mxu1 %v12303_v34  ;;  %v9909_v34 = vld [vmem:[%s12809_s4 + $0x120] sm:$0xff]  }
 0x738   :  { %8588 = vmatprep.mubr.bf16.mxu1 %v12335_v40  ;;  %8617 = vmatpush3.bf16.msra.mxu1 %v9905_v37 }
 0x739   :  { %8618 = vmatprep.subr.bf16.mxu1 %v9906_v1 }
 0x73c   :  { %8619 = vmatpush3.bf16.msra.mxu1 %v9906_v1 }
 0x73d   :  { %8620 = vmatprep.subr.bf16.mxu1 %v9907_v18 }
 0x73f   :  { %8589 = vmatmul.mubr.bf16.gmra.mrb[36].mxu1 %v12339_v25 }
 0x740   :  { %8592 = vmatprep.mubr.bf16.mxu1 %v12356_v53  ;;  %8621 = vmatpush3.bf16.msra.mxu1 %v9907_v18 }
 0x741   :  { %8622 = vmatprep.subr.bf16.mxu1 %v9908_v51 }
 0x744   :  { %8623 = vmatpush3.bf16.msra.mxu1 %v9908_v51 }
 0x745   :  { %8624 = vmatprep.subr.bf16.mxu1 %v9909_v34 }
 0x747   :  { %8593 = vmatmul.mubr.bf16.gmra.mrb[40].mxu1 %v12366_v32 }
 0x748   :  { %8596 = vmatprep.mubr.bf16.mxu1 %v12381_v16  ;;  %8625 = vmatpush3.bf16.msra.mxu1 %v9909_v34 }
 0x749   :  { %8626 = vmatprep.subr.bf16.mxu1 %v9910_v6 }
 0x74c   :  { %8627 = vmatpush3.bf16.msra.mxu1 %v9910_v6 }
 0x74d   :  { %8628 = vmatprep.subr.bf16.mxu1 %v9911_v56 }
 0x74f   :  { %8597 = vmatmul.mubr.bf16.gmra.mrb[44].mxu1 %v12384_v7 }
 0x750   :  { %8600 = vmatprep.mubr.bf16.mxu1 %v12387_v10  ;;  %8629 = vmatpush3.bf16.msra.mxu1 %v9911_v56 }
 0x751   :  { %8630 = vmatprep.subr.bf16.mxu1 %v9912_v31 }
 0x754   :  { %8631 = vmatpush3.bf16.msra.mxu1 %v9912_v31 }
 0x755   :  { %6706 = vmatprep.subr.bf16.mxu1 %v9915_v29  ;;  %v9940_v29 = vld [vmem:[%s12811_s7 + $0x58] sm:$0xff]  }
 0x757   :  { %8601 = vmatmul.mubr.bf16.gmra.mrb[48].mxu1 %v12390_v9 }
 0x758   :  { %8604 = vmatprep.mubr.bf16.mxu1 %v12393_v41 }
 0x75f   :  { %8605 = vmatmul.mubr.bf16.gmra.mrb[52].mxu1 %v12396_v57 }
 0x760   :  { %8608 = vmatprep.mubr.bf16.mxu1 %v12416_v44 }
 0x767   :  { %8609 = vmatmul.mubr.bf16.gmra.mrb[56].mxu1 %v12426_v2 }
 0x768   :  { %8612 = vmatprep.mubr.bf16.mxu1 %v12440_v62 }
 0x76f   :  { %8613 = vmatmul.mubr.bf16.gmra.mrb[60].mxu1 %v12444_v15 }
 0x770   :  { %8632 = vmatprep.mubr.bf16.mxu1 %v12335_v40  ;;  %v9921_v40 = vld [vmem:[%s12810_s6 + $0x24] ss:$8 sps:$4 sm:$0xff]  }
 0x777   :  { %8633 = vmatmul.mubr.bf16.vlgmr.msra.gmra.mrb[32].mxu1 %v12339_v25  ;;  %v9924_v25 = vld [vmem:[%s12810_s6 + $0x34] ss:$8 sps:$4 sm:$0xff]  }
 0x778   :  { %8636 = vmatprep.mubr.bf16.mxu1 %v12356_v53  ;;  %6707 = vmatpush1.bf16.msra.mxu1 %v9913_v28  ;;  %v9922_v53 = vld [vmem:[%s12810_s6 + $0x30] ss:$8 sps:$4 sm:$0xff]  }
 0x779   :  { %6708 = vmatprep.subr.bf16.mxu1 %v9918_v21 }
 0x77c   :  { %6709 = vmatpush1.bf16.msra.mxu1 %v9916_v36 }
 0x77d   :  { %6710 = vmatprep.subr.bf16.mxu1 %v9921_v40 }
 0x77f   :  { %8637 = vmatmul.mubr.bf16.gmra.mrb[36].mxu1 %v12366_v32  ;;  %v9930_v32 = vld [vmem:[%s12810_s6 + $0x54] ss:$8 sps:$4 sm:$0xff]  }
 0x780   :  { %8640 = vmatprep.mubr.bf16.mxu1 %v12381_v16  ;;  %6711 = vmatpush1.bf16.msra.mxu1 %v9919_v11  ;;  %v9928_v16 = vld [vmem:[%s12810_s6 + $0x50] ss:$8 sps:$4 sm:$0xff]  }
 0x781   :  { %6712 = vmatprep.subr.bf16.mxu1 %v9924_v25 }
 0x784   :  { %6713 = vmatpush1.bf16.msra.mxu1 %v9922_v53 }
 0x785   :  { %6714 = vmatprep.subr.bf16.mxu1 %v9927_v27 }
 0x787   :  { %8641 = vmatmul.mubr.bf16.gmra.mrb[40].mxu1 %v12384_v7  ;;  %v9931_v7 = vld [vmem:[%s12810_s6 + $0x60] ss:$8 sps:$4 sm:$0xff]  }
 0x788   :  { %8644 = vmatprep.mubr.bf16.mxu1 %v12387_v10  ;;  %6715 = vmatpush1.bf16.msra.mxu1 %v9925_v23  ;;  %v9933_v10 = vld [vmem:[%s12810_s6 + $0x64] ss:$8 sps:$4 sm:$0xff]  }
 0x789   :  { %6716 = vmatprep.subr.bf16.mxu1 %v9930_v32 }
 0x78c   :  { %6717 = vmatpush1.bf16.msra.mxu1 %v9928_v16 }
 0x78d   :  { %6718 = vmatprep.subr.bf16.mxu1 %v9933_v10 }
 0x78f   :  { %8645 = vmatmul.mubr.bf16.gmra.mrb[44].mxu1 %v12390_v9  ;;  %v9936_v9 = vld [vmem:[%s12810_s6 + $0x74] ss:$8 sps:$4 sm:$0xff]  }
 0x790   :  { %8648 = vmatprep.mubr.bf16.mxu1 %v12393_v41  ;;  %6719 = vmatpush1.bf16.msra.mxu1 %v9931_v7  ;;  %v9934_v41 = vld [vmem:[%s12810_s6 + $0x70] ss:$8 sps:$4 sm:$0xff]  }
 0x791   :  { %6720 = vmatprep.subr.bf16.mxu1 %v9936_v9 }
 0x794   :  { %6721 = vmatpush1.bf16.msra.mxu1 %v9934_v41 }
 0x797   :  { %8649 = vmatmul.mubr.bf16.gmra.mrb[48].mxu1 %v12396_v57  ;;  %v9937_v57 = vld [vmem:[%s12811_s7 + $0x40] sm:$0xff]  }
 0x798   :  { %8652 = vmatprep.mubr.bf16.mxu1 %v12416_v44  ;;  %8664 = vmatprep.subr.bf16.mxu1 %v9937_v57 }
 0x79f   :  { %8653 = vmatmul.mubr.bf16.gmra.mrb[52].mxu1 %v12426_v2 }
 0x7a0   :  { %8656 = vmatprep.mubr.bf16.mxu1 %v12440_v62 }
 0x7a7   :  { %8657 = vmatmul.mubr.bf16.gmra.mrb[56].mxu1 %v12444_v15 }
 0x7a8   :  { %8660 = vmatprep.mubr.bf16.mxu1 %v12464_v58 }
 0x7af   :  { %8661 = vmatmul.mubr.bf16.gmra.mrb[60].mxu1 %v12474_v59  ;;  %v9939_v59 = vld [vmem:[%s12811_s7 + $0x50] sm:$0xff]  }
 0x7b0   :  { %6738 = vmatprep.mubr.bf16.mxu1 %v12874_v26 }
 0x84a   :  { %v8634_v44 = vpop.f32.mrb[32].mxu1 }
 0x84b   :  { %v6340_v2 = vpop.f32.mrb[33].mxu1  ;;  %v6508_v17 = vadd.f32 %v8634_v44, %v12599_v8 }
 0x84c   :  { %v8635_v0 = vpop.f32.mrb[34].mxu1  ;;  %v6506_v19 = vadd.f32 %v12599_v8, %v6340_v2 }
 0x84d   :  { %v6343_v33 = vpop.f32.mrb[35].mxu1  ;;  %v6509_v14 = vadd.f32 %v8635_v0, %v12599_v8  ;;  %v6540_v4 = vmax.f32 %v6508_v17, 0.0 }
 0x84e   :  { %v6507_v46 = vadd.f32 %v12599_v8, %v6343_v33  ;;  %v6538_v38 = vmax.f32 %v6506_v19, 0.0 }
 0x84f   :  { %v6541_v30 = vmax.f32 %v6509_v14, 0.0 }
 0x850   :  { %v6539_v48 = vmax.f32 %v6507_v46, 0.0 }
 0x852   :  { %v8638_v43 = vpop.f32.mrb[36].mxu1 }
 0x853   :  { %v6512_v62 = vadd.f32 %v8638_v43, %v12599_v8  ;;  %v6356_v52 = vpop.f32.mrb[37].mxu1 }
 0x854   :  { %v6510_v39 = vadd.f32 %v12599_v8, %v6356_v52  ;;  %v8639_v5 = vpop.f32.mrb[38].mxu1 }
 0x855   :  { %v6544_v61 = vmax.f32 %v6512_v62, 0.0  ;;  %v6513_v15 = vadd.f32 %v8639_v5, %v12599_v8  ;;  %v6359_v22 = vpop.f32.mrb[39].mxu1 }
 0x856   :  { %v6542_v47 = vmax.f32 %v6510_v39, 0.0  ;;  %v6511_v45 = vadd.f32 %v12599_v8, %v6359_v22 }
 0x857   :  { %v6572_v12 = vmax.f32 %v6540_v4, %v6544_v61  ;;  %v6545_v50 = vmax.f32 %v6513_v15, 0.0 }
 0x858   :  { %v6570_v63 = vmax.f32 %v6538_v38, %v6542_v47  ;;  %v6543_v55 = vmax.f32 %v6511_v45, 0.0 }
 0x859   :  { %v6573_v58 = vmax.f32 %v6541_v30, %v6545_v50 }
 0x85a   :  { %v6571_v20 = vmax.f32 %v6539_v48, %v6543_v55  ;;  %v8642_v49 = vpop.f32.mrb[40].mxu1 }
 0x85b   :  { %v6575_v24 = vpack.c.bf16 %v6573_v58, %v6572_v12  ;;  %v6372_v60 = vpop.f32.mrb[41].mxu1  ;;  %v6516_v13 = vadd.f32 %v8642_v49, %v12599_v8 }
 0x85c   :  { %v6574_v35 = vpack.c.bf16 %v6571_v20, %v6570_v63  ;;  %v8643_v54 = vpop.f32.mrb[42].mxu1  ;;  %v6514_v37 = vadd.f32 %v12599_v8, %v6372_v60 }
 0x85d   :  { %v6375_v42 = vpop.f32.mrb[43].mxu1  ;;  %v6517_v18 = vadd.f32 %v8643_v54, %v12599_v8  ;;  %v6548_v28 = vmax.f32 %v6516_v13, 0.0 }
 0x85e   :  { %6739 = vmatmul.mubr.bf16.vlgmr.msra.gmra.mrb[64].mxu1 %v6574_v35  ;;  %v6515_v6 = vadd.f32 %v12599_v8, %v6375_v42  ;;  %v6546_v11 = vmax.f32 %v6514_v37, 0.0 }
 0x85f   :  { %6748 = vmatprep.mubr.bf16.mxu1 %v12874_v26  ;;  %8665 = vmatpush3.bf16.msra.mxu1 %v9937_v57  ;;  %v6549_v27 = vmax.f32 %v6517_v18, 0.0 }
 0x860   :  { %8666 = vmatprep.subr.bf16.mxu1 %v9938_v3  ;;  %v6547_v16 = vmax.f32 %v6515_v6, 0.0 }
 0x862   :  { %v8646_v1 = vpop.f32.mrb[44].mxu1 }
 0x863   :  { %v6520_v51 = vadd.f32 %v8646_v1, %v12599_v8  ;;  %v6388_v34 = vpop.f32.mrb[45].mxu1  ;;  %8667 = vmatpush3.bf16.msra.mxu1 %v9938_v3 }
 0x864   :  { %v6518_v56 = vadd.f32 %v12599_v8, %v6388_v34  ;;  %v8647_v31 = vpop.f32.mrb[46].mxu1  ;;  %8668 = vmatprep.subr.bf16.mxu1 %v9939_v59 }
 0x865   :  { %v6552_v21 = vmax.f32 %v6520_v51, 0.0  ;;  %v6521_v36 = vadd.f32 %v8647_v31, %v12599_v8  ;;  %v6391_v40 = vpop.f32.mrb[47].mxu1 }
 0x866   :  { %v6550_v25 = vmax.f32 %v6518_v56, 0.0  ;;  %v6519_v53 = vadd.f32 %v12599_v8, %v6391_v40  ;;  %6749 = vmatmul.mubr.bf16.gmra.mrb[68].mxu1 %v6575_v24 }
 0x867   :  { %v6580_v23 = vmax.f32 %v6548_v28, %v6552_v21  ;;  %v6553_v32 = vmax.f32 %v6521_v36, 0.0  ;;  %6758 = vmatprep.mubr.bf16.mxu1 %v12874_v26  ;;  %8669 = vmatpush3.bf16.msra.mxu1 %v9939_v59 }
 0x868   :  { %v6578_v7 = vmax.f32 %v6546_v11, %v6550_v25  ;;  %v6551_v10 = vmax.f32 %v6519_v53, 0.0  ;;  %8670 = vmatprep.subr.bf16.mxu1 %v9940_v29 }
 0x869   :  { %v6581_v9 = vmax.f32 %v6549_v27, %v6553_v32 }
 0x86a   :  { %v6579_v41 = vmax.f32 %v6547_v16, %v6551_v10  ;;  %v8650_v57 = vpop.f32.mrb[48].mxu1 }
 0x86b   :  { %v6583_v44 = vpack.c.bf16 %v6581_v9, %v6580_v23  ;;  %v6404_v2 = vpop.f32.mrb[49].mxu1  ;;  %8671 = vmatpush3.bf16.msra.mxu1 %v9940_v29  ;;  %v6524_v19 = vadd.f32 %v8650_v57, %v12599_v8  ;;  %v9942_v57 = vld [vmem:[%s12811_s7 + $0x68] sm:$0xff]  }
 0x86c   :  { %v6582_v0 = vpack.c.bf16 %v6579_v41, %v6578_v7  ;;  %v8651_v33 = vpop.f32.mrb[50].mxu1  ;;  %v6522_v43 = vadd.f32 %v12599_v8, %v6404_v2  ;;  %v9945_v2 = vld [vmem:[%s12811_s7] sm:$0xff]  }
 0x86d   :  { %v6407_v17 = vpop.f32.mrb[51].mxu1  ;;  %v6525_v62 = vadd.f32 %v8651_v33, %v12599_v8  ;;  %v6556_v61 = vmax.f32 %v6524_v19, 0.0 }
 0x86e   :  { %6759 = vmatmul.mubr.bf16.gmra.mrb[72].mxu1 %v6582_v0  ;;  %v6523_v39 = vadd.f32 %v12599_v8, %v6407_v17  ;;  %v6554_v47 = vmax.f32 %v6522_v43, 0.0 }
 0x86f   :  { %6768 = vmatprep.mubr.bf16.mxu1 %v12874_v26  ;;  %v6557_v12 = vmax.f32 %v6525_v62, 0.0 }
 0x870   :  { %v6555_v63 = vmax.f32 %v6523_v39, 0.0 }
 0x872   :  { %v8654_v14 = vpop.f32.mrb[52].mxu1 }
 0x873   :  { %v6528_v52 = vadd.f32 %v8654_v14, %v12599_v8  ;;  %v6420_v46 = vpop.f32.mrb[53].mxu1 }
 0x874   :  { %v6526_v5 = vadd.f32 %v12599_v8, %v6420_v46  ;;  %v8655_v4 = vpop.f32.mrb[54].mxu1 }
 0x875   :  { %v6560_v15 = vmax.f32 %v6528_v52, 0.0  ;;  %v6529_v22 = vadd.f32 %v8655_v4, %v12599_v8  ;;  %v6423_v38 = vpop.f32.mrb[55].mxu1 }
 0x876   :  { %v6558_v45 = vmax.f32 %v6526_v5, 0.0  ;;  %v6527_v30 = vadd.f32 %v12599_v8, %v6423_v38  ;;  %6769 = vmatmul.mubr.bf16.gmra.mrb[76].mxu1 %v6583_v44  ;;  %v9943_v44 = vld [vmem:[%s12811_s7 + $0x70] sm:$0xff]  }
 0x877   :  { %v6588_v50 = vmax.f32 %v6556_v61, %v6560_v15  ;;  %v6561_v48 = vmax.f32 %v6529_v22, 0.0  ;;  %6778 = vmatprep.mubr.bf16.mxu1 %v12874_v26 }
 0x878   :  { %v6586_v55 = vmax.f32 %v6554_v47, %v6558_v45  ;;  %v6559_v58 = vmax.f32 %v6527_v30, 0.0 }
 0x879   :  { %v6589_v20 = vmax.f32 %v6557_v12, %v6561_v48 }
 0x87a   :  { %v6587_v49 = vmax.f32 %v6555_v63, %v6559_v58  ;;  %v8658_v24 = vpop.f32.mrb[56].mxu1 }
 0x87b   :  { %v6591_v60 = vpack.c.bf16 %v6589_v20, %v6588_v50  ;;  %v6436_v35 = vpop.f32.mrb[57].mxu1  ;;  %v6532_v59 = vadd.f32 %v8658_v24, %v12599_v8 }
 0x87c   :  { %v6590_v54 = vpack.c.bf16 %v6587_v49, %v6586_v55  ;;  %v8659_v3 = vpop.f32.mrb[58].mxu1  ;;  %v6530_v13 = vadd.f32 %v12599_v8, %v6436_v35 }
 0x87d   :  { %v6439_v42 = vpop.f32.mrb[59].mxu1  ;;  %v6533_v1 = vadd.f32 %v8659_v3, %v12599_v8  ;;  %v6564_v31 = vmax.f32 %v6532_v59, 0.0  ;;  %v9947_v59 = vld [vmem:[%s12811_s7 + $0x10] sm:$0xff]  }
 0x87e   :  { %6779 = vmatmul.mubr.bf16.gmra.mrb[80].mxu1 %v6590_v54  ;;  %v6531_v34 = vadd.f32 %v12599_v8, %v6439_v42  ;;  %v6562_v36 = vmax.f32 %v6530_v13, 0.0 }
 0x87f   :  { %6788 = vmatprep.mubr.bf16.mxu1 %v12874_v26  ;;  %v6565_v25 = vmax.f32 %v6533_v1, 0.0 }
 0x880   :  { %v6563_v23 = vmax.f32 %v6531_v34, 0.0 }
 0x882   :  { %v8662_v37 = vpop.f32.mrb[60].mxu1 }
 0x883   :  { %v6536_v18 = vadd.f32 %v8662_v37, %v12599_v8  ;;  %v6452_v51 = vpop.f32.mrb[61].mxu1 }
 0x884   :  { %v6534_v6 = vadd.f32 %v12599_v8, %v6452_v51  ;;  %v8663_v56 = vpop.f32.mrb[62].mxu1 }
 0x885   :  { %v6568_v29 = vmax.f32 %v6536_v18, 0.0  ;;  %v6537_v28 = vadd.f32 %v8663_v56, %v12599_v8  ;;  %v6455_v21 = vpop.f32.mrb[63].mxu1  ;;  %v9948_v18 = vld [vmem:[%s12811_s7 + $0x18] sm:$0xff]  }
 0x886   :  { %v6566_v40 = vmax.f32 %v6534_v6, 0.0  ;;  %v6535_v11 = vadd.f32 %v12599_v8, %v6455_v21  ;;  %6789 = vmatmul.mubr.bf16.gmra.mrb[84].mxu1 %v6591_v60  ;;  %v9941_v8 = vld [vmem:[%s12811_s7 + $0x60] sm:$0xff]   ;;  %v9946_v60 = vld [vmem:[%s12811_s7 + $0x8] sm:$0xff]  }
 0x887   :  { %v6596_v53 = vmax.f32 %v6564_v31, %v6568_v29  ;;  %v6569_v27 = vmax.f32 %v6537_v28, 0.0  ;;  %6798 = vmatprep.mubr.bf16.mxu1 %v12874_v26  ;;  %8672 = vmatprep.subr.bf16.mxu1 %v9941_v8  ;;  %v9949_v31 = vld [vmem:[%s12811_s7 + $0x20] sm:$0xff]  }
 0x888   :  { %v6594_v32 = vmax.f32 %v6562_v36, %v6566_v40  ;;  %v6567_v16 = vmax.f32 %v6535_v11, 0.0  ;;  %8673 = vmatpush3.bf16.msra.mxu1 %v9941_v8  ;;  %v9950_v36 = vld [vmem:[%s12811_s7 + $0x28] sm:$0xff]  }
 0x889   :  { %v6597_v7 = vmax.f32 %v6565_v25, %v6569_v27  ;;  %8674 = vmatprep.subr.bf16.mxu1 %v9942_v57  ;;  %v9951_v27 = vld [vmem:[%s12811_s7 + $0x30] sm:$0xff]  }
 0x88a   :  { %v6595_v10 = vmax.f32 %v6563_v23, %v6567_v16 }
 0x88b   :  { %v6599_v9 = vpack.c.bf16 %v6597_v7, %v6596_v53  ;;  %v9952_v7 = vld [vmem:[%s12811_s7 + $0x38] sm:$0xff]  }
 0x88c   :  { %v6598_v41 = vpack.c.bf16 %v6595_v10, %v6594_v32  ;;  %8675 = vmatpush3.bf16.msra.mxu1 %v9942_v57  ;;  %v9953_v57 = vld [vmem:[%s12811_s7 + $0x80] sm:$0xff]  }
 0x88d   :  { %8676 = vmatprep.subr.bf16.mxu1 %v9943_v44 }
 0x88e   :  { %6799 = vmatmul.mubr.bf16.gmra.mrb[88].mxu1 %v6598_v41 }
 0x88f   :  { %6808 = vmatprep.mubr.bf16.mxu1 %v12874_v26  ;;  %v9944_v26 = vld [vmem:[%s12811_s7 + $0x78] sm:$0xff]  }
 0x890   :  { %8677 = vmatpush3.bf16.msra.mxu1 %v9943_v44 }
 0x891   :  { %8678 = vmatprep.subr.bf16.mxu1 %v9944_v26 }
 0x894   :  { %8679 = vmatpush3.bf16.msra.mxu1 %v9944_v26 }
 0x895   :  { %8684 = vmatprep.subr.bf16.mxu1 %v9945_v2 }
 0x896   :  { %6809 = vmatmul.mubr.bf16.gmra.mrb[92].mxu1 %v6599_v9 }
 0x931   :  { %v6740_v0 = vpop.f32.mrb[64].mxu1 }
 0x932   :  { %v6742_v33 = vpop.f32.mrb[65].mxu1 }
 0x933   :  { %v6819_v17 = vmax.f32 %v6740_v0, %v6742_v33  ;;  %v6744_v19 = vpop.f32.mrb[66].mxu1  ;;  %v9954_v0 = vld [vmem:[%s12811_s7 + $0x88] sm:$0xff]   ;;  %v9955_v33 = vld [vmem:[%s12811_s7 + $0x90] sm:$0xff]  }
 0x934   :  { %v6746_v43 = vpop.f32.mrb[67].mxu1 }
 0x935   :  { %v6820_v14 = vmax.f32 %v6744_v19, %v6746_v43  ;;  %v9957_v19 = vld [vmem:[%s12811_s7 + $0xa0] sm:$0xff]   ;;  %v9958_v43 = vld [vmem:[%s12811_s7 + $0xa8] sm:$0xff]  }
 0x937   :  { %v6835_v62 = vpack.c.bf16 %v6820_v14, %v6819_v17  ;;  %v9956_v17 = vld [vmem:[%s12811_s7 + $0x98] sm:$0xff]   ;;  %v9959_v14 = vld [vmem:[%s12811_s7 + $0xb0] sm:$0xff]  }
 0x939   :  { %v6750_v52 = vpop.f32.mrb[68].mxu1 }
 0x93a   :  { %v6752_v46 = vpop.f32.mrb[69].mxu1 }
 0x93b   :  { %v6821_v39 = vmax.f32 %v6750_v52, %v6752_v46  ;;  %v6754_v5 = vpop.f32.mrb[70].mxu1  ;;  %v9961_v52 = vld [vmem:[%s12811_s7 + $0xc0] sm:$0xff]   ;;  %v9962_v46 = vld [vmem:[%s12811_s7 + $0xc8] sm:$0xff]  }
 0x93c   :  { %v6756_v4 = vpop.f32.mrb[71].mxu1 }
 0x93d   :  { %v6822_v61 = vmax.f32 %v6754_v5, %v6756_v4  ;;  %v9964_v5 = vld [vmem:[%s12811_s7 + $0xd8] sm:$0xff]   ;;  %v9965_v4 = vld [vmem:[%s12811_s7 + $0xe0] sm:$0xff]  }
 0x93f   :  { %v12664_v15 = vpack.c.bf16 %v6822_v61, %v6821_v39  ;;  %v9963_v39 = vld [vmem:[%s12811_s7 + $0xd0] sm:$0xff]   ;;  %v9966_v61 = vld [vmem:[%s12811_s7 + $0xe8] sm:$0xff]  }
 0x941   :  { %v6760_v22 = vpop.f32.mrb[72].mxu1 }
 0x942   :  { %v6762_v38 = vpop.f32.mrb[73].mxu1 }
 0x943   :  { %v6823_v47 = vmax.f32 %v6760_v22, %v6762_v38  ;;  %v6764_v45 = vpop.f32.mrb[74].mxu1  ;;  %v9968_v22 = vld [vmem:[%s12811_s7 + $0xf8] sm:$0xff]   ;;  %v9969_v38 = vld [vmem:[%s12813_s9] sm:$0xff]  }
 0x944   :  { %v6766_v30 = vpop.f32.mrb[75].mxu1 }
 0x945   :  { %v6824_v12 = vmax.f32 %v6764_v45, %v6766_v30  ;;  %v9971_v45 = vld [vmem:[%s12813_s9 + $0x10] sm:$0xff]   ;;  %v9972_v30 = vld [vmem:[%s12813_s9 + $0x18] sm:$0xff]  }
 0x947   :  { %v6837_v50 = vpack.c.bf16 %v6824_v12, %v6823_v47  ;;  %v9970_v47 = vld [vmem:[%s12813_s9 + $0x8] sm:$0xff]   ;;  %v9973_v12 = vld [vmem:[%s12813_s9 + $0x20] sm:$0xff]  }
 0x949   :  { %v6770_v48 = vpop.f32.mrb[76].mxu1  ;;  %8680 = vmatprep.mubr.bf16.mxu1 %v6837_v50  ;;  %v9974_v50 = vld [vmem:[%s12813_s9 + $0x28] sm:$0xff]  }
 0x94a   :  { %v6772_v63 = vpop.f32.mrb[77].mxu1 }
 0x94b   :  { %v6825_v55 = vmax.f32 %v6770_v48, %v6772_v63  ;;  %v6774_v58 = vpop.f32.mrb[78].mxu1  ;;  %v9975_v48 = vld [vmem:[%s12813_s9 + $0x30] sm:$0xff]   ;;  %v9976_v63 = vld [vmem:[%s12813_s9 + $0x38] sm:$0xff]  }
 0x94c   :  { %v6776_v20 = vpop.f32.mrb[79].mxu1 }
 0x94d   :  { %v6826_v49 = vmax.f32 %v6774_v58, %v6776_v20  ;;  %v8225_v58 = vld [vmem:[%s12815_s8] ss:$0 sm:$0xff] }
 0x94f   :  { %v6838_v24 = vpack.c.bf16 %v6826_v49, %v6825_v55  ;;  %v9977_v55 = vld [vmem:[%s12814_s11] sm:$0xff]  }
 0x951   :  { %v6780_v35 = vpop.f32.mrb[80].mxu1  ;;  %8681 = vmatmul.mubr.bf16.vlgmr.msra.gmra.mrb[96].mxu1 %v6838_v24 }
 0x952   :  { %8685 = vmatpush3.bf16.msra.mxu1 %v9945_v2  ;;  %v6782_v54 = vpop.f32.mrb[81].mxu1  ;;  %8700 = vmatprep.mubr.bf16.mxu1 %v6835_v62  ;;  %v9960_v62 = vld [vmem:[%s12811_s7 + $0xb8] sm:$0xff]  }
 0x953   :  { %v6827_v3 = vmax.f32 %v6780_v35, %v6782_v54  ;;  %v6784_v42 = vpop.f32.mrb[82].mxu1  ;;  %8686 = vmatprep.subr.bf16.mxu1 %v9946_v60 }
 0x954   :  { %v6786_v13 = vpop.f32.mrb[83].mxu1 }
 0x955   :  { %v6828_v37 = vmax.f32 %v6784_v42, %v6786_v13 }
 0x956   :  { %8687 = vmatpush3.bf16.msra.mxu1 %v9946_v60 }
 0x957   :  { %v6839_v1 = vpack.c.bf16 %v6828_v37, %v6827_v3  ;;  %8688 = vmatprep.subr.bf16.mxu1 %v9947_v59 }
 0x959   :  { %v6790_v51 = vpop.f32.mrb[84].mxu1 }
 0x95a   :  { %8689 = vmatpush3.bf16.msra.mxu1 %v9947_v59  ;;  %v6792_v34 = vpop.f32.mrb[85].mxu1 }
 0x95b   :  { %v6829_v6 = vmax.f32 %v6790_v51, %v6792_v34  ;;  %v6794_v56 = vpop.f32.mrb[86].mxu1  ;;  %8690 = vmatprep.subr.bf16.mxu1 %v9948_v18  ;;  %v9978_v34 = vld [vmem:[%s12814_s11 + $0x8] sm:$0xff]  }
 0x95c   :  { %v6796_v29 = vpop.f32.mrb[87].mxu1 }
 0x95d   :  { %v6830_v28 = vmax.f32 %v6794_v56, %v6796_v29  ;;  %v9980_v56 = vld [vmem:[%s12814_s11 + $0x18] sm:$0xff]   ;;  %v9982_v29 = vld [vmem:[%s12814_s11 + $0x28] sm:$0xff]  }
 0x95e   :  { %8691 = vmatpush3.bf16.msra.mxu1 %v9948_v18 }
 0x95f   :  { %v6840_v21 = vpack.c.bf16 %v6830_v28, %v6829_v6  ;;  %8692 = vmatprep.subr.bf16.mxu1 %v9949_v31  ;;  %v9979_v6 = vld [vmem:[%s12814_s11 + $0x10] sm:$0xff]  }
 0x960   :  { %v9983_v28 = vld [vmem:[%s12814_s11 + $0x30] sm:$0xff]  }
 0x961   :  { %v6800_v40 = vpop.f32.mrb[88].mxu1 }
 0x962   :  { %8693 = vmatpush3.bf16.msra.mxu1 %v9949_v31  ;;  %v6802_v11 = vpop.f32.mrb[89].mxu1  ;;  %v9981_v31 = vld [vmem:[%s12814_s11 + $0x20] sm:$0xff]  }
 0x963   :  { %v6831_v25 = vmax.f32 %v6800_v40, %v6802_v11  ;;  %v6804_v53 = vpop.f32.mrb[90].mxu1  ;;  %8694 = vmatprep.subr.bf16.mxu1 %v9950_v36 }
 0x964   :  { %v6806_v23 = vpop.f32.mrb[91].mxu1 }
 0x965   :  { %v6832_v32 = vmax.f32 %v6804_v53, %v6806_v23 }
 0x966   :  { %8695 = vmatpush3.bf16.msra.mxu1 %v9950_v36  ;;  %v8226_v36 = vld [vmem:[%s12816_s10] ss:$0 sm:$0xff] }
 0x967   :  { %v6841_v16 = vpack.c.bf16 %v6832_v32, %v6831_v25  ;;  %8696 = vmatprep.subr.bf16.mxu1 %v9951_v27 }
 0x969   :  { %v6810_v10 = vpop.f32.mrb[92].mxu1 }
 0x96a   :  { %8697 = vmatpush3.bf16.msra.mxu1 %v9951_v27  ;;  %v6812_v9 = vpop.f32.mrb[93].mxu1 }
 0x96b   :  { %v6833_v41 = vmax.f32 %v6810_v10, %v6812_v9  ;;  %v6814_v8 = vpop.f32.mrb[94].mxu1  ;;  %8698 = vmatprep.subr.bf16.mxu1 %v9952_v7 }
 0x96c   :  { %v6816_v44 = vpop.f32.mrb[95].mxu1 }
 0x96d   :  { %v6834_v26 = vmax.f32 %v6814_v8, %v6816_v44  ;;  %v8235_v44 = vld [vmem:[%s12817_s12] ss:$0 sm:$0xff] }
 0x96e   :  { %8699 = vmatpush3.bf16.msra.mxu1 %v9952_v7 }
 0x96f   :  { %v6842_v2 = vpack.c.bf16 %v6834_v26, %v6833_v41  ;;  %8704 = vmatprep.subr.bf16.mxu1 %v9953_v57 }
 0x971   :  { %8701 = vmatmul.mubr.bf16.vlgmr.msra.gmra.mrb[96].mxu1 %v12664_v15  ;;  %v9967_v15 = vld [vmem:[%s12811_s7 + $0xf0] sm:$0xff]  }
 0x972   :  { %8705 = vmatpush3.bf16.msra.mxu1 %v9953_v57  ;;  %8720 = vmatprep.mubr.bf16.mxu1 %v6839_v1 }
 0x973   :  { %8706 = vmatprep.subr.bf16.mxu1 %v9954_v0 }
 0x976   :  { %8707 = vmatpush3.bf16.msra.mxu1 %v9954_v0 }
 0x977   :  { %8708 = vmatprep.subr.bf16.mxu1 %v9955_v33 }
 0x97a   :  { %8709 = vmatpush3.bf16.msra.mxu1 %v9955_v33 }
 0x97b   :  { %8710 = vmatprep.subr.bf16.mxu1 %v9956_v17 }
 0x97e   :  { %8711 = vmatpush3.bf16.msra.mxu1 %v9956_v17 }
 0x97f   :  { %8712 = vmatprep.subr.bf16.mxu1 %v9957_v19 }
 0x982   :  { %8713 = vmatpush3.bf16.msra.mxu1 %v9957_v19 }
 0x983   :  { %8714 = vmatprep.subr.bf16.mxu1 %v9958_v43 }
 0x986   :  { %8715 = vmatpush3.bf16.msra.mxu1 %v9958_v43 }
 0x987   :  { %8716 = vmatprep.subr.bf16.mxu1 %v9959_v14 }
 0x98a   :  { %8717 = vmatpush3.bf16.msra.mxu1 %v9959_v14 }
 0x98b   :  { %8718 = vmatprep.subr.bf16.mxu1 %v9960_v62 }
 0x98e   :  { %8719 = vmatpush3.bf16.msra.mxu1 %v9960_v62 }
 0x98f   :  { %8724 = vmatprep.subr.bf16.mxu1 %v9961_v52 }
 0x991   :  { %8721 = vmatmul.mubr.bf16.vlgmr.msra.gmra.mrb[96].mxu1 %v6840_v21  ;;  %v9984_v21 = vld [vmem:[%s12814_s11 + $0x38] sm:$0xff]  }
 0x992   :  { %8725 = vmatpush3.bf16.msra.mxu1 %v9961_v52  ;;  %8740 = vmatprep.mubr.bf16.mxu1 %v6841_v16 }
 0x993   :  { %8726 = vmatprep.subr.bf16.mxu1 %v9962_v46 }
 0x996   :  { %8727 = vmatpush3.bf16.msra.mxu1 %v9962_v46 }
 0x997   :  { %8728 = vmatprep.subr.bf16.mxu1 %v9963_v39 }
 0x99a   :  { %8729 = vmatpush3.bf16.msra.mxu1 %v9963_v39 }
 0x99b   :  { %8730 = vmatprep.subr.bf16.mxu1 %v9964_v5 }
 0x99e   :  { %8731 = vmatpush3.bf16.msra.mxu1 %v9964_v5 }
 0x99f   :  { %8732 = vmatprep.subr.bf16.mxu1 %v9965_v4 }
 0x9a2   :  { %8733 = vmatpush3.bf16.msra.mxu1 %v9965_v4 }
 0x9a3   :  { %8734 = vmatprep.subr.bf16.mxu1 %v9966_v61 }
 0x9a6   :  { %8735 = vmatpush3.bf16.msra.mxu1 %v9966_v61 }
 0x9a7   :  { %8736 = vmatprep.subr.bf16.mxu1 %v9967_v15 }
 0x9aa   :  { %8737 = vmatpush3.bf16.msra.mxu1 %v9967_v15 }
 0x9ab   :  { %8738 = vmatprep.subr.bf16.mxu1 %v9968_v22 }
 0x9ae   :  { %8739 = vmatpush3.bf16.msra.mxu1 %v9968_v22 }
 0x9af   :  { %8744 = vmatprep.subr.bf16.mxu1 %v9969_v38 }
 0x9b1   :  { %8741 = vmatmul.mubr.bf16.vlgmr.msra.gmra.mrb[96].mxu1 %v6842_v2 }
 0x9b2   :  { %8745 = vmatpush3.bf16.msra.mxu1 %v9969_v38 }
 0x9b3   :  { %8746 = vmatprep.subr.bf16.mxu1 %v9970_v47 }
 0x9b6   :  { %8747 = vmatpush3.bf16.msra.mxu1 %v9970_v47 }
 0x9b7   :  { %8748 = vmatprep.subr.bf16.mxu1 %v9971_v45 }
 0x9ba   :  { %8749 = vmatpush3.bf16.msra.mxu1 %v9971_v45 }
 0x9bb   :  { %8750 = vmatprep.subr.bf16.mxu1 %v9972_v30 }
 0x9be   :  { %8751 = vmatpush3.bf16.msra.mxu1 %v9972_v30 }
 0x9bf   :  { %8752 = vmatprep.subr.bf16.mxu1 %v9973_v12 }
 0x9c2   :  { %8753 = vmatpush3.bf16.msra.mxu1 %v9973_v12 }
 0x9c3   :  { %8754 = vmatprep.subr.bf16.mxu1 %v9974_v50 }
 0x9c6   :  { %8755 = vmatpush3.bf16.msra.mxu1 %v9974_v50 }
 0x9c7   :  { %8756 = vmatprep.subr.bf16.mxu1 %v9975_v48 }
 0x9ca   :  { %8757 = vmatpush3.bf16.msra.mxu1 %v9975_v48 }
 0x9cb   :  { %8758 = vmatprep.subr.bf16.mxu1 %v9976_v63 }
 0x9ce   :  { %8759 = vmatpush3.bf16.msra.mxu1 %v9976_v63 }
 0x9cf   :  { %8764 = vmatprep.subr.bf16.mxu1 %v9977_v55 }
 0xa84   :  { %v8742_v20 = vpop.f32.mrb[96].mxu1 }
 0xa85   :  { %v7315_v49 = vadd.f32 %v8742_v20, %v8225_v58  ;;  %v7287_v24 = vpop.f32.mrb[97].mxu1 }
 0xa86   :  { %v7313_v60 = vadd.f32 %v8225_v58, %v7287_v24  ;;  %v8743_v35 = vpop.f32.mrb[98].mxu1 }
 0xa87   :  { %v7316_v54 = vadd.f32 %v8743_v35, %v8225_v58  ;;  %v7290_v3 = vpop.f32.mrb[99].mxu1  ;;  %v7319_v59 = vmax.f32 %v7315_v49, 0.0 }
 0xa88   :  { %v7314_v42 = vadd.f32 %v8225_v58, %v7290_v3  ;;  %v7317_v37 = vmax.f32 %v7313_v60, 0.0 }
 0xa89   :  { %v7320_v13 = vmax.f32 %v7316_v54, 0.0 }
 0xa8a   :  { %v7318_v1 = vmax.f32 %v7314_v42, 0.0 }
 0xa8b   :  { %v7322_v18 = vpack.c.bf16 %v7320_v13, %v7319_v59 }
 0xa8c   :  { %v7321_v51 = vpack.c.bf16 %v7318_v1, %v7317_v37 }
 0xa8e   :  { %8760 = vmatprep.mubr.bf16.mxu1 %v7321_v51 }
 0xa8f   :  { %8761 = vmatmul.mubr.bf16.vlgmr.msra.gmra.mrb[100].mxu1 %v7322_v18 }
 0xa90   :  { %8765 = vmatpush3.bf16.msra.mxu1 %v9977_v55 }
 0xa91   :  { %8766 = vmatprep.subr.bf16.mxu1 %v9978_v34 }
 0xa94   :  { %8767 = vmatpush3.bf16.msra.mxu1 %v9978_v34 }
 0xa95   :  { %8768 = vmatprep.subr.bf16.mxu1 %v9979_v6 }
 0xa98   :  { %8769 = vmatpush3.bf16.msra.mxu1 %v9979_v6 }
 0xa99   :  { %8770 = vmatprep.subr.bf16.mxu1 %v9980_v56 }
 0xa9c   :  { %8771 = vmatpush3.bf16.msra.mxu1 %v9980_v56 }
 0xa9d   :  { %8772 = vmatprep.subr.bf16.mxu1 %v9981_v31 }
 0xaa0   :  { %8773 = vmatpush3.bf16.msra.mxu1 %v9981_v31 }
 0xaa1   :  { %8774 = vmatprep.subr.bf16.mxu1 %v9982_v29 }
 0xaa4   :  { %8775 = vmatpush3.bf16.msra.mxu1 %v9982_v29 }
 0xaa5   :  { %8776 = vmatprep.subr.bf16.mxu1 %v9983_v28 }
 0xaa8   :  { %8777 = vmatpush3.bf16.msra.mxu1 %v9983_v28 }
 0xaa9   :  { %8778 = vmatprep.subr.bf16.mxu1 %v9984_v21 }
 0xaac   :  { %8779 = vmatpush3.bf16.msra.mxu1 %v9984_v21 }
 0xb62   :  { %v8762_v40 = vpop.f32.mrb[100].mxu1 }
 0xb63   :  { %v7437_v11 = vadd.f32 %v8762_v40, %v8226_v36  ;;  %v7428_v25 = vpop.f32.mrb[101].mxu1 }
 0xb64   :  { %v7429_v53 = vadd.f32 %v8226_v36, %v7428_v25  ;;  %v8763_v27 = vpop.f32.mrb[102].mxu1 }
 0xb65   :  { %v7440_v23 = vadd.f32 %v8763_v27, %v8226_v36  ;;  %v7431_v32 = vpop.f32.mrb[103].mxu1  ;;  %v7445_v7 = vmax.f32 %v7437_v11, 0.0 }
 0xb66   :  { %v7432_v16 = vadd.f32 %v8226_v36, %v7431_v32  ;;  %v7443_v9 = vmax.f32 %v7429_v53, 0.0 }
 0xb67   :  { %v7446_v10 = vmax.f32 %v7440_v23, 0.0 }
 0xb68   :  { %v7444_v41 = vmax.f32 %v7432_v16, 0.0 }
 0xb69   :  { %v7448_v8 = vpack.c.bf16 %v7446_v10, %v7445_v7 }
 0xb6a   :  { %v7447_v57 = vpack.c.bf16 %v7444_v41, %v7443_v9 }
 0xb6c   :  { %8780 = vmatprep.mubr.bf16.mxu1 %v7447_v57 }
 0xb6d   :  { %8781 = vmatmul.mubr.bf16.vlgmr.msra.gmra.mrb[104].mxu1 %v7448_v8 }
 0xc40   :  { %v8782_v26 = vpop.f32.mrb[104].mxu1 }
 0xc41   :  { %v7563_v2 = vadd.f32 %v8782_v26, %v8235_v44  ;;  %v7554_v0 = vpop.f32.mrb[105].mxu1 }
 0xc42   :  { %v7555_v33 = vadd.f32 %v8235_v44, %v7554_v0  ;;  %v8783_v17 = vpop.f32.mrb[106].mxu1 }
 0xc43   :  { %7571 = vst [vmem:[%s12818_s13 + $0x10] sm:$0xff] %v7563_v2  ;;  %v7566_v19 = vadd.f32 %v8783_v17, %v8235_v44  ;;  %v7557_v43 = vpop.f32.mrb[107].mxu1 }
 0xc44   :  { %7569 = vst [vmem:[%s12818_s13] sm:$0xff] %v7555_v33  ;;  %v7558_v14 = vadd.f32 %v8235_v44, %v7557_v43 }
 0xc45   :  { %7572 = vst [vmem:[%s12818_s13 + $0x18] sm:$0xff] %v7566_v19 }
 0xc46   :  { %7570 = vst [vmem:[%s12818_s13 + $0x8] sm:$0xff] %v7558_v14 }

</bundles_post_ra>
